<compile_context>
chip_gen: v6e
topology: v6e:2x2x1
jax: 0.10.0
libtpu: 0.0.40
codegen_flags: <defaults>
</compile_context>

<pallas_src>
import jax
import jax.numpy as jnp
from jax.experimental import pallas as pl
from jax.experimental.pallas import tpu as pltpu


def _round_up(x, m):
    return ((x + m - 1) // m) * m


# ----------------------------------------------------------------------------
# Conv kernel: out = relu(planes_block @ W + b), bf16 x bf16 -> f32 -> bf16.
# ----------------------------------------------------------------------------
def _conv_block_kernel(p_ref, w_ref, b_ref, o_ref):
    acc = jnp.dot(p_ref[...], w_ref[...], preferred_element_type=jnp.float32)
    o_ref[...] = jnp.maximum(acc + b_ref[...], 0.0).astype(o_ref.dtype)


def _conv_matmul(planes, w_packed, bias, *, block_cap=256):
    """planes: (M, K) bf16 im2col rows; w_packed: (K, 128) bf16; bias: (128,) f32.
    Returns (M_alloc, 128) bf16; rows [0, M) are the valid output pixels."""
    m_out, k_dim = planes.shape
    k_w, cout = w_packed.shape
    assert k_dim == k_w
    grid = pl.cdiv(m_out, block_cap)
    block_m = _round_up(pl.cdiv(m_out, grid), 8)
    grid = pl.cdiv(m_out, block_m)
    m_alloc = grid * block_m
    if m_alloc > m_out:
        planes = jnp.pad(planes, ((0, m_alloc - m_out), (0, 0)))
    return pl.pallas_call(
        _conv_block_kernel,
        out_shape=jax.ShapeDtypeStruct((m_alloc, cout), jnp.bfloat16),
        grid_spec=pltpu.PrefetchScalarGridSpec(
            num_scalar_prefetch=0,
            grid=(grid,),
            in_specs=[
                pl.BlockSpec((block_m, k_dim), lambda i: (i, 0)),  # row-blocked LHS
                pl.BlockSpec((k_dim, cout), lambda i: (0, 0)),     # resident bf16 W
                pl.BlockSpec((1, cout), lambda i: (0, 0)),         # resident f32 bias
            ],
            out_specs=pl.BlockSpec((block_m, cout), lambda i: (i, 0)),
        ),
        compiler_params=pltpu.CompilerParams(
            dimension_semantics=("parallel",)),
    )(planes, w_packed, bias.reshape(1, cout))


def conv_s2_pallas(a, w_packed, bias):
    """Conv2d(kernel=3, stride=2, padding=1) + bias + ReLU, NHWC.

    a:        (B, H, W, C_store); only the first C_real = w_packed.shape[0]//9
              channels are real (the rest are the previous layer's zero lane
              padding and are sliced off before the im2col).
    w_packed: (9*C_real, 128) bf16, rows ordered (kh, kw, cin); output channels
              zero-padded to 128 for lane-dense stores.
    bias:     (128,) f32, zero-padded.
    Returns   (B, H//2, W//2, 128) bf16.
    """
    B, H, W, _ = a.shape
    cout = w_packed.shape[1]
    c_real = w_packed.shape[0] // 9
    OH, OW = H // 2, W // 2
    ap = jnp.pad(a[..., :c_real].astype(jnp.bfloat16),
                 ((0, 0), (1, 1), (1, 1), (0, 0)))
    cols = [ap[:, kh:kh + 2 * OH:2, kw:kw + 2 * OW:2, :]
            for kh in range(3) for kw in range(3)]
    planes = jnp.stack(cols, axis=3).reshape(B * OH * OW, 9 * c_real)
    out = _conv_matmul(planes, w_packed, bias)
    return out[:B * OH * OW].reshape(B, OH, OW, cout)


# ----------------------------------------------------------------------------
# Fused fc1 + policy_head + value_head (heads pre-concatenated into one matmul).
# ----------------------------------------------------------------------------
def _fc_head_kernel(x_ref, w1_ref, b1_ref, w2_ref, b2_ref, o_ref):
    h = jnp.dot(x_ref[...], w1_ref[...], preferred_element_type=jnp.float32)
    h = jnp.maximum(h + b1_ref[...], 0.0).astype(jnp.bfloat16)
    o = jnp.dot(h, w2_ref[...], preferred_element_type=jnp.float32)
    o_ref[...] = o + b2_ref[...]


def fc_heads_pallas(feat, w1, b1, w2, b2, *, block_cap=256):
    """feat: (B, 4608) bf16; w1: (4608, 128) bf16; w2: (128, A+1) bf16."""
    B, F = feat.shape
    n_hid = w1.shape[1]
    n_out = w2.shape[1]
    if B <= block_cap:
        block_b, grid = B, 1
    else:
        block_b = block_cap
        grid = pl.cdiv(B, block_b)
        pad = grid * block_b - B
        if pad:
            feat = jnp.pad(feat, ((0, pad), (0, 0)))
    out = pl.pallas_call(
        _fc_head_kernel,
        out_shape=jax.ShapeDtypeStruct((grid * block_b, n_out), jnp.float32),
        grid_spec=pltpu.PrefetchScalarGridSpec(
            num_scalar_prefetch=0,
            grid=(grid,),
            in_specs=[
                pl.BlockSpec((block_b, F), lambda i: (i, 0)),
                pl.BlockSpec((F, n_hid), lambda i: (0, 0)),
                pl.BlockSpec((1, n_hid), lambda i: (0, 0)),
                pl.BlockSpec((n_hid, n_out), lambda i: (0, 0)),
                pl.BlockSpec((1, n_out), lambda i: (0, 0)),
            ],
            out_specs=pl.BlockSpec((block_b, n_out), lambda i: (i, 0)),
        ),
        compiler_params=pltpu.CompilerParams(
            dimension_semantics=("parallel",)),
    )(feat, w1, b1.reshape(1, n_hid), w2, b2.reshape(1, n_out))
    return out[:B]


# ----------------------------------------------------------------------------
# Parameters: torch-style init (f32) + one-time packing into kernel layout.
# ----------------------------------------------------------------------------
def init_params(key, num_actions):
    ks = jax.random.split(key, 14)

    def conv_init(kw, kb, cin, cout):
        s = 1.0 / jnp.sqrt(cin * 9.0)
        w = jax.random.uniform(kw, (3, 3, cin, cout), jnp.float32, -s, s)
        b = jax.random.uniform(kb, (cout,), jnp.float32, -s, s)
        return w, b

    def fc_init(kw, kb, fin, fout):
        s = 1.0 / jnp.sqrt(1.0 * fin)
        w = jax.random.uniform(kw, (fin, fout), jnp.float32, -s, s)
        b = jax.random.uniform(kb, (fout,), jnp.float32, -s, s)
        return w, b

    return {
        "conv1": conv_init(ks[0], ks[1], 4, 32),
        "conv2": conv_init(ks[2], ks[3], 32, 64),
        "conv3": conv_init(ks[4], ks[5], 64, 128),
        "conv4": conv_init(ks[6], ks[7], 128, 128),
        "fc1": fc_init(ks[8], ks[9], 4608, 128),
        "policy_head": fc_init(ks[10], ks[11], 128, num_actions),
        "value_head": fc_init(ks[12], ks[13], 128, 1),
    }


def _pack_conv(w, b, cout_pad=128):
    """(3,3,Cin,Cout) f32 -> (9*Cin, 128) bf16 in (kh, kw, cin) row order;
    output channels (and bias) zero-padded to 128 for lane-dense stores."""
    k1, k2, cin, cout = w.shape
    wm = jnp.zeros((k1 * k2 * cin, cout_pad), w.dtype)
    wm = wm.at[:, :cout].set(w.reshape(k1 * k2 * cin, cout))
    bias = jnp.zeros((cout_pad,), jnp.float32).at[:cout].set(b)
    return wm.astype(jnp.bfloat16), bias


def prepare_params(params):
    """One-time conversion into the kernel-ready (bf16, packed) layout."""
    wp, bp = params["policy_head"]
    wv, bv = params["value_head"]
    return {
        "conv1": _pack_conv(*params["conv1"]),
        "conv2": _pack_conv(*params["conv2"]),
        "conv3": _pack_conv(*params["conv3"]),
        "conv4": _pack_conv(*params["conv4"]),
        "fc1": (params["fc1"][0].astype(jnp.bfloat16), params["fc1"][1]),
        "heads": (jnp.concatenate([wp, wv], axis=1).astype(jnp.bfloat16),
                  jnp.concatenate([bp, bv], axis=0)),
    }


# ----------------------------------------------------------------------------
# Forward pass
# ----------------------------------------------------------------------------
def _conv_stack(kparams, x_nhwc):
    x = conv_s2_pallas(x_nhwc, *kparams["conv1"])   # (B, 48, 48, 128)  32 real ch
    x = conv_s2_pallas(x, *kparams["conv2"])        # (B, 24, 24, 128)  64 real ch
    x = conv_s2_pallas(x, *kparams["conv3"])        # (B, 12, 12, 128)
    x = conv_s2_pallas(x, *kparams["conv4"])        # (B,  6,  6, 128)
    return x.reshape(x.shape[0], -1)                # (B, 4608) NHWC flatten


def cnn_policy_net_forward(kparams, x_nchw):
    """x_nchw: (B, 4, 96, 96) f32 (PyTorch layout). Returns (policy_logits, value)."""
    x = jnp.transpose(x_nchw, (0, 2, 3, 1))         # single NHWC transpose
    feat = _conv_stack(kparams, x)
    w1, b1 = kparams["fc1"]
    w2, b2 = kparams["heads"]
    out = fc_heads_pallas(feat, w1, b1, w2, b2)
    n_act = w2.shape[1] - 1
    return out[:, :n_act], out[:, n_act:]


# ----------------------------------------------------------------------------
# Pure-JAX f32 reference (identical bf16-valued weights) for correctness.
# ----------------------------------------------------------------------------
def _bf(w):
    return w.astype(jnp.bfloat16).astype(jnp.float32)


def _reference_features(params, x_nchw):
    x = jnp.transpose(x_nchw, (0, 2, 3, 1))

    def conv(a, wb):
        w, b = wb
        y = jax.lax.conv_general_dilated(
            a, _bf(w), window_strides=(2, 2), padding=((1, 1), (1, 1)),
            dimension_numbers=("NHWC", "HWIO", "NHWC"))
        return jax.nn.relu(y + b.reshape(1, 1, 1, -1))

    x = conv(x, params["conv1"])
    x = conv(x, params["conv2"])
    x = conv(x, params["conv3"])
    x = conv(x, params["conv4"])
    return x.reshape(x.shape[0], -1)


def _reference_forward(params, x_nchw):
    h = _reference_features(params, x_nchw)
    h = jax.nn.relu(h @ _bf(params["fc1"][0]) + params["fc1"][1])
    pol = h @ _bf(params["policy_head"][0]) + params["policy_head"][1]
    val = h @ _bf(params["value_head"][0]) + params["value_head"][1]
    return pol, val


if __name__ == "__main__":
    num_actions = 6
    key = jax.random.PRNGKey(0)
    kp_key, kx = jax.random.split(key)
    params = init_params(kp_key, num_actions)
    kparams = prepare_params(params)

    # fc1 expects 4608 = 128 * 6 * 6 features -> input spatial must be 96x96.
    x = jax.random.normal(kx, (2, 4, 96, 96), jnp.float32)

    policy_logits, value = jax.jit(cnn_policy_net_forward)(kparams, x)
    jax.block_until_ready((policy_logits, value))

    assert policy_logits.shape == (2, num_actions)
    assert value.shape == (2, 1)

    # Correctness: compare both the conv-stack features and the final outputs
    # against an f32 reference that uses the same bf16-valued weights.
    feat_fn = jax.jit(lambda p, xx: _conv_stack(p, jnp.transpose(xx, (0, 2, 3, 1))))
    feat_k = feat_fn(kparams, x).astype(jnp.float32)
    feat_r = jax.jit(_reference_features)(params, x)
    assert jnp.allclose(feat_k, feat_r, atol=2e-2, rtol=2e-2), (
        float(jnp.max(jnp.abs(feat_k - feat_r))))

    ref_pol, ref_val = jax.jit(_reference_forward)(params, x)
    assert jnp.allclose(policy_logits, ref_pol, atol=2e-2, rtol=2e-2), (
        float(jnp.max(jnp.abs(policy_logits - ref_pol))))
    assert jnp.allclose(value, ref_val, atol=2e-2, rtol=2e-2), (
        float(jnp.max(jnp.abs(value - ref_val))))

    print("KERNEL_OK")
</pallas_src>

<mosaic_0001>
module attributes {stable_mosaic.version = 11 : i64} {
  func.func @_conv_block_kernel(%arg0: i32, %arg1: memref<256x36xbf16, #tpu.memory_space<vmem>>, %arg2: memref<36x128xbf16, #tpu.memory_space<vmem>>, %arg3: memref<1x128xf32, #tpu.memory_space<vmem>>, %arg4: memref<256x128xbf16, #tpu.memory_space<vmem>>) attributes {dimension_semantics = [#tpu.dimension_semantics<parallel>], iteration_bounds = array<i64: 18>, scalar_prefetch = 0 : i64, scratch_operands = 0 : i64, tpu.core_type = #tpu.core_type<tc>, window_params = [{transform_indices = @transform_0, window_bounds = array<i64: 256, 36>}, {pipeline_mode = #tpu.pipeline_mode<synchronous>, transform_indices = @transform_1, window_bounds = array<i64: 36, 128>}, {pipeline_mode = #tpu.pipeline_mode<synchronous>, transform_indices = @transform_2, window_bounds = array<i64: 1, 128>}, {transform_indices = @transform_3, window_bounds = array<i64: 256, 128>}]} {
    %c0 = arith.constant 0 : index
    %c0_0 = arith.constant 0 : index
    %0 = vector.load %arg1[%c0, %c0_0] : memref<256x36xbf16, #tpu.memory_space<vmem>>, vector<256x36xbf16>
    %c0_1 = arith.constant 0 : index
    %c0_2 = arith.constant 0 : index
    %1 = vector.load %arg2[%c0_1, %c0_2] : memref<36x128xbf16, #tpu.memory_space<vmem>>, vector<36x128xbf16>
    %cst = arith.constant dense<0.000000e+00> : vector<256x128xf32>
    %2 = tpu.matmul %0, %1, %cst {dimension_numbers = #tpu.dot_dimension_numbers<[1], [0], [0], [1], [0, 0, 1, 1], [], []>} : vector<256x36xbf16>, vector<36x128xbf16>, vector<256x128xf32> -> vector<256x128xf32>
    %c0_3 = arith.constant 0 : index
    %c0_4 = arith.constant 0 : index
    %3 = vector.load %arg3[%c0_3, %c0_4] : memref<1x128xf32, #tpu.memory_space<vmem>>, vector<1x128xf32>
    %4 = vector.broadcast %3 : vector<1x128xf32> to vector<256x128xf32>
    %5 = arith.addf %2, %4 : vector<256x128xf32>
    %cst_5 = arith.constant 0.000000e+00 : f32
    %6 = vector.broadcast %cst_5 : f32 to vector<256x128xf32>
    %7 = arith.maximumf %5, %6 : vector<256x128xf32>
    %8 = arith.truncf %7 : vector<256x128xf32> to vector<256x128xbf16>
    %c0_6 = arith.constant 0 : index
    %c0_7 = arith.constant 0 : index
    %9 = vector.load %arg4[%c0_6, %c0_7] : memref<256x128xbf16, #tpu.memory_space<vmem>>, vector<256x128xbf16>
    tpu.vector_store %arg4[%c0_6, %c0_7], %8 {strides = array<i32>} : memref<256x128xbf16, #tpu.memory_space<vmem>>, vector<256x128xbf16>,
    return
  }
  func.func @transform_0(%arg0: i32) -> (i32, i32) {
    %c0_i32 = arith.constant 0 : i32
    %c0_i32_0 = arith.constant 0 : i32
    return %arg0, %c0_i32 : i32, i32
  }
  func.func @transform_1(%arg0: i32) -> (i32, i32) {
    %c0_i32 = arith.constant 0 : i32
    %c0_i32_0 = arith.constant 0 : i32
    %c0_i32_1 = arith.constant 0 : i32
    return %c0_i32, %c0_i32_0 : i32, i32
  }
  func.func @transform_2(%arg0: i32) -> (i32, i32) {
    %c0_i32 = arith.constant 0 : i32
    %c0_i32_0 = arith.constant 0 : i32
    %c0_i32_1 = arith.constant 0 : i32
    return %c0_i32, %c0_i32_0 : i32, i32
  }
  func.func @transform_3(%arg0: i32) -> (i32, i32) {
    %c0_i32 = arith.constant 0 : i32
    %c0_i32_0 = arith.constant 0 : i32
    return %arg0, %c0_i32 : i32, i32
  }
}

module attributes {stable_mosaic.version = 11 : i64} {
  func.func @_conv_block_kernel(%arg0: i32, %arg1: memref<232x288xbf16, #tpu.memory_space<vmem>>, %arg2: memref<288x128xbf16, #tpu.memory_space<vmem>>, %arg3: memref<1x128xf32, #tpu.memory_space<vmem>>, %arg4: memref<232x128xbf16, #tpu.memory_space<vmem>>) attributes {dimension_semantics = [#tpu.dimension_semantics<parallel>], iteration_bounds = array<i64: 5>, scalar_prefetch = 0 : i64, scratch_operands = 0 : i64, tpu.core_type = #tpu.core_type<tc>, window_params = [{transform_indices = @transform_0, window_bounds = array<i64: 232, 288>}, {pipeline_mode = #tpu.pipeline_mode<synchronous>, transform_indices = @transform_1, window_bounds = array<i64: 288, 128>}, {pipeline_mode = #tpu.pipeline_mode<synchronous>, transform_indices = @transform_2, window_bounds = array<i64: 1, 128>}, {transform_indices = @transform_3, window_bounds = array<i64: 232, 128>}]} {
    %c0 = arith.constant 0 : index
    %c0_0 = arith.constant 0 : index
    %0 = vector.load %arg1[%c0, %c0_0] : memref<232x288xbf16, #tpu.memory_space<vmem>>, vector<232x288xbf16>
    %c0_1 = arith.constant 0 : index
    %c0_2 = arith.constant 0 : index
    %1 = vector.load %arg2[%c0_1, %c0_2] : memref<288x128xbf16, #tpu.memory_space<vmem>>, vector<288x128xbf16>
    %cst = arith.constant dense<0.000000e+00> : vector<232x128xf32>
    %2 = tpu.matmul %0, %1, %cst {dimension_numbers = #tpu.dot_dimension_numbers<[1], [0], [0], [1], [0, 0, 1, 1], [], []>} : vector<232x288xbf16>, vector<288x128xbf16>, vector<232x128xf32> -> vector<232x128xf32>
    %c0_3 = arith.constant 0 : index
    %c0_4 = arith.constant 0 : index
    %3 = vector.load %arg3[%c0_3, %c0_4] : memref<1x128xf32, #tpu.memory_space<vmem>>, vector<1x128xf32>
    %4 = vector.broadcast %3 : vector<1x128xf32> to vector<232x128xf32>
    %5 = arith.addf %2, %4 : vector<232x128xf32>
    %cst_5 = arith.constant 0.000000e+00 : f32
    %6 = vector.broadcast %cst_5 : f32 to vector<232x128xf32>
    %7 = arith.maximumf %5, %6 : vector<232x128xf32>
    %8 = arith.truncf %7 : vector<232x128xf32> to vector<232x128xbf16>
    %c0_6 = arith.constant 0 : index
    %c0_7 = arith.constant 0 : index
    %9 = vector.load %arg4[%c0_6, %c0_7] : memref<232x128xbf16, #tpu.memory_space<vmem>>, vector<232x128xbf16>
    tpu.vector_store %arg4[%c0_6, %c0_7], %8 {strides = array<i32>} : memref<232x128xbf16, #tpu.memory_space<vmem>>, vector<232x128xbf16>,
    return
  }
  func.func @transform_0(%arg0: i32) -> (i32, i32) {
    %c0_i32 = arith.constant 0 : i32
    %c0_i32_0 = arith.constant 0 : i32
    return %arg0, %c0_i32 : i32, i32
  }
  func.func @transform_1(%arg0: i32) -> (i32, i32) {
    %c0_i32 = arith.constant 0 : i32
    %c0_i32_0 = arith.constant 0 : i32
    %c0_i32_1 = arith.constant 0 : i32
    return %c0_i32, %c0_i32_0 : i32, i32
  }
  func.func @transform_2(%arg0: i32) -> (i32, i32) {
    %c0_i32 = arith.constant 0 : i32
    %c0_i32_0 = arith.constant 0 : i32
    %c0_i32_1 = arith.constant 0 : i32
    return %c0_i32, %c0_i32_0 : i32, i32
  }
  func.func @transform_3(%arg0: i32) -> (i32, i32) {
    %c0_i32 = arith.constant 0 : i32
    %c0_i32_0 = arith.constant 0 : i32
    return %arg0, %c0_i32 : i32, i32
  }
}

module attributes {stable_mosaic.version = 11 : i64} {
  func.func @_conv_block_kernel(%arg0: i32, %arg1: memref<144x576xbf16, #tpu.memory_space<vmem>>, %arg2: memref<576x128xbf16, #tpu.memory_space<vmem>>, %arg3: memref<1x128xf32, #tpu.memory_space<vmem>>, %arg4: memref<144x128xbf16, #tpu.memory_space<vmem>>) attributes {dimension_semantics = [#tpu.dimension_semantics<parallel>], iteration_bounds = array<i64: 2>, scalar_prefetch = 0 : i64, scratch_operands = 0 : i64, tpu.core_type = #tpu.core_type<tc>, window_params = [{transform_indices = @transform_0, window_bounds = array<i64: 144, 576>}, {pipeline_mode = #tpu.pipeline_mode<synchronous>, transform_indices = @transform_1, window_bounds = array<i64: 576, 128>}, {pipeline_mode = #tpu.pipeline_mode<synchronous>, transform_indices = @transform_2, window_bounds = array<i64: 1, 128>}, {transform_indices = @transform_3, window_bounds = array<i64: 144, 128>}]} {
    %c0 = arith.constant 0 : index
    %c0_0 = arith.constant 0 : index
    %0 = vector.load %arg1[%c0, %c0_0] : memref<144x576xbf16, #tpu.memory_space<vmem>>, vector<144x576xbf16>
    %c0_1 = arith.constant 0 : index
    %c0_2 = arith.constant 0 : index
    %1 = vector.load %arg2[%c0_1, %c0_2] : memref<576x128xbf16, #tpu.memory_space<vmem>>, vector<576x128xbf16>
    %cst = arith.constant dense<0.000000e+00> : vector<144x128xf32>
    %2 = tpu.matmul %0, %1, %cst {dimension_numbers = #tpu.dot_dimension_numbers<[1], [0], [0], [1], [0, 0, 1, 1], [], []>} : vector<144x576xbf16>, vector<576x128xbf16>, vector<144x128xf32> -> vector<144x128xf32>
    %c0_3 = arith.constant 0 : index
    %c0_4 = arith.constant 0 : index
    %3 = vector.load %arg3[%c0_3, %c0_4] : memref<1x128xf32, #tpu.memory_space<vmem>>, vector<1x128xf32>
    %4 = vector.broadcast %3 : vector<1x128xf32> to vector<144x128xf32>
    %5 = arith.addf %2, %4 : vector<144x128xf32>
    %cst_5 = arith.constant 0.000000e+00 : f32
    %6 = vector.broadcast %cst_5 : f32 to vector<144x128xf32>
    %7 = arith.maximumf %5, %6 : vector<144x128xf32>
    %8 = arith.truncf %7 : vector<144x128xf32> to vector<144x128xbf16>
    %c0_6 = arith.constant 0 : index
    %c0_7 = arith.constant 0 : index
    %9 = vector.load %arg4[%c0_6, %c0_7] : memref<144x128xbf16, #tpu.memory_space<vmem>>, vector<144x128xbf16>
    tpu.vector_store %arg4[%c0_6, %c0_7], %8 {strides = array<i32>} : memref<144x128xbf16, #tpu.memory_space<vmem>>, vector<144x128xbf16>,
    return
  }
  func.func @transform_0(%arg0: i32) -> (i32, i32) {
    %c0_i32 = arith.constant 0 : i32
    %c0_i32_0 = arith.constant 0 : i32
    return %arg0, %c0_i32 : i32, i32
  }
  func.func @transform_1(%arg0: i32) -> (i32, i32) {
    %c0_i32 = arith.constant 0 : i32
    %c0_i32_0 = arith.constant 0 : i32
    %c0_i32_1 = arith.constant 0 : i32
    return %c0_i32, %c0_i32_0 : i32, i32
  }
  func.func @transform_2(%arg0: i32) -> (i32, i32) {
    %c0_i32 = arith.constant 0 : i32
    %c0_i32_0 = arith.constant 0 : i32
    %c0_i32_1 = arith.constant 0 : i32
    return %c0_i32, %c0_i32_0 : i32, i32
  }
  func.func @transform_3(%arg0: i32) -> (i32, i32) {
    %c0_i32 = arith.constant 0 : i32
    %c0_i32_0 = arith.constant 0 : i32
    return %arg0, %c0_i32 : i32, i32
  }
}

module attributes {stable_mosaic.version = 11 : i64} {
  func.func @_conv_block_kernel(%arg0: i32, %arg1: memref<72x1152xbf16, #tpu.memory_space<vmem>>, %arg2: memref<1152x128xbf16, #tpu.memory_space<vmem>>, %arg3: memref<1x128xf32, #tpu.memory_space<vmem>>, %arg4: memref<72x128xbf16, #tpu.memory_space<vmem>>) attributes {dimension_semantics = [#tpu.dimension_semantics<parallel>], iteration_bounds = array<i64: 1>, scalar_prefetch = 0 : i64, scratch_operands = 0 : i64, tpu.core_type = #tpu.core_type<tc>, window_params = [{transform_indices = @transform_0, window_bounds = array<i64: 72, 1152>}, {pipeline_mode = #tpu.pipeline_mode<synchronous>, transform_indices = @transform_1, window_bounds = array<i64: 1152, 128>}, {pipeline_mode = #tpu.pipeline_mode<synchronous>, transform_indices = @transform_2, window_bounds = array<i64: 1, 128>}, {transform_indices = @transform_3, window_bounds = array<i64: 72, 128>}]} {
    %c0 = arith.constant 0 : index
    %c0_0 = arith.constant 0 : index
    %0 = vector.load %arg1[%c0, %c0_0] : memref<72x1152xbf16, #tpu.memory_space<vmem>>, vector<72x1152xbf16>
    %c0_1 = arith.constant 0 : index
    %c0_2 = arith.constant 0 : index
    %1 = vector.load %arg2[%c0_1, %c0_2] : memref<1152x128xbf16, #tpu.memory_space<vmem>>, vector<1152x128xbf16>
    %cst = arith.constant dense<0.000000e+00> : vector<72x128xf32>
    %2 = tpu.matmul %0, %1, %cst {dimension_numbers = #tpu.dot_dimension_numbers<[1], [0], [0], [1], [0, 0, 1, 1], [], []>} : vector<72x1152xbf16>, vector<1152x128xbf16>, vector<72x128xf32> -> vector<72x128xf32>
    %c0_3 = arith.constant 0 : index
    %c0_4 = arith.constant 0 : index
    %3 = vector.load %arg3[%c0_3, %c0_4] : memref<1x128xf32, #tpu.memory_space<vmem>>, vector<1x128xf32>
    %4 = vector.broadcast %3 : vector<1x128xf32> to vector<72x128xf32>
    %5 = arith.addf %2, %4 : vector<72x128xf32>
    %cst_5 = arith.constant 0.000000e+00 : f32
    %6 = vector.broadcast %cst_5 : f32 to vector<72x128xf32>
    %7 = arith.maximumf %5, %6 : vector<72x128xf32>
    %8 = arith.truncf %7 : vector<72x128xf32> to vector<72x128xbf16>
    %c0_6 = arith.constant 0 : index
    %c0_7 = arith.constant 0 : index
    %9 = vector.load %arg4[%c0_6, %c0_7] : memref<72x128xbf16, #tpu.memory_space<vmem>>, vector<72x128xbf16>
    tpu.vector_store %arg4[%c0_6, %c0_7], %8 {strides = array<i32>} : memref<72x128xbf16, #tpu.memory_space<vmem>>, vector<72x128xbf16>,
    return
  }
  func.func @transform_0(%arg0: i32) -> (i32, i32) {
    %c0_i32 = arith.constant 0 : i32
    %c0_i32_0 = arith.constant 0 : i32
    return %arg0, %c0_i32 : i32, i32
  }
  func.func @transform_1(%arg0: i32) -> (i32, i32) {
    %c0_i32 = arith.constant 0 : i32
    %c0_i32_0 = arith.constant 0 : i32
    %c0_i32_1 = arith.constant 0 : i32
    return %c0_i32, %c0_i32_0 : i32, i32
  }
  func.func @transform_2(%arg0: i32) -> (i32, i32) {
    %c0_i32 = arith.constant 0 : i32
    %c0_i32_0 = arith.constant 0 : i32
    %c0_i32_1 = arith.constant 0 : i32
    return %c0_i32, %c0_i32_0 : i32, i32
  }
  func.func @transform_3(%arg0: i32) -> (i32, i32) {
    %c0_i32 = arith.constant 0 : i32
    %c0_i32_0 = arith.constant 0 : i32
    return %arg0, %c0_i32 : i32, i32
  }
}

module attributes {stable_mosaic.version = 11 : i64} {
  func.func @_fc_head_kernel(%arg0: i32, %arg1: memref<2x4608xbf16, #tpu.memory_space<vmem>>, %arg2: memref<4608x128xbf16, #tpu.memory_space<vmem>>, %arg3: memref<1x128xf32, #tpu.memory_space<vmem>>, %arg4: memref<128x7xbf16, #tpu.memory_space<vmem>>, %arg5: memref<1x7xf32, #tpu.memory_space<vmem>>, %arg6: memref<2x7xf32, #tpu.memory_space<vmem>>) attributes {dimension_semantics = [#tpu.dimension_semantics<parallel>], iteration_bounds = array<i64: 1>, scalar_prefetch = 0 : i64, scratch_operands = 0 : i64, tpu.core_type = #tpu.core_type<tc>, window_params = [{transform_indices = @transform_0, window_bounds = array<i64: 2, 4608>}, {pipeline_mode = #tpu.pipeline_mode<synchronous>, transform_indices = @transform_1, window_bounds = array<i64: 4608, 128>}, {pipeline_mode = #tpu.pipeline_mode<synchronous>, transform_indices = @transform_2, window_bounds = array<i64: 1, 128>}, {pipeline_mode = #tpu.pipeline_mode<synchronous>, transform_indices = @transform_3, window_bounds = array<i64: 128, 7>}, {pipeline_mode = #tpu.pipeline_mode<synchronous>, transform_indices = @transform_4, window_bounds = array<i64: 1, 7>}, {transform_indices = @transform_5, window_bounds = array<i64: 2, 7>}]} {
    %c0 = arith.constant 0 : index
    %c0_0 = arith.constant 0 : index
    %0 = vector.load %arg1[%c0, %c0_0] : memref<2x4608xbf16, #tpu.memory_space<vmem>>, vector<2x4608xbf16>
    %c0_1 = arith.constant 0 : index
    %c0_2 = arith.constant 0 : index
    %1 = vector.load %arg2[%c0_1, %c0_2] : memref<4608x128xbf16, #tpu.memory_space<vmem>>, vector<4608x128xbf16>
    %cst = arith.constant dense<0.000000e+00> : vector<2x128xf32>
    %2 = tpu.matmul %0, %1, %cst {dimension_numbers = #tpu.dot_dimension_numbers<[1], [0], [0], [1], [0, 0, 1, 1], [], []>} : vector<2x4608xbf16>, vector<4608x128xbf16>, vector<2x128xf32> -> vector<2x128xf32>
    %c0_3 = arith.constant 0 : index
    %c0_4 = arith.constant 0 : index
    %3 = vector.load %arg3[%c0_3, %c0_4] : memref<1x128xf32, #tpu.memory_space<vmem>>, vector<1x128xf32>
    %4 = vector.broadcast %3 : vector<1x128xf32> to vector<2x128xf32>
    %5 = arith.addf %2, %4 : vector<2x128xf32>
    %cst_5 = arith.constant 0.000000e+00 : f32
    %6 = vector.broadcast %cst_5 : f32 to vector<2x128xf32>
    %7 = arith.maximumf %5, %6 : vector<2x128xf32>
    %8 = arith.truncf %7 : vector<2x128xf32> to vector<2x128xbf16>
    %c0_6 = arith.constant 0 : index
    %c0_7 = arith.constant 0 : index
    %9 = vector.load %arg4[%c0_6, %c0_7] : memref<128x7xbf16, #tpu.memory_space<vmem>>, vector<128x7xbf16>
    %cst_8 = arith.constant dense<0.000000e+00> : vector<2x7xf32>
    %10 = tpu.matmul %8, %9, %cst_8 {dimension_numbers = #tpu.dot_dimension_numbers<[1], [0], [0], [1], [0, 0, 1, 1], [], []>} : vector<2x128xbf16>, vector<128x7xbf16>, vector<2x7xf32> -> vector<2x7xf32>
    %c0_9 = arith.constant 0 : index
    %c0_10 = arith.constant 0 : index
    %11 = vector.load %arg5[%c0_9, %c0_10] : memref<1x7xf32, #tpu.memory_space<vmem>>, vector<1x7xf32>
    %12 = vector.broadcast %11 : vector<1x7xf32> to vector<2x7xf32>
    %13 = arith.addf %10, %12 : vector<2x7xf32>
    %c0_11 = arith.constant 0 : index
    %c0_12 = arith.constant 0 : index
    %14 = vector.load %arg6[%c0_11, %c0_12] : memref<2x7xf32, #tpu.memory_space<vmem>>, vector<2x7xf32>
    tpu.vector_store %arg6[%c0_11, %c0_12], %13 {strides = array<i32>} : memref<2x7xf32, #tpu.memory_space<vmem>>, vector<2x7xf32>,
    return
  }
  func.func @transform_0(%arg0: i32) -> (i32, i32) {
    %c0_i32 = arith.constant 0 : i32
    %c0_i32_0 = arith.constant 0 : i32
    return %arg0, %c0_i32 : i32, i32
  }
  func.func @transform_1(%arg0: i32) -> (i32, i32) {
    %c0_i32 = arith.constant 0 : i32
    %c0_i32_0 = arith.constant 0 : i32
    %c0_i32_1 = arith.constant 0 : i32
    return %c0_i32, %c0_i32_0 : i32, i32
  }
  func.func @transform_2(%arg0: i32) -> (i32, i32) {
    %c0_i32 = arith.constant 0 : i32
    %c0_i32_0 = arith.constant 0 : i32
    %c0_i32_1 = arith.constant 0 : i32
    return %c0_i32, %c0_i32_0 : i32, i32
  }
  func.func @transform_3(%arg0: i32) -> (i32, i32) {
    %c0_i32 = arith.constant 0 : i32
    %c0_i32_0 = arith.constant 0 : i32
    %c0_i32_1 = arith.constant 0 : i32
    return %c0_i32, %c0_i32_0 : i32, i32
  }
  func.func @transform_4(%arg0: i32) -> (i32, i32) {
    %c0_i32 = arith.constant 0 : i32
    %c0_i32_0 = arith.constant 0 : i32
    %c0_i32_1 = arith.constant 0 : i32
    return %c0_i32, %c0_i32_0 : i32, i32
  }
  func.func @transform_5(%arg0: i32) -> (i32, i32) {
    %c0_i32 = arith.constant 0 : i32
    %c0_i32_0 = arith.constant 0 : i32
    return %arg0, %c0_i32 : i32, i32
  }
}

</mosaic_0001>

<bundles_post_ra>
// kernel: cnn_policy_net_forward.5
= control target key start
LH: loop header
LB: loop body
LE: loop exit
PB: predicated region body
PF: predicated region fallthrough
CT: control target
= control target key end

     0   :  { %s1102_s12 = smov 0   ;;  %s1224_s0 = inlined_call_operand.vmem [shape: bf16[4608,36], index: 0, kind: input, shape index: {}]   ;;  %s1225_s1 = inlined_call_operand.vmem [shape: bf16[36,128], index: 1, kind: input, shape index: {}]   ;;  %s1226_s2 = inlined_call_operand.vmem [shape: f32[1,128], index: 2, kind: input, shape index: {}]   ;;  %s1227_s3 = inlined_call_operand.vmem [shape: bf16[4608,128], index: 3, kind: output, shape index: {}]  }
   0x1 LB: > { %s776_s13 = sadd.s32 4294967295, %s1080_s12   ;;  %p780_p0 = scmp.ge.s32.totalorder %s1080_s12, 1  ;;  %s1080_s12 = sphi %s1102_s12, %s13_s12  }
   0x2   : > { %p138_p1 = scmp.lt.s32.totalorder %s1080_s12, 19 }
   0x4   : > { %p139_p2 = pnand %p780_p0, %p138_p1 }
   0x5   : > { %s781_s18 = sshll.u32 (!%p139_p2), %s776_s13, 5 }
   0x6   : > { %142 = sbr.rel (%p139_p2) target bundleno = 254 (0xfe), region = 32  ;;  %p163_p3 = scmp.lt.s32.totalorder (!%p139_p2), %s781_s18, 575 }
   0xb   : > { %v1055_v0 = vld [vmem:[%s1225_s1 + $0x10] ss:$0 sps:$4 sm:$0x33]   ;;  %vm363_vm0 = vcmask 1041408   ;;  %v1056_v1 = vld [vmem:[%s1225_s1 + $0x8] sm:$0xff]   ;;  %v1057_v3 = vld [vmem:[%s1225_s1] sm:$0xff]  }
   0xc   : > { %1045 = vmatprep.subr.msk.bf16.mxu0 %vm363_vm0, %v1055_v0  ;;  %1046 = vmatprep.subr.msk.bf16.mxu1 %vm363_vm0, %v1055_v0  ;;  %v365_v2 = vsel %vm363_vm0, %v1055_v0, 0  ;;  %s1229_s18 = smov (!%p163_p3, %s781_s18), 575  ;;  %vm314_vm1 = vcmask 293888   ;;  %v1164_v20 = vld [vmem:[%s1226_s2] ss:$0 sm:$0xff] }
   0xd   : > { %1002 = vmatpush3.bf16.msra.mxu0 %v365_v2  ;;  %1042 = vmatpush3.bf16.msra.mxu1 %v365_v2  ;;  %s782_s21 = sshll.u32 %s1229_s18, 2 }
   0xe   : > { %1003 = vmatprep.subr.bf16.mxu0 %v1056_v1  ;;  %1040 = vmatprep.subr.bf16.mxu1 %v1056_v1  ;;  %s1127_s24 = scalar_lea.vmem %s1224_s0, %s782_s21  ;;  %s1179_s29 = scalar_lea.vmem %s1227_s3, %s782_s21 }
   0xf   : > { %v1058_v4 = vld [vmem:[%s1127_s24] sm:$0xff]   ;;  %v1060_v6 = vld [vmem:[%s1127_s24 + $0x8] sm:$0xff]   ;;  %v1062_v8 = vld [vmem:[%s1127_s24 + $0x10] sm:$0xff]  }
  0x10   : > { %v1059_v5 = vld [vmem:[%s1127_s24 + $0x40] sm:$0xff]   ;;  %1007 = vmatprep.mubr.msk.bf16.mxu0 %vm314_vm1, %v1058_v4  ;;  %v1061_v7 = vld [vmem:[%s1127_s24 + $0x48] sm:$0xff]   ;;  %v1063_v9 = vld [vmem:[%s1127_s24 + $0x50] sm:$0xff]  }
  0x11   : > { %1004 = vmatpush3.bf16.msra.mxu0 %v1056_v1  ;;  %1043 = vmatpush3.bf16.msra.mxu1 %v1056_v1  ;;  %v1064_v10 = vld [vmem:[%s1127_s24 + $0x18] sm:$0xff]   ;;  %v1066_v12 = vld [vmem:[%s1127_s24 + $0x20] sm:$0xff]   ;;  %v1068_v14 = vld [vmem:[%s1127_s24 + $0x28] sm:$0xff]  }
  0x12   : > { %1005 = vmatprep.subr.bf16.mxu0 %v1057_v3  ;;  %1041 = vmatprep.subr.bf16.mxu1 %v1057_v3  ;;  %v1065_v11 = vld [vmem:[%s1127_s24 + $0x58] sm:$0xff]   ;;  %v1067_v13 = vld [vmem:[%s1127_s24 + $0x60] sm:$0xff]   ;;  %v1069_v15 = vld [vmem:[%s1127_s24 + $0x68] sm:$0xff]  }
  0x13   : > { %1023 = vmatprep.mubr.msk.bf16.mxu1 %vm314_vm1, %v1059_v5  ;;  %v1070_v16 = vld [vmem:[%s1127_s24 + $0x30] sm:$0xff]   ;;  %v1072_v18 = vld [vmem:[%s1127_s24 + $0x38] sm:$0xff]  }
  0x14   : > { %v1071_v17 = vld [vmem:[%s1127_s24 + $0x70] sm:$0xff]   ;;  %v1073_v19 = vld [vmem:[%s1127_s24 + $0x78] sm:$0xff]  }
  0x15   : > { %1006 = vmatpush3.bf16.msra.mxu0 %v1057_v3  ;;  %1044 = vmatpush3.bf16.msra.mxu1 %v1057_v3 }
  0x18   : > { %1008 = vmatmul.mubr.msk.bf16.vlgmr.msra.gmra.mxu0 %vm314_vm1, %v1060_v6  ;;  %1024 = vmatmul.mubr.msk.bf16.vlgmr.msra.gmra.mxu1 %vm314_vm1, %v1061_v7 }
  0x19   : > { %1011 = vmatprep.mubr.msk.bf16.mxu0 %vm314_vm1, %v1062_v8  ;;  %1027 = vmatprep.mubr.msk.bf16.mxu1 %vm314_vm1, %v1063_v9 }
  0x20   : > { %1012 = vmatmul.mubr.msk.bf16.gmra.mxu0 %vm314_vm1, %v1064_v10  ;;  %1028 = vmatmul.mubr.msk.bf16.gmra.mxu1 %vm314_vm1, %v1065_v11 }
  0x21   : > { %1015 = vmatprep.mubr.msk.bf16.mxu0 %vm314_vm1, %v1066_v12  ;;  %1031 = vmatprep.mubr.msk.bf16.mxu1 %vm314_vm1, %v1067_v13 }
  0x28   : > { %1016 = vmatmul.mubr.msk.bf16.gmra.mxu0 %vm314_vm1, %v1068_v14  ;;  %1032 = vmatmul.mubr.msk.bf16.gmra.mxu1 %vm314_vm1, %v1069_v15 }
  0x29   : > { %1019 = vmatprep.mubr.msk.bf16.mxu0 %vm314_vm1, %v1070_v16  ;;  %1035 = vmatprep.mubr.msk.bf16.mxu1 %vm314_vm1, %v1071_v17 }
  0x30   : > { %1020 = vmatmul.mubr.msk.bf16.gmra.mxu0 %vm314_vm1, %v1072_v18  ;;  %1036 = vmatmul.mubr.msk.bf16.gmra.mxu1 %vm314_vm1, %v1073_v19 }
  0xd8   : > { %v1009_v21 = vpop.f32.mrf.mxu0  ;;  %v1025_v22 = vpop.f32.mrf.mxu1 }
  0xd9   : > { %v410_v23 = vadd.f32 %v1009_v21, %v1164_v20  ;;  %v474_v24 = vadd.f32 %v1025_v22, %v1164_v20 }
  0xda   : > { %v401_v25 = vpop.f32.mrf.mxu0  ;;  %v465_v26 = vpop.f32.mrf.mxu1 }
  0xdb   : > { %v402_v27 = vadd.f32 %v1164_v20, %v401_v25  ;;  %v466_v28 = vadd.f32 %v1164_v20, %v465_v26  ;;  %v530_v33 = vmax.f32 %v410_v23, 0.0  ;;  %v546_v34 = vmax.f32 %v474_v24, 0.0 }
  0xdc   : > { %v1010_v29 = vpop.f32.mrf.mxu0  ;;  %v1026_v30 = vpop.f32.mrf.mxu1 }
  0xdd   : > { %v413_v31 = vadd.f32 %v1010_v29, %v1164_v20  ;;  %v477_v32 = vadd.f32 %v1026_v30, %v1164_v20  ;;  %v528_v41 = vmax.f32 %v402_v27, 0.0  ;;  %v544_v42 = vmax.f32 %v466_v28, 0.0 }
  0xde   : > { %v404_v35 = vpop.f32.mrf.mxu0  ;;  %v468_v36 = vpop.f32.mrf.mxu1 }
  0xdf   : > { %v531_v37 = vmax.f32 %v413_v31, 0.0  ;;  %v547_v38 = vmax.f32 %v477_v32, 0.0  ;;  %v405_v39 = vadd.f32 %v1164_v20, %v404_v35  ;;  %v469_v40 = vadd.f32 %v1164_v20, %v468_v36 }
  0xe0   : > { %v1013_v43 = vpop.f32.mrf.mxu0  ;;  %v1029_v44 = vpop.f32.mrf.mxu1 }
  0xe1   : > { %v895_v45 = vpack.c.bf16 %v531_v37, %v530_v33  ;;  %v935_v46 = vpack.c.bf16 %v547_v38, %v546_v34  ;;  %v529_v47 = vmax.f32 %v405_v39, 0.0  ;;  %v545_v48 = vmax.f32 %v469_v40, 0.0 }
  0xe2   : > { %v426_v49 = vadd.f32 %v1013_v43, %v1164_v20  ;;  %v490_v50 = vadd.f32 %v1029_v44, %v1164_v20  ;;  %v417_v51 = vpop.f32.mrf.mxu0  ;;  %v481_v52 = vpop.f32.mrf.mxu1 }
  0xe3   : > { %967 = vst [vmem:[%s1179_s29 + $0x8] sm:$0xff] %v895_v45   ;;  %975 = vst [vmem:[%s1179_s29 + $0x48] sm:$0xff] %v935_v46   ;;  %v890_v53 = vpack.c.bf16 %v529_v47, %v528_v41  ;;  %v930_v54 = vpack.c.bf16 %v545_v48, %v544_v42  ;;  %v418_v55 = vadd.f32 %v1164_v20, %v417_v51 }
  0xe4   : > { %v482_v56 = vadd.f32 %v1164_v20, %v481_v52  ;;  %v1014_v57 = vpop.f32.mrf.mxu0  ;;  %v1030_v58 = vpop.f32.mrf.mxu1  ;;  %v534_v61 = vmax.f32 %v426_v49, 0.0  ;;  %v550_v62 = vmax.f32 %v490_v50, 0.0 }
  0xe5   : > { %891 = vst [vmem:[%s1179_s29] sm:$0xff] %v890_v53   ;;  %974 = vst [vmem:[%s1179_s29 + $0x40] sm:$0xff] %v930_v54   ;;  %v429_v59 = vadd.f32 %v1014_v57, %v1164_v20  ;;  %v493_v60 = vadd.f32 %v1030_v58, %v1164_v20  ;;  %v532_v5 = vmax.f32 %v418_v55, 0.0 }
  0xe6   : > { %v420_v63 = vpop.f32.mrf.mxu0  ;;  %v484_v0 = vpop.f32.mrf.mxu1  ;;  %v548_v6 = vmax.f32 %v482_v56, 0.0 }
  0xe7   : > { %v535_v1 = vmax.f32 %v429_v59, 0.0  ;;  %v551_v2 = vmax.f32 %v493_v60, 0.0  ;;  %v421_v3 = vadd.f32 %v1164_v20, %v420_v63  ;;  %v485_v4 = vadd.f32 %v1164_v20, %v484_v0 }
  0xe8   : > { %v1017_v7 = vpop.f32.mrf.mxu0  ;;  %v1033_v8 = vpop.f32.mrf.mxu1 }
  0xe9   : > { %v905_v9 = vpack.c.bf16 %v535_v1, %v534_v61  ;;  %v945_v10 = vpack.c.bf16 %v551_v2, %v550_v62  ;;  %v533_v11 = vmax.f32 %v421_v3, 0.0  ;;  %v549_v12 = vmax.f32 %v485_v4, 0.0 }
  0xea   : > { %v442_v13 = vadd.f32 %v1017_v7, %v1164_v20  ;;  %v506_v14 = vadd.f32 %v1033_v8, %v1164_v20  ;;  %v433_v15 = vpop.f32.mrf.mxu0  ;;  %v497_v16 = vpop.f32.mrf.mxu1 }
  0xeb   : > { %969 = vst [vmem:[%s1179_s29 + $0x18] sm:$0xff] %v905_v9   ;;  %977 = vst [vmem:[%s1179_s29 + $0x58] sm:$0xff] %v945_v10   ;;  %v900_v17 = vpack.c.bf16 %v533_v11, %v532_v5  ;;  %v940_v18 = vpack.c.bf16 %v549_v12, %v548_v6  ;;  %v434_v19 = vadd.f32 %v1164_v20, %v433_v15 }
  0xec   : > { %v498_v21 = vadd.f32 %v1164_v20, %v497_v16  ;;  %v1018_v22 = vpop.f32.mrf.mxu0  ;;  %v1034_v23 = vpop.f32.mrf.mxu1  ;;  %v538_v26 = vmax.f32 %v442_v13, 0.0  ;;  %v554_v27 = vmax.f32 %v506_v14, 0.0 }
  0xed   : > { %968 = vst [vmem:[%s1179_s29 + $0x10] sm:$0xff] %v900_v17   ;;  %976 = vst [vmem:[%s1179_s29 + $0x50] sm:$0xff] %v940_v18   ;;  %v445_v24 = vadd.f32 %v1018_v22, %v1164_v20  ;;  %v509_v25 = vadd.f32 %v1034_v23, %v1164_v20  ;;  %v536_v34 = vmax.f32 %v434_v19, 0.0 }
  0xee   : > { %v436_v28 = vpop.f32.mrf.mxu0  ;;  %v500_v29 = vpop.f32.mrf.mxu1  ;;  %v552_v35 = vmax.f32 %v498_v21, 0.0 }
  0xef   : > { %v539_v30 = vmax.f32 %v445_v24, 0.0  ;;  %v555_v31 = vmax.f32 %v509_v25, 0.0  ;;  %v437_v32 = vadd.f32 %v1164_v20, %v436_v28  ;;  %v501_v33 = vadd.f32 %v1164_v20, %v500_v29 }
  0xf0   : > { %v1021_v36 = vpop.f32.mrf.mxu0  ;;  %v1037_v37 = vpop.f32.mrf.mxu1 }
  0xf1   : > { %v915_v38 = vpack.c.bf16 %v539_v30, %v538_v26  ;;  %v955_v39 = vpack.c.bf16 %v555_v31, %v554_v27  ;;  %v537_v40 = vmax.f32 %v437_v32, 0.0  ;;  %v553_v41 = vmax.f32 %v501_v33, 0.0 }
  0xf2   : > { %v458_v42 = vadd.f32 %v1021_v36, %v1164_v20  ;;  %v522_v43 = vadd.f32 %v1037_v37, %v1164_v20  ;;  %v449_v44 = vpop.f32.mrf.mxu0  ;;  %v513_v45 = vpop.f32.mrf.mxu1 }
  0xf3   : > { %971 = vst [vmem:[%s1179_s29 + $0x28] sm:$0xff] %v915_v38   ;;  %979 = vst [vmem:[%s1179_s29 + $0x68] sm:$0xff] %v955_v39   ;;  %v910_v46 = vpack.c.bf16 %v537_v40, %v536_v34  ;;  %v950_v47 = vpack.c.bf16 %v553_v41, %v552_v35  ;;  %v450_v48 = vadd.f32 %v1164_v20, %v449_v44 }
  0xf4   : > { %v514_v49 = vadd.f32 %v1164_v20, %v513_v45  ;;  %v1022_v50 = vpop.f32.mrf.mxu0  ;;  %v1038_v51 = vpop.f32.mrf.mxu1  ;;  %v542_v54 = vmax.f32 %v458_v42, 0.0  ;;  %v558_v55 = vmax.f32 %v522_v43, 0.0 }
  0xf5   : > { %970 = vst [vmem:[%s1179_s29 + $0x20] sm:$0xff] %v910_v46   ;;  %978 = vst [vmem:[%s1179_s29 + $0x60] sm:$0xff] %v950_v47   ;;  %v461_v52 = vadd.f32 %v1022_v50, %v1164_v20  ;;  %v525_v53 = vadd.f32 %v1038_v51, %v1164_v20  ;;  %v540_v62 = vmax.f32 %v450_v48, 0.0 }
  0xf6   : > { %v452_v56 = vpop.f32.mrf.mxu0  ;;  %v516_v57 = vpop.f32.mrf.mxu1  ;;  %v556_v63 = vmax.f32 %v514_v49, 0.0 }
  0xf7   : > { %v543_v58 = vmax.f32 %v461_v52, 0.0  ;;  %v559_v59 = vmax.f32 %v525_v53, 0.0  ;;  %v453_v60 = vadd.f32 %v1164_v20, %v452_v56  ;;  %v517_v61 = vadd.f32 %v1164_v20, %v516_v57 }
  0xf9   : > { %v925_v0 = vpack.c.bf16 %v543_v58, %v542_v54  ;;  %v965_v1 = vpack.c.bf16 %v559_v59, %v558_v55  ;;  %v541_v2 = vmax.f32 %v453_v60, 0.0  ;;  %v557_v3 = vmax.f32 %v517_v61, 0.0 }
  0xfb   : > { %973 = vst [vmem:[%s1179_s29 + $0x38] sm:$0xff] %v925_v0   ;;  %981 = vst [vmem:[%s1179_s29 + $0x78] sm:$0xff] %v965_v1   ;;  %v920_v4 = vpack.c.bf16 %v541_v2, %v540_v62  ;;  %v960_v5 = vpack.c.bf16 %v557_v3, %v556_v63 }
  0xfd   : > { %972 = vst [vmem:[%s1179_s29 + $0x30] sm:$0xff] %v920_v4   ;;  %980 = vst [vmem:[%s1179_s29 + $0x70] sm:$0xff] %v960_v5  }
  0xfe PF: > { %s13_s12 = sadd.s32 1, %s1080_s12  }
  0xff   : > { %p10_p4 = scmp.ge.s32.totalorder %s13_s12, 20  }
 0x101   :  { %12 = sbr.rel (!%p10_p4) target bundleno = 1 (0x1), region = 62 }

// kernel: cnn_policy_net_forward.6
= control target key start
LH: loop header
LB: loop body
LE: loop exit
PB: predicated region body
PF: predicated region fallthrough
CT: control target
= control target key end

     0   :  { %s1722_s12 = smov 0   ;;  %s1941_s0 = inlined_call_operand.vmem [shape: bf16[1160,288], index: 0, kind: input, shape index: {}]   ;;  %s1942_s1 = inlined_call_operand.vmem [shape: bf16[288,128], index: 1, kind: input, shape index: {}]   ;;  %s1943_s2 = inlined_call_operand.vmem [shape: f32[1,128], index: 2, kind: input, shape index: {}]   ;;  %s1944_s3 = inlined_call_operand.vmem [shape: bf16[1160,128], index: 3, kind: output, shape index: {}]  }
   0x1 LB: > { %s1188_s13 = sadd.s32 4294967295, %s1698_s12   ;;  %p1192_p0 = scmp.ge.s32.totalorder %s1698_s12, 1  ;;  %s1698_s12 = sphi %s1722_s12, %s13_s12  }
   0x2   : > { %p139_p1 = scmp.lt.s32.totalorder %s1698_s12, 6 }
   0x4   : > { %p140_p2 = pnand %p1192_p0, %p139_p1 }
   0x5   : > { %s164_s18 = smul.u32 (!%p140_p2), 29, %s1188_s13 }
   0x6   : > { %143 = sbr.rel (%p140_p2) target bundleno = 362 (0x16a), region = 32 }
   0x7   : > { %p165_p3 = scmp.lt.s32.totalorder (!%p140_p2), %s164_s18, 144 }
   0xb   : > { %v1615_v0 = vld [vmem:[%s1942_s1 + $0x78] sm:$0xff]   ;;  %v1700_v2 = vmov 0.0   ;;  %v1617_v3 = vld [vmem:[%s1942_s1 + $0x70] sm:$0xff]   ;;  %vm1701_vm0 = vmmov 0   ;;  %v1619_v5 = vld [vmem:[%s1942_s1 + $0x68] sm:$0xff]   ;;  %s1946_s18 = smov (!%p165_p3, %s164_s18), 144 }
   0xc   : > { %v1616_v1 = vld [vmem:[%s1942_s1 + $0x38] sm:$0xff]   ;;  %1540 = vmatprep.subr.bf16.mxu1 %v1700_v2  ;;  %1417 = vmatprep.subr.bf16.mxu0 %v1615_v0  ;;  %v1618_v4 = vld [vmem:[%s1942_s1 + $0x30] sm:$0xff]   ;;  %v1620_v6 = vld [vmem:[%s1942_s1 + $0x28] sm:$0xff]   ;;  %s1604_s6 = smul.u32 12, %s1946_s18  ;;  %vm607_vm1 = vcmask 261120   ;;  %s1194_s5 = sshll.u32 %s1946_s18, 2 }
   0xd   : > { %1418 = vmatpush3.bf16.msra.mxu0 %v1616_v1  ;;  %1544 = vmatprep.mubr.msk.bf16.mxu1 %vm1701_vm0, %v1700_v2  ;;  %v1621_v7 = vld [vmem:[%s1942_s1 + $0x60] sm:$0xff]   ;;  %v1623_v9 = vld [vmem:[%s1942_s1 + $0x58] sm:$0xff]   ;;  %v1629_v10 = vld [vmem:[%s1942_s1 + $0x88] sm:$0xff]   ;;  %s1895_s8 = scalar_lea.vmem %s1944_s3, %s1194_s5 }
   0xe   : > { %1419 = vmatprep.subr.bf16.mxu0 %v1617_v3  ;;  %v1622_v8 = vld [vmem:[%s1942_s1 + $0x20] sm:$0xff]   ;;  %v1624_v11 = vld [vmem:[%s1942_s1 + $0x18] sm:$0xff]   ;;  %v1625_v12 = vld [vmem:[%s1942_s1 + $0x50] sm:$0xff]   ;;  %1541 = vmatpush3.bf16.msra.mxu1 %v1629_v10  ;;  %s1775_s16 = scalar_lea.vmem %s1941_s0, %s1604_s6 }
   0xf   : > { %v1626_v13 = vld [vmem:[%s1942_s1 + $0x10] sm:$0xff]   ;;  %1542 = vmatprep.subr.bf16.mxu1 %v1700_v2  ;;  %v1632_v14 = vld [vmem:[%s1942_s1 + $0x80] sm:$0xff]   ;;  %v1627_v15 = vld [vmem:[%s1942_s1 + $0x48] sm:$0xff]  }
  0x10   : > { %v1635_v16 = vld [vmem:[%s1775_s16 + $0x4] ss:$12 sps:$4 sm:$0xff]   ;;  %v1636_v17 = vld [vmem:[%s1775_s16 + $0x8] ss:$12 sps:$4 sm:$0xff]   ;;  %v1640_v21 = vld [vmem:[%s1775_s16 + $0x20] ss:$12 sps:$4 sm:$0xff]  }
  0x11   : > { %1420 = vmatpush3.bf16.msra.mxu0 %v1618_v4  ;;  %685 = vmatprep.mubr.bf16.mxu0 %v1635_v16  ;;  %v1628_v18 = vld [vmem:[%s1942_s1 + $0x8] sm:$0xff]   ;;  %v1630_v19 = vld [vmem:[%s1942_s1 + $0x40] sm:$0xff]   ;;  %v1648_v27 = vld [vmem:[%s1775_s16 + $0x50] ss:$12 sps:$4 sm:$0xff]  }
  0x12   : > { %1421 = vmatprep.subr.bf16.mxu0 %v1619_v5  ;;  %1543 = vmatpush3.bf16.msra.mxu1 %v1632_v14  ;;  %v1631_v20 = vld [vmem:[%s1942_s1] sm:$0xff]   ;;  %v1637_v23 = vld [vmem:[%s1775_s16 + $0x1c] ss:$12 sps:$4 sm:$0xff]   ;;  %v1645_v29 = vld [vmem:[%s1775_s16 + $0x4c] ss:$12 sps:$4 sm:$0xff]  }
  0x13   : > { %v1633_v22 = vld [vmem:[%s1775_s16] ss:$12 sps:$4 sm:$0xff]   ;;  %v1644_v24 = vld [vmem:[%s1775_s16 + $0x38] ss:$12 sps:$4 sm:$0xff]   ;;  %v1643_v28 = vld [vmem:[%s1775_s16 + $0x30] ss:$12 sps:$4 sm:$0xff]  }
  0x14   : > { %v1639_v25 = vld [vmem:[%s1775_s16 + $0x18] ss:$12 sps:$4 sm:$0xff]   ;;  %v1641_v26 = vld [vmem:[%s1775_s16 + $0x34] ss:$12 sps:$4 sm:$0xff]   ;;  %v1653_v35 = vld [vmem:[%s1775_s16 + $0x7c] ss:$12 sps:$4 sm:$0xff]  }
  0x15   : > { %1422 = vmatpush3.bf16.msra.mxu0 %v1620_v6  ;;  %1545 = vmatmul.mubr.msk.bf16.vlgmr.msra.gmra.mxu1 %vm607_vm1, %v1636_v17  ;;  %v1652_v30 = vld [vmem:[%s1775_s16 + $0x68] ss:$12 sps:$4 sm:$0xff]   ;;  %v1649_v32 = vld [vmem:[%s1775_s16 + $0x64] ss:$12 sps:$4 sm:$0xff]   ;;  %v1656_v33 = vld [vmem:[%s1775_s16 + $0x80] ss:$12 sps:$4 sm:$0xff]  }
  0x16   : > { %1423 = vmatprep.subr.bf16.mxu0 %v1621_v7  ;;  %1548 = vmatprep.mubr.msk.bf16.mxu1 %vm1701_vm0, %v1700_v2  ;;  %v1647_v31 = vld [vmem:[%s1775_s16 + $0x48] ss:$12 sps:$4 sm:$0xff]   ;;  %v1651_v34 = vld [vmem:[%s1775_s16 + $0x60] ss:$12 sps:$4 sm:$0xff]   ;;  %v1660_v36 = vld [vmem:[%s1775_s16 + $0x98] ss:$12 sps:$4 sm:$0xff]  }
  0x17   : > { %v1655_v37 = vld [vmem:[%s1775_s16 + $0x78] ss:$12 sps:$4 sm:$0xff]   ;;  %v1657_v38 = vld [vmem:[%s1775_s16 + $0x94] ss:$12 sps:$4 sm:$0xff]   ;;  %v1664_v39 = vld [vmem:[%s1775_s16 + $0xb0] ss:$12 sps:$4 sm:$0xff]  }
  0x18   : > { %v1659_v40 = vld [vmem:[%s1775_s16 + $0x90] ss:$12 sps:$4 sm:$0xff]   ;;  %v1661_v41 = vld [vmem:[%s1775_s16 + $0xac] ss:$12 sps:$4 sm:$0xff]   ;;  %v1668_v42 = vld [vmem:[%s1775_s16 + $0xc8] ss:$12 sps:$4 sm:$0xff]  }
  0x19   : > { %1424 = vmatpush3.bf16.msra.mxu0 %v1622_v8  ;;  %v1663_v43 = vld [vmem:[%s1775_s16 + $0xa8] ss:$12 sps:$4 sm:$0xff]   ;;  %v1665_v44 = vld [vmem:[%s1775_s16 + $0xc4] ss:$12 sps:$4 sm:$0xff]   ;;  %v1672_v45 = vld [vmem:[%s1775_s16 + $0xe0] ss:$12 sps:$4 sm:$0xff]  }
  0x1a   : > { %1425 = vmatprep.subr.bf16.mxu0 %v1623_v9  ;;  %v1667_v46 = vld [vmem:[%s1775_s16 + $0xc0] ss:$12 sps:$4 sm:$0xff]   ;;  %v1669_v47 = vld [vmem:[%s1775_s16 + $0xdc] ss:$12 sps:$4 sm:$0xff]   ;;  %v1676_v48 = vld [vmem:[%s1775_s16 + $0xf8] ss:$12 sps:$4 sm:$0xff]  }
  0x1b   : > { %v1671_v49 = vld [vmem:[%s1775_s16 + $0xd8] ss:$12 sps:$4 sm:$0xff]   ;;  %v1673_v50 = vld [vmem:[%s1775_s16 + $0xf4] ss:$12 sps:$4 sm:$0xff]   ;;  %v1680_v51 = vld [vmem:[%s1775_s16 + $0x110] ss:$12 sps:$4 sm:$0xff]  }
  0x1c   : > { %v1675_v52 = vld [vmem:[%s1775_s16 + $0xf0] ss:$12 sps:$4 sm:$0xff]   ;;  %v1677_v53 = vld [vmem:[%s1775_s16 + $0x10c] ss:$12 sps:$4 sm:$0xff]   ;;  %v1684_v54 = vld [vmem:[%s1775_s16 + $0x128] ss:$12 sps:$4 sm:$0xff]  }
  0x1d   : > { %1426 = vmatpush3.bf16.msra.mxu0 %v1624_v11  ;;  %1549 = vmatmul.mubr.msk.bf16.gmra.mxu1 %vm607_vm1, %v1640_v21  ;;  %v1679_v55 = vld [vmem:[%s1775_s16 + $0x108] ss:$12 sps:$4 sm:$0xff]   ;;  %v1681_v56 = vld [vmem:[%s1775_s16 + $0x124] ss:$12 sps:$4 sm:$0xff]   ;;  %v1688_v57 = vld [vmem:[%s1775_s16 + $0x140] ss:$12 sps:$4 sm:$0xff]  }
  0x1e   : > { %1427 = vmatprep.subr.bf16.mxu0 %v1625_v12  ;;  %1552 = vmatprep.mubr.msk.bf16.mxu1 %vm1701_vm0, %v1700_v2  ;;  %v1683_v58 = vld [vmem:[%s1775_s16 + $0x120] ss:$12 sps:$4 sm:$0xff]   ;;  %v1685_v59 = vld [vmem:[%s1775_s16 + $0x13c] ss:$12 sps:$4 sm:$0xff]   ;;  %v1691_v60 = vld [vmem:[%s1775_s16 + $0x158] ss:$0 sps:$4 sm:$0xff]  }
  0x1f   : > { %v234_v61 = vld [vmem:[%s1775_s16 + $0x150] sm:$0xff]  ;;  %v1687_v62 = vld [vmem:[%s1775_s16 + $0x138] ss:$12 sps:$4 sm:$0xff]   ;;  %v1886_v9 = vld [vmem:[%s1943_s2] ss:$0 sm:$0xff] }
  0x20   : > { %v1239_v63 = vcombine.high %v234_v61, %v234_v61  ;;  %v1238_v0 = vcombine.low %v234_v61, %v234_v61 }
  0x21   : > { %1428 = vmatpush3.bf16.msra.mxu0 %v1626_v13 }
  0x22   : > { %1429 = vmatprep.subr.bf16.mxu0 %v1627_v15 }
  0x25   : > { %1430 = vmatpush3.bf16.msra.mxu0 %v1628_v18  ;;  %1553 = vmatmul.mubr.msk.bf16.gmra.mxu1 %vm607_vm1, %v1644_v24 }
  0x26   : > { %1431 = vmatprep.subr.bf16.mxu0 %v1630_v19  ;;  %1556 = vmatprep.mubr.msk.bf16.mxu1 %vm1701_vm0, %v1700_v2 }
  0x29   : > { %1432 = vmatpush3.bf16.msra.mxu0 %v1631_v20 }
  0x2c   : > { %686 = vmatmul.mubr.bf16.vlgmr.msra.gmra.mxu0 %v1633_v22 }
  0x2d   : > { %693 = vmatprep.mubr.bf16.mxu0 %v1637_v23  ;;  %1557 = vmatmul.mubr.msk.bf16.gmra.mxu1 %vm607_vm1, %v1648_v27 }
  0x2e   : > { %1560 = vmatprep.mubr.msk.bf16.mxu1 %vm1701_vm0, %v1700_v2 }
  0x34   : > { %694 = vmatmul.mubr.bf16.gmra.mxu0 %v1639_v25 }
  0x35   : > { %701 = vmatprep.mubr.bf16.mxu0 %v1641_v26  ;;  %1561 = vmatmul.mubr.msk.bf16.gmra.mxu1 %vm607_vm1, %v1652_v30 }
  0x36   : > { %1564 = vmatprep.mubr.msk.bf16.mxu1 %vm1701_vm0, %v1700_v2 }
  0x3c   : > { %702 = vmatmul.mubr.bf16.gmra.mxu0 %v1643_v28 }
  0x3d   : > { %709 = vmatprep.mubr.bf16.mxu0 %v1645_v29  ;;  %1565 = vmatmul.mubr.msk.bf16.gmra.mxu1 %vm607_vm1, %v1656_v33 }
  0x3e   : > { %1568 = vmatprep.mubr.msk.bf16.mxu1 %vm1701_vm0, %v1700_v2 }
  0x44   : > { %710 = vmatmul.mubr.bf16.gmra.mxu0 %v1647_v31 }
  0x45   : > { %717 = vmatprep.mubr.bf16.mxu0 %v1649_v32  ;;  %1569 = vmatmul.mubr.msk.bf16.gmra.mxu1 %vm607_vm1, %v1660_v36 }
  0x46   : > { %1572 = vmatprep.mubr.msk.bf16.mxu1 %vm1701_vm0, %v1700_v2 }
  0x4c   : > { %718 = vmatmul.mubr.bf16.gmra.mxu0 %v1651_v34 }
  0x4d   : > { %725 = vmatprep.mubr.bf16.mxu0 %v1653_v35  ;;  %1573 = vmatmul.mubr.msk.bf16.gmra.mxu1 %vm607_vm1, %v1664_v39 }
  0x4e   : > { %1576 = vmatprep.mubr.msk.bf16.mxu1 %vm1701_vm0, %v1700_v2 }
  0x54   : > { %726 = vmatmul.mubr.bf16.gmra.mxu0 %v1655_v37 }
  0x55   : > { %733 = vmatprep.mubr.bf16.mxu0 %v1657_v38  ;;  %1577 = vmatmul.mubr.msk.bf16.gmra.mxu1 %vm607_vm1, %v1668_v42 }
  0x56   : > { %1580 = vmatprep.mubr.msk.bf16.mxu1 %vm1701_vm0, %v1700_v2 }
  0x5c   : > { %734 = vmatmul.mubr.bf16.gmra.mxu0 %v1659_v40 }
  0x5d   : > { %741 = vmatprep.mubr.bf16.mxu0 %v1661_v41  ;;  %1581 = vmatmul.mubr.msk.bf16.gmra.mxu1 %vm607_vm1, %v1672_v45 }
  0x5e   : > { %1584 = vmatprep.mubr.msk.bf16.mxu1 %vm1701_vm0, %v1700_v2 }
  0x64   : > { %742 = vmatmul.mubr.bf16.gmra.mxu0 %v1663_v43 }
  0x65   : > { %749 = vmatprep.mubr.bf16.mxu0 %v1665_v44  ;;  %1585 = vmatmul.mubr.msk.bf16.gmra.mxu1 %vm607_vm1, %v1676_v48 }
  0x66   : > { %1588 = vmatprep.mubr.msk.bf16.mxu1 %vm1701_vm0, %v1700_v2 }
  0x6c   : > { %750 = vmatmul.mubr.bf16.gmra.mxu0 %v1667_v46 }
  0x6d   : > { %757 = vmatprep.mubr.bf16.mxu0 %v1669_v47  ;;  %1589 = vmatmul.mubr.msk.bf16.gmra.mxu1 %vm607_vm1, %v1680_v51 }
  0x6e   : > { %1592 = vmatprep.mubr.msk.bf16.mxu1 %vm1701_vm0, %v1700_v2 }
  0x74   : > { %758 = vmatmul.mubr.bf16.gmra.mxu0 %v1671_v49 }
  0x75   : > { %765 = vmatprep.mubr.bf16.mxu0 %v1673_v50  ;;  %1593 = vmatmul.mubr.msk.bf16.gmra.mxu1 %vm607_vm1, %v1684_v54 }
  0x76   : > { %1596 = vmatprep.mubr.msk.bf16.mxu1 %vm1701_vm0, %v1700_v2 }
  0x7c   : > { %766 = vmatmul.mubr.bf16.gmra.mxu0 %v1675_v52 }
  0x7d   : > { %773 = vmatprep.mubr.bf16.mxu0 %v1677_v53  ;;  %1597 = vmatmul.mubr.msk.bf16.gmra.mxu1 %vm607_vm1, %v1688_v57 }
  0x7e   : > { %1600 = vmatprep.mubr.msk.bf16.mxu1 %vm1701_vm0, %v1700_v2 }
  0x84   : > { %774 = vmatmul.mubr.bf16.gmra.mxu0 %v1679_v55 }
  0x85   : > { %781 = vmatprep.mubr.bf16.mxu0 %v1681_v56  ;;  %1601 = vmatmul.mubr.msk.bf16.gmra.mxu1 %vm607_vm1, %v1691_v60 }
  0x8c   : > { %782 = vmatmul.mubr.bf16.gmra.mxu0 %v1683_v58 }
  0x8d   : > { %789 = vmatprep.mubr.bf16.mxu0 %v1685_v59 }
  0x94   : > { %790 = vmatmul.mubr.bf16.gmra.mxu0 %v1687_v62 }
  0x95   : > { %797 = vmatprep.mubr.bf16.mxu0 %v1239_v63 }
  0x9c   : > { %798 = vmatmul.mubr.bf16.gmra.mxu0 %v1238_v0 }
  0xd5   : > { %v839_v1 = vpop.f32.mrf.mxu1 }
  0xd7   : > { %v1546_v3 = vpop.f32.mrf.mxu1 }
  0xd9   : > { %v842_v4 = vpop.f32.mrf.mxu1 }
  0xdb   : > { %v1547_v5 = vpop.f32.mrf.mxu1 }
  0xdd   : > { %v847_v6 = vpop.f32.mrf.mxu1 }
  0xdf   : > { %v1550_v7 = vpop.f32.mrf.mxu1 }
  0xe1   : > { %v850_v2 = vpop.f32.mrf.mxu1 }
  0xe3   : > { %v1551_v12 = vpop.f32.mrf.mxu1 }
  0xe5   : > { %v855_v15 = vpop.f32.mrf.mxu1 }
  0xe7   : > { %v1554_v18 = vpop.f32.mrf.mxu1 }
  0xe9   : > { %v858_v22 = vpop.f32.mrf.mxu1 }
  0xeb   : > { %v1555_v26 = vpop.f32.mrf.mxu1 }
  0xec   : > { %v1433_v8 = vpop.f32.mrf.mxu0 }
  0xed   : > { %v863_v31 = vpop.f32.mrf.mxu1 }
  0xee   : > { %v1434_v10 = vpop.f32.mrf.mxu0 }
  0xef   : > { %v1435_v11 = vadd.f32 %v1434_v10, %v1433_v8  ;;  %v1558_v35 = vpop.f32.mrf.mxu1 }
  0xf0   : > { %v1436_v13 = vpop.f32.mrf.mxu0 }
  0xf1   : > { %v688_v14 = vadd.f32 %v1435_v11, %v1886_v9  ;;  %v866_v39 = vpop.f32.mrf.mxu1 }
  0xf2   : > { %v1437_v16 = vpop.f32.mrf.mxu0 }
  0xf3   : > { %v1438_v17 = vadd.f32 %v1437_v16, %v1436_v13  ;;  %v840_v20 = vadd.f32 %v839_v1, %v688_v14  ;;  %v1559_v43 = vpop.f32.mrf.mxu1 }
  0xf4   : > { %v1439_v19 = vpop.f32.mrf.mxu0 }
  0xf5   : > { %v691_v21 = vadd.f32 %v1438_v17, %v1886_v9  ;;  %v957_v28 = vmax.f32 %v840_v20, 0.0  ;;  %v871_v48 = vpop.f32.mrf.mxu1 }
  0xf6   : > { %v1440_v23 = vpop.f32.mrf.mxu0 }
  0xf7   : > { %v843_v24 = vadd.f32 %v842_v4, %v691_v21  ;;  %v1441_v25 = vadd.f32 %v1440_v23, %v1439_v19  ;;  %v1562_v52 = vpop.f32.mrf.mxu1 }
  0xf8   : > { %v1442_v27 = vpop.f32.mrf.mxu0 }
  0xf9   : > { %v958_v29 = vmax.f32 %v843_v24, 0.0  ;;  %v696_v30 = vadd.f32 %v1441_v25, %v1886_v9  ;;  %v874_v56 = vpop.f32.mrf.mxu1 }
  0xfa   : > { %v1443_v32 = vpop.f32.mrf.mxu0 }
  0xfb   : > { %v1337_v33 = vpack.c.bf16 %v958_v29, %v957_v28  ;;  %v1444_v34 = vadd.f32 %v1443_v32, %v1442_v27  ;;  %v848_v37 = vadd.f32 %v847_v6, %v696_v30  ;;  %v1563_v60 = vpop.f32.mrf.mxu1 }
  0xfc   : > { %v1445_v36 = vpop.f32.mrf.mxu0 }
  0xfd   : > { %1338 = vst [vmem:[%s1895_s8] sm:$0xff] %v1337_v33   ;;  %v699_v38 = vadd.f32 %v1444_v34, %v1886_v9  ;;  %v959_v45 = vmax.f32 %v848_v37, 0.0  ;;  %v879_v1 = vpop.f32.mrf.mxu1 }
  0xfe   : > { %v1446_v40 = vpop.f32.mrf.mxu0 }
  0xff   : > { %v851_v41 = vadd.f32 %v850_v2, %v699_v38  ;;  %v1447_v42 = vadd.f32 %v1446_v40, %v1445_v36  ;;  %v1566_v6 = vpop.f32.mrf.mxu1 }
 0x100   : > { %v1448_v44 = vpop.f32.mrf.mxu0 }
 0x101   : > { %v960_v46 = vmax.f32 %v851_v41, 0.0  ;;  %v704_v47 = vadd.f32 %v1447_v42, %v1886_v9  ;;  %v882_v10 = vpop.f32.mrf.mxu1 }
 0x102   : > { %v1449_v49 = vpop.f32.mrf.mxu0 }
 0x103   : > { %v1342_v50 = vpack.c.bf16 %v960_v46, %v959_v45  ;;  %v1450_v51 = vadd.f32 %v1449_v49, %v1448_v44  ;;  %v856_v54 = vadd.f32 %v855_v15, %v704_v47  ;;  %v1567_v14 = vpop.f32.mrf.mxu1 }
 0x104   : > { %v1451_v53 = vpop.f32.mrf.mxu0 }
 0x105   : > { %1404 = vst [vmem:[%s1895_s8 + $0x8] sm:$0xff] %v1342_v50   ;;  %v707_v55 = vadd.f32 %v1450_v51, %v1886_v9  ;;  %v961_v62 = vmax.f32 %v856_v54, 0.0  ;;  %v887_v19 = vpop.f32.mrf.mxu1 }
 0x106   : > { %v1452_v57 = vpop.f32.mrf.mxu0 }
 0x107   : > { %v859_v58 = vadd.f32 %v858_v22, %v707_v55  ;;  %v1453_v59 = vadd.f32 %v1452_v57, %v1451_v53  ;;  %v1570_v23 = vpop.f32.mrf.mxu1 }
 0x108   : > { %v1454_v61 = vpop.f32.mrf.mxu0 }
 0x109   : > { %v962_v63 = vmax.f32 %v859_v58, 0.0  ;;  %v712_v0 = vadd.f32 %v1453_v59, %v1886_v9  ;;  %v890_v27 = vpop.f32.mrf.mxu1 }
 0x10a   : > { %v1455_v3 = vpop.f32.mrf.mxu0 }
 0x10b   : > { %v1347_v4 = vpack.c.bf16 %v962_v63, %v961_v62  ;;  %v1456_v5 = vadd.f32 %v1455_v3, %v1454_v61  ;;  %v864_v8 = vadd.f32 %v863_v31, %v712_v0  ;;  %v1571_v31 = vpop.f32.mrf.mxu1 }
 0x10c   : > { %v1457_v7 = vpop.f32.mrf.mxu0 }
 0x10d   : > { %1405 = vst [vmem:[%s1895_s8 + $0x10] sm:$0xff] %v1347_v4   ;;  %v715_v2 = vadd.f32 %v1456_v5, %v1886_v9  ;;  %v963_v16 = vmax.f32 %v864_v8, 0.0  ;;  %v895_v36 = vpop.f32.mrf.mxu1 }
 0x10e   : > { %v1458_v11 = vpop.f32.mrf.mxu0 }
 0x10f   : > { %v867_v12 = vadd.f32 %v866_v39, %v715_v2  ;;  %v1459_v13 = vadd.f32 %v1458_v11, %v1457_v7  ;;  %v1574_v40 = vpop.f32.mrf.mxu1 }
 0x110   : > { %v1460_v15 = vpop.f32.mrf.mxu0 }
 0x111   : > { %v964_v17 = vmax.f32 %v867_v12, 0.0  ;;  %v720_v18 = vadd.f32 %v1459_v13, %v1886_v9  ;;  %v898_v44 = vpop.f32.mrf.mxu1 }
 0x112   : > { %v1461_v20 = vpop.f32.mrf.mxu0 }
 0x113   : > { %v1352_v21 = vpack.c.bf16 %v964_v17, %v963_v16  ;;  %v1462_v22 = vadd.f32 %v1461_v20, %v1460_v15  ;;  %v872_v25 = vadd.f32 %v871_v48, %v720_v18  ;;  %v1575_v48 = vpop.f32.mrf.mxu1 }
 0x114   : > { %v1463_v24 = vpop.f32.mrf.mxu0 }
 0x115   : > { %1406 = vst [vmem:[%s1895_s8 + $0x18] sm:$0xff] %v1352_v21   ;;  %v723_v26 = vadd.f32 %v1462_v22, %v1886_v9  ;;  %v965_v33 = vmax.f32 %v872_v25, 0.0  ;;  %v903_v53 = vpop.f32.mrf.mxu1 }
 0x116   : > { %v1464_v28 = vpop.f32.mrf.mxu0 }
 0x117   : > { %v875_v29 = vadd.f32 %v874_v56, %v723_v26  ;;  %v1465_v30 = vadd.f32 %v1464_v28, %v1463_v24  ;;  %v1578_v57 = vpop.f32.mrf.mxu1 }
 0x118   : > { %v1466_v32 = vpop.f32.mrf.mxu0 }
 0x119   : > { %v966_v34 = vmax.f32 %v875_v29, 0.0  ;;  %v728_v35 = vadd.f32 %v1465_v30, %v1886_v9  ;;  %v906_v61 = vpop.f32.mrf.mxu1 }
 0x11a   : > { %v1467_v37 = vpop.f32.mrf.mxu0 }
 0x11b   : > { %v1357_v38 = vpack.c.bf16 %v966_v34, %v965_v33  ;;  %v1468_v39 = vadd.f32 %v1467_v37, %v1466_v32  ;;  %v880_v42 = vadd.f32 %v879_v1, %v728_v35  ;;  %v1579_v1 = vpop.f32.mrf.mxu1 }
 0x11c   : > { %v1469_v41 = vpop.f32.mrf.mxu0 }
 0x11d   : > { %1407 = vst [vmem:[%s1895_s8 + $0x20] sm:$0xff] %v1357_v38   ;;  %v731_v43 = vadd.f32 %v1468_v39, %v1886_v9  ;;  %v967_v50 = vmax.f32 %v880_v42, 0.0  ;;  %v911_v7 = vpop.f32.mrf.mxu1 }
 0x11e   : > { %v1470_v45 = vpop.f32.mrf.mxu0 }
 0x11f   : > { %v883_v46 = vadd.f32 %v882_v10, %v731_v43  ;;  %v1471_v47 = vadd.f32 %v1470_v45, %v1469_v41  ;;  %v1582_v11 = vpop.f32.mrf.mxu1 }
 0x120   : > { %v1472_v49 = vpop.f32.mrf.mxu0 }
 0x121   : > { %v968_v51 = vmax.f32 %v883_v46, 0.0  ;;  %v736_v52 = vadd.f32 %v1471_v47, %v1886_v9  ;;  %v914_v15 = vpop.f32.mrf.mxu1 }
 0x122   : > { %v1473_v54 = vpop.f32.mrf.mxu0 }
 0x123   : > { %v1362_v55 = vpack.c.bf16 %v968_v51, %v967_v50  ;;  %v1474_v56 = vadd.f32 %v1473_v54, %v1472_v49  ;;  %v888_v59 = vadd.f32 %v887_v19, %v736_v52  ;;  %v1583_v19 = vpop.f32.mrf.mxu1 }
 0x124   : > { %v1475_v58 = vpop.f32.mrf.mxu0 }
 0x125   : > { %1408 = vst [vmem:[%s1895_s8 + $0x28] sm:$0xff] %v1362_v55   ;;  %v739_v60 = vadd.f32 %v1474_v56, %v1886_v9  ;;  %v969_v4 = vmax.f32 %v888_v59, 0.0  ;;  %v919_v24 = vpop.f32.mrf.mxu1 }
 0x126   : > { %v1476_v62 = vpop.f32.mrf.mxu0 }
 0x127   : > { %v891_v63 = vadd.f32 %v890_v27, %v739_v60  ;;  %v1477_v0 = vadd.f32 %v1476_v62, %v1475_v58  ;;  %v1586_v28 = vpop.f32.mrf.mxu1 }
 0x128   : > { %v1478_v3 = vpop.f32.mrf.mxu0 }
 0x129   : > { %v970_v5 = vmax.f32 %v891_v63, 0.0  ;;  %v744_v6 = vadd.f32 %v1477_v0, %v1886_v9  ;;  %v922_v32 = vpop.f32.mrf.mxu1 }
 0x12a   : > { %v1479_v8 = vpop.f32.mrf.mxu0 }
 0x12b   : > { %v1367_v2 = vpack.c.bf16 %v970_v5, %v969_v4  ;;  %v1480_v10 = vadd.f32 %v1479_v8, %v1478_v3  ;;  %v896_v13 = vadd.f32 %v895_v36, %v744_v6  ;;  %v1587_v36 = vpop.f32.mrf.mxu1 }
 0x12c   : > { %v1481_v12 = vpop.f32.mrf.mxu0 }
 0x12d   : > { %1409 = vst [vmem:[%s1895_s8 + $0x30] sm:$0xff] %v1367_v2   ;;  %v747_v14 = vadd.f32 %v1480_v10, %v1886_v9  ;;  %v971_v21 = vmax.f32 %v896_v13, 0.0  ;;  %v927_v41 = vpop.f32.mrf.mxu1 }
 0x12e   : > { %v1482_v16 = vpop.f32.mrf.mxu0 }
 0x12f   : > { %v899_v17 = vadd.f32 %v898_v44, %v747_v14  ;;  %v1483_v18 = vadd.f32 %v1482_v16, %v1481_v12  ;;  %v1590_v45 = vpop.f32.mrf.mxu1 }
 0x130   : > { %v1484_v20 = vpop.f32.mrf.mxu0 }
 0x131   : > { %v972_v22 = vmax.f32 %v899_v17, 0.0  ;;  %v752_v23 = vadd.f32 %v1483_v18, %v1886_v9  ;;  %v930_v49 = vpop.f32.mrf.mxu1 }
 0x132   : > { %v1485_v25 = vpop.f32.mrf.mxu0 }
 0x133   : > { %v1372_v26 = vpack.c.bf16 %v972_v22, %v971_v21  ;;  %v1486_v27 = vadd.f32 %v1485_v25, %v1484_v20  ;;  %v904_v30 = vadd.f32 %v903_v53, %v752_v23  ;;  %v1591_v53 = vpop.f32.mrf.mxu1 }
 0x134   : > { %v1487_v29 = vpop.f32.mrf.mxu0 }
 0x135   : > { %1410 = vst [vmem:[%s1895_s8 + $0x38] sm:$0xff] %v1372_v26   ;;  %v755_v31 = vadd.f32 %v1486_v27, %v1886_v9  ;;  %v973_v38 = vmax.f32 %v904_v30, 0.0  ;;  %v935_v58 = vpop.f32.mrf.mxu1 }
 0x136   : > { %v1488_v33 = vpop.f32.mrf.mxu0 }
 0x137   : > { %v907_v34 = vadd.f32 %v906_v61, %v755_v31  ;;  %v1489_v35 = vadd.f32 %v1488_v33, %v1487_v29  ;;  %v1594_v62 = vpop.f32.mrf.mxu1 }
 0x138   : > { %v1490_v37 = vpop.f32.mrf.mxu0 }
 0x139   : > { %v974_v39 = vmax.f32 %v907_v34, 0.0  ;;  %v760_v40 = vadd.f32 %v1489_v35, %v1886_v9  ;;  %v938_v3 = vpop.f32.mrf.mxu1 }
 0x13a   : > { %v1491_v42 = vpop.f32.mrf.mxu0 }
 0x13b   : > { %v1377_v43 = vpack.c.bf16 %v974_v39, %v973_v38  ;;  %v1492_v44 = vadd.f32 %v1491_v42, %v1490_v37  ;;  %v912_v47 = vadd.f32 %v911_v7, %v760_v40  ;;  %v1595_v7 = vpop.f32.mrf.mxu1 }
 0x13c   : > { %v1493_v46 = vpop.f32.mrf.mxu0 }
 0x13d   : > { %1411 = vst [vmem:[%s1895_s8 + $0x40] sm:$0xff] %v1377_v43   ;;  %v763_v48 = vadd.f32 %v1492_v44, %v1886_v9  ;;  %v975_v55 = vmax.f32 %v912_v47, 0.0  ;;  %v943_v12 = vpop.f32.mrf.mxu1 }
 0x13e   : > { %v1494_v50 = vpop.f32.mrf.mxu0 }
 0x13f   : > { %v915_v51 = vadd.f32 %v914_v15, %v763_v48  ;;  %v1495_v52 = vadd.f32 %v1494_v50, %v1493_v46  ;;  %v1598_v16 = vpop.f32.mrf.mxu1 }
 0x140   : > { %v1496_v54 = vpop.f32.mrf.mxu0 }
 0x141   : > { %v976_v56 = vmax.f32 %v915_v51, 0.0  ;;  %v768_v57 = vadd.f32 %v1495_v52, %v1886_v9  ;;  %v946_v20 = vpop.f32.mrf.mxu1 }
 0x142   : > { %v1497_v59 = vpop.f32.mrf.mxu0 }
 0x143   : > { %v1382_v60 = vpack.c.bf16 %v976_v56, %v975_v55  ;;  %v1498_v61 = vadd.f32 %v1497_v59, %v1496_v54  ;;  %v920_v0 = vadd.f32 %v919_v24, %v768_v57  ;;  %v1599_v24 = vpop.f32.mrf.mxu1 }
 0x144   : > { %v1499_v63 = vpop.f32.mrf.mxu0 }
 0x145   : > { %1412 = vst [vmem:[%s1895_s8 + $0x48] sm:$0xff] %v1382_v60   ;;  %v771_v1 = vadd.f32 %v1498_v61, %v1886_v9  ;;  %v977_v2 = vmax.f32 %v920_v0, 0.0  ;;  %v951_v29 = vpop.f32.mrf.mxu1 }
 0x146   : > { %v1500_v4 = vpop.f32.mrf.mxu0 }
 0x147   : > { %v923_v5 = vadd.f32 %v922_v32, %v771_v1  ;;  %v1501_v6 = vadd.f32 %v1500_v4, %v1499_v63  ;;  %v1602_v33 = vpop.f32.mrf.mxu1 }
 0x148   : > { %v1502_v8 = vpop.f32.mrf.mxu0 }
 0x149   : > { %v978_v10 = vmax.f32 %v923_v5, 0.0  ;;  %v776_v11 = vadd.f32 %v1501_v6, %v1886_v9  ;;  %v954_v37 = vpop.f32.mrf.mxu1 }
 0x14a   : > { %v1503_v13 = vpop.f32.mrf.mxu0 }
 0x14b   : > { %v1387_v14 = vpack.c.bf16 %v978_v10, %v977_v2  ;;  %v1504_v15 = vadd.f32 %v1503_v13, %v1502_v8  ;;  %v928_v18 = vadd.f32 %v927_v41, %v776_v11  ;;  %v1603_v41 = vpop.f32.mrf.mxu1 }
 0x14c   : > { %v1505_v17 = vpop.f32.mrf.mxu0 }
 0x14d   : > { %1413 = vst [vmem:[%s1895_s8 + $0x50] sm:$0xff] %v1387_v14   ;;  %v779_v19 = vadd.f32 %v1504_v15, %v1886_v9  ;;  %v979_v26 = vmax.f32 %v928_v18, 0.0 }
 0x14e   : > { %v1506_v21 = vpop.f32.mrf.mxu0 }
 0x14f   : > { %v931_v22 = vadd.f32 %v930_v49, %v779_v19  ;;  %v1507_v23 = vadd.f32 %v1506_v21, %v1505_v17 }
 0x150   : > { %v1508_v25 = vpop.f32.mrf.mxu0 }
 0x151   : > { %v980_v27 = vmax.f32 %v931_v22, 0.0  ;;  %v784_v28 = vadd.f32 %v1507_v23, %v1886_v9 }
 0x152   : > { %v1509_v30 = vpop.f32.mrf.mxu0 }
 0x153   : > { %v1392_v31 = vpack.c.bf16 %v980_v27, %v979_v26  ;;  %v1510_v32 = vadd.f32 %v1509_v30, %v1508_v25  ;;  %v936_v35 = vadd.f32 %v935_v58, %v784_v28 }
 0x154   : > { %v1511_v34 = vpop.f32.mrf.mxu0 }
 0x155   : > { %1414 = vst [vmem:[%s1895_s8 + $0x58] sm:$0xff] %v1392_v31   ;;  %v787_v36 = vadd.f32 %v1510_v32, %v1886_v9  ;;  %v981_v43 = vmax.f32 %v936_v35, 0.0 }
 0x156   : > { %v1512_v38 = vpop.f32.mrf.mxu0 }
 0x157   : > { %v939_v39 = vadd.f32 %v938_v3, %v787_v36  ;;  %v1513_v40 = vadd.f32 %v1512_v38, %v1511_v34 }
 0x158   : > { %v1514_v42 = vpop.f32.mrf.mxu0 }
 0x159   : > { %v982_v44 = vmax.f32 %v939_v39, 0.0  ;;  %v792_v45 = vadd.f32 %v1513_v40, %v1886_v9 }
 0x15a   : > { %v1515_v46 = vpop.f32.mrf.mxu0 }
 0x15b   : > { %v1397_v47 = vpack.c.bf16 %v982_v44, %v981_v43  ;;  %v1516_v48 = vadd.f32 %v1515_v46, %v1514_v42  ;;  %v944_v50 = vadd.f32 %v943_v12, %v792_v45 }
 0x15c   : > { %v1517_v49 = vpop.f32.mrf.mxu0 }
 0x15d   : > { %1415 = vst [vmem:[%s1895_s8 + $0x60] sm:$0xff] %v1397_v47   ;;  %v795_v51 = vadd.f32 %v1516_v48, %v1886_v9  ;;  %v983_v56 = vmax.f32 %v944_v50, 0.0 }
 0x15e   : > { %v1518_v52 = vpop.f32.mrf.mxu0 }
 0x15f   : > { %v947_v53 = vadd.f32 %v946_v20, %v795_v51  ;;  %v1519_v54 = vadd.f32 %v1518_v52, %v1517_v49 }
 0x160   : > { %v1520_v55 = vpop.f32.mrf.mxu0 }
 0x161   : > { %v984_v57 = vmax.f32 %v947_v53, 0.0  ;;  %v800_v58 = vadd.f32 %v1519_v54, %v1886_v9 }
 0x162   : > { %v1521_v59 = vpop.f32.mrf.mxu0 }
 0x163   : > { %v1402_v60 = vpack.c.bf16 %v984_v57, %v983_v56  ;;  %v952_v61 = vadd.f32 %v951_v29, %v800_v58 }
 0x165   : > { %1416 = vst [vmem:[%s1895_s8 + $0x68] sm:$0xff] %v1402_v60   ;;  %v985_v62 = vmax.f32 %v952_v61, 0.0 }
 0x167   : > { %v1333_v63 = vpack.c.bf16 %v985_v62, %v985_v62 }
 0x169   : > { %1131 = vst [vmem:[%s1895_s8 + $0x70] sm:$0xf] %v1333_v63 }
 0x16a PF: > { %s13_s12 = sadd.s32 1, %s1698_s12  }
 0x16b   : > { %p10_p4 = scmp.ge.s32.totalorder %s13_s12, 7  }
 0x16d   :  { %12 = sbr.rel (!%p10_p4) target bundleno = 1 (0x1), region = 62 }

// kernel: cnn_policy_net_forward.7
= control target key start
LH: loop header
LB: loop body
LE: loop exit
PB: predicated region body
PF: predicated region fallthrough
CT: control target
= control target key end

     0   :  { %s1801_s12 = smov 0   ;;  %s2102_s0 = inlined_call_operand.vmem [shape: bf16[288,576], index: 0, kind: input, shape index: {}]   ;;  %s2103_s1 = inlined_call_operand.vmem [shape: bf16[576,128], index: 1, kind: input, shape index: {}]   ;;  %s2104_s2 = inlined_call_operand.vmem [shape: f32[1,128], index: 2, kind: input, shape index: {}]   ;;  %s2105_s3 = inlined_call_operand.vmem [shape: bf16[288,128], index: 3, kind: output, shape index: {}]  }
   0x1 LB: > { %s1259_s13 = sadd.s32 4294967295, %s1777_s12   ;;  %p1263_p0 = scmp.ge.s32.totalorder %s1777_s12, 1  ;;  %s1777_s12 = sphi %s1801_s12, %s13_s12  }
   0x2   : > { %p139_p1 = scmp.lt.s32.totalorder %s1777_s12, 3 }
   0x4   : > { %p140_p2 = pnand %p1263_p0, %p139_p1 }
   0x5   : > { %s164_s16 = smul.u32 (!%p140_p2), 18, %s1259_s13 }
   0x6   : > { %143 = sbr.rel (%p140_p2) target bundleno = 352 (0x160), region = 32 }
   0x7   : > { %p165_p3 = scmp.lt.s32.totalorder (!%p140_p2), %s164_s16, 35 }
   0xb   : > { %v1672_v0 = vld [vmem:[%s2103_s1 + $0x78] sm:$0xff]   ;;  %v1674_v2 = vld [vmem:[%s2103_s1 + $0x70] sm:$0xff]   ;;  %v1676_v4 = vld [vmem:[%s2103_s1 + $0x68] sm:$0xff]   ;;  %s2107_s16 = smov (!%p165_p3, %s164_s16), 35  ;;  %v1779_v24 = vmov 0.0   ;;  %vm1780_vm0 = vmmov 0  }
   0xc   : > { %v1673_v1 = vld [vmem:[%s2103_s1 + $0x38] sm:$0xff]   ;;  %1448 = vmatprep.subr.bf16.mxu0 %v1672_v0  ;;  %1645 = vmatprep.subr.bf16.mxu1 %v1672_v0  ;;  %v1675_v3 = vld [vmem:[%s2103_s1 + $0x30] sm:$0xff]   ;;  %v1677_v5 = vld [vmem:[%s2103_s1 + $0x28] sm:$0xff]   ;;  %s1661_s29 = smul.u32 20, %s2107_s16  ;;  %vm752_vm1 = vcmask 523264   ;;  %s1265_s19 = sshll.u32 %s2107_s16, 2 }
   0xd   : > { %1449 = vmatpush3.bf16.msra.mxu0 %v1673_v1  ;;  %1653 = vmatpush3.bf16.msra.mxu1 %v1673_v1  ;;  %v1678_v6 = vld [vmem:[%s2103_s1 + $0x60] sm:$0xff]   ;;  %v1680_v8 = vld [vmem:[%s2103_s1 + $0x58] sm:$0xff]   ;;  %v1682_v10 = vld [vmem:[%s2103_s1 + $0x50] sm:$0xff]   ;;  %s2055_s22 = scalar_lea.vmem %s2105_s3, %s1265_s19 }
   0xe   : > { %1450 = vmatprep.subr.bf16.mxu0 %v1674_v2  ;;  %1646 = vmatprep.subr.bf16.mxu1 %v1674_v2  ;;  %v1679_v7 = vld [vmem:[%s2103_s1 + $0x20] sm:$0xff]   ;;  %s1842_s9 = scalar_lea.vmem %s2102_s0, %s1661_s29  ;;  %v1681_v9 = vld [vmem:[%s2103_s1 + $0x18] sm:$0xff]   ;;  %v1683_v13 = vld [vmem:[%s2103_s1 + $0x10] sm:$0xff]  }
   0xf   : > { %v1690_v11 = vld [vmem:[%s1842_s9 + $0x4] ss:$20 sps:$4 sm:$0xff]   ;;  %v1693_v12 = vld [vmem:[%s1842_s9 + $0xcc] ss:$20 sps:$4 sm:$0xff]   ;;  %v1691_v19 = vld [vmem:[%s1842_s9 + $0xc8] ss:$20 sps:$4 sm:$0xff]  }
  0x10   : > { %v1684_v14 = vld [vmem:[%s2103_s1 + $0x48] sm:$0xff]   ;;  %812 = vmatprep.mubr.bf16.mxu0 %v1690_v11  ;;  %852 = vmatprep.mubr.bf16.mxu1 %v1693_v12  ;;  %v1686_v16 = vld [vmem:[%s2103_s1 + $0x40] sm:$0xff]   ;;  %v1694_v20 = vld [vmem:[%s2103_s1 + $0xf8] sm:$0xff]  }
  0x11   : > { %1451 = vmatpush3.bf16.msra.mxu0 %v1675_v3  ;;  %1654 = vmatpush3.bf16.msra.mxu1 %v1675_v3  ;;  %v1685_v15 = vld [vmem:[%s2103_s1 + $0x8] sm:$0xff]   ;;  %v1687_v17 = vld [vmem:[%s2103_s1] sm:$0xff]   ;;  %v1695_v21 = vld [vmem:[%s2103_s1 + $0xb8] sm:$0xff]  }
  0x12   : > { %1452 = vmatprep.subr.bf16.mxu0 %v1676_v4  ;;  %1647 = vmatprep.subr.bf16.mxu1 %v1676_v4  ;;  %v1688_v18 = vld [vmem:[%s1842_s9] ss:$20 sps:$4 sm:$0xff]   ;;  %v1696_v22 = vld [vmem:[%s2103_s1 + $0x118] sm:$0xff]   ;;  %v1704_v30 = vld [vmem:[%s1842_s9 + $0xf0] ss:$20 sps:$4 sm:$0xff]  }
  0x13   : > { %v1697_v23 = vld [vmem:[%s2103_s1 + $0xf0] sm:$0xff]   ;;  %v1699_v25 = vld [vmem:[%s1842_s9 + $0x2c] ss:$20 sps:$4 sm:$0xff]   ;;  %v1703_v29 = vld [vmem:[%s1842_s9 + $0x28] ss:$20 sps:$4 sm:$0xff]  }
  0x14   : > { %v1701_v26 = vld [vmem:[%s1842_s9 + $0xf4] ss:$20 sps:$4 sm:$0xff]   ;;  %v1708_v33 = vld [vmem:[%s2103_s1 + $0xe0] sm:$0xff]   ;;  %v1712_v35 = vld [vmem:[%s1842_s9 + $0x11c] ss:$20 sps:$4 sm:$0xff]  }
  0x15   : > { %1453 = vmatpush3.bf16.msra.mxu0 %v1677_v5  ;;  %1655 = vmatpush3.bf16.msra.mxu1 %v1677_v5  ;;  %v1698_v27 = vld [vmem:[%s2103_s1 + $0xb0] sm:$0xff]   ;;  %v1705_v31 = vld [vmem:[%s2103_s1 + $0xe8] sm:$0xff]   ;;  %v1709_v37 = vld [vmem:[%s2103_s1 + $0xa0] sm:$0xff]  }
  0x16   : > { %1454 = vmatprep.subr.bf16.mxu0 %v1678_v6  ;;  %1648 = vmatprep.subr.bf16.mxu1 %v1678_v6  ;;  %v1707_v28 = vld [vmem:[%s2103_s1 + $0x110] sm:$0xff]   ;;  %v1706_v32 = vld [vmem:[%s2103_s1 + $0xa8] sm:$0xff]   ;;  %v1716_v39 = vld [vmem:[%s2103_s1 + $0xd8] sm:$0xff]  }
  0x17   : > { %v1710_v34 = vld [vmem:[%s1842_s9 + $0x54] ss:$20 sps:$4 sm:$0xff]   ;;  %v1714_v38 = vld [vmem:[%s1842_s9 + $0x50] ss:$20 sps:$4 sm:$0xff]   ;;  %v1715_v40 = vld [vmem:[%s1842_s9 + $0x118] ss:$20 sps:$4 sm:$0xff]  }
  0x18   : > { %v1720_v36 = vld [vmem:[%s2103_s1 + $0x108] sm:$0xff]   ;;  %v1717_v41 = vld [vmem:[%s2103_s1 + $0x98] sm:$0xff]   ;;  %v1718_v42 = vld [vmem:[%s2103_s1 + $0xd0] sm:$0xff]  }
  0x19   : > { %1455 = vmatpush3.bf16.msra.mxu0 %v1679_v7  ;;  %1656 = vmatpush3.bf16.msra.mxu1 %v1679_v7  ;;  %v1721_v43 = vld [vmem:[%s1842_s9 + $0x7c] ss:$20 sps:$4 sm:$0xff]   ;;  %v1723_v44 = vld [vmem:[%s1842_s9 + $0x144] ss:$20 sps:$4 sm:$0xff]   ;;  %v1726_v48 = vld [vmem:[%s1842_s9 + $0x140] ss:$20 sps:$4 sm:$0xff]  }
  0x1a   : > { %1456 = vmatprep.subr.bf16.mxu0 %v1680_v8  ;;  %1649 = vmatprep.subr.bf16.mxu1 %v1680_v8  ;;  %v1736_v45 = vld [vmem:[%s2103_s1 + $0x100] sm:$0xff]   ;;  %v1719_v46 = vld [vmem:[%s2103_s1 + $0x90] sm:$0xff]   ;;  %v1725_v47 = vld [vmem:[%s1842_s9 + $0x78] ss:$20 sps:$4 sm:$0xff]  }
  0x1b   : > { %v1727_v49 = vld [vmem:[%s2103_s1 + $0xc8] sm:$0xff]   ;;  %v1729_v51 = vld [vmem:[%s2103_s1 + $0xc0] sm:$0xff]   ;;  %v1742_v60 = vld [vmem:[%s1842_s9 + $0x5c] ss:$20 sps:$4 sm:$0xff]  }
  0x1c   : > { %v1728_v50 = vld [vmem:[%s2103_s1 + $0x88] sm:$0xff]   ;;  %v1731_v52 = vld [vmem:[%s1842_s9 + $0xa4] ss:$20 sps:$4 sm:$0xff]   ;;  %v1737_v56 = vld [vmem:[%s1842_s9 + $0xa0] ss:$20 sps:$4 sm:$0xff]  }
  0x1d   : > { %1457 = vmatpush3.bf16.msra.mxu0 %v1681_v9  ;;  %1657 = vmatpush3.bf16.msra.mxu1 %v1681_v9  ;;  %v1735_v53 = vld [vmem:[%s1842_s9 + $0xc] ss:$20 sps:$4 sm:$0xff]   ;;  %v1733_v55 = vld [vmem:[%s1842_s9 + $0x8] ss:$20 sps:$4 sm:$0xff]   ;;  %v1740_v58 = vld [vmem:[%s1842_s9 + $0x30] ss:$20 sps:$4 sm:$0xff]  }
  0x1e   : > { %1458 = vmatprep.subr.bf16.mxu0 %v1682_v10  ;;  %1650 = vmatprep.subr.bf16.mxu1 %v1682_v10  ;;  %v1730_v54 = vld [vmem:[%s2103_s1 + $0x80] sm:$0xff]   ;;  %v1738_v57 = vld [vmem:[%s1842_s9 + $0x34] ss:$20 sps:$4 sm:$0xff]   ;;  %v1744_v61 = vld [vmem:[%s1842_s9 + $0x58] ss:$20 sps:$4 sm:$0xff]  }
  0x1f   : > { %v1741_v59 = vld [vmem:[%s1842_s9 + $0x10] ss:$20 sps:$4 sm:$0xff]   ;;  %v1745_v62 = vld [vmem:[%s1842_s9 + $0x38] ss:$20 sps:$4 sm:$0xff]   ;;  %v1748_v0 = vld [vmem:[%s1842_s9 + $0x80] ss:$20 sps:$4 sm:$0xff]  }
  0x20   : > { %v1746_v63 = vld [vmem:[%s1842_s9 + $0x84] ss:$20 sps:$4 sm:$0xff]   ;;  %v1749_v1 = vld [vmem:[%s1842_s9 + $0x60] ss:$20 sps:$4 sm:$0xff]   ;;  %v1752_v3 = vld [vmem:[%s1842_s9 + $0xa8] ss:$20 sps:$4 sm:$0xff]  }
  0x21   : > { %1459 = vmatpush3.bf16.msra.mxu0 %v1683_v13  ;;  %1658 = vmatpush3.bf16.msra.mxu1 %v1683_v13  ;;  %v1750_v2 = vld [vmem:[%s1842_s9 + $0xac] ss:$20 sps:$4 sm:$0xff]   ;;  %v1753_v4 = vld [vmem:[%s1842_s9 + $0x88] ss:$20 sps:$4 sm:$0xff]   ;;  %v1756_v6 = vld [vmem:[%s1842_s9 + $0xd0] ss:$20 sps:$4 sm:$0xff]  }
  0x22   : > { %1460 = vmatprep.subr.bf16.mxu0 %v1684_v14  ;;  %1651 = vmatprep.subr.bf16.mxu1 %v1684_v14  ;;  %v1754_v5 = vld [vmem:[%s1842_s9 + $0xd4] ss:$20 sps:$4 sm:$0xff]   ;;  %v1757_v7 = vld [vmem:[%s1842_s9 + $0xb0] ss:$20 sps:$4 sm:$0xff]   ;;  %v1760_v9 = vld [vmem:[%s1842_s9 + $0xf8] ss:$20 sps:$4 sm:$0xff]  }
  0x23   : > { %v1758_v8 = vld [vmem:[%s1842_s9 + $0xfc] ss:$20 sps:$4 sm:$0xff]   ;;  %v1761_v10 = vld [vmem:[%s1842_s9 + $0xd8] ss:$20 sps:$4 sm:$0xff]   ;;  %v1764_v12 = vld [vmem:[%s1842_s9 + $0x120] ss:$20 sps:$4 sm:$0xff]  }
  0x24   : > { %v1762_v11 = vld [vmem:[%s1842_s9 + $0x124] ss:$20 sps:$4 sm:$0xff]   ;;  %v1765_v13 = vld [vmem:[%s1842_s9 + $0x100] ss:$20 sps:$4 sm:$0xff]  }
  0x25   : > { %1461 = vmatpush3.bf16.msra.mxu0 %v1685_v15  ;;  %1659 = vmatpush3.bf16.msra.mxu1 %v1685_v15  ;;  %v1766_v14 = vld [vmem:[%s1842_s9 + $0x14c] ss:$20 sps:$4 sm:$0xff]   ;;  %v1768_v15 = vld [vmem:[%s1842_s9 + $0x148] ss:$20 sps:$4 sm:$0xff]  }
  0x26   : > { %1462 = vmatprep.subr.bf16.mxu0 %v1686_v16  ;;  %1652 = vmatprep.subr.bf16.mxu1 %v1686_v16  ;;  %v1769_v16 = vld [vmem:[%s1842_s9 + $0x128] ss:$20 sps:$4 sm:$0xff]  }
  0x29   : > { %1463 = vmatpush3.bf16.msra.mxu0 %v1687_v17  ;;  %1660 = vmatpush3.bf16.msra.mxu1 %v1687_v17  ;;  %v1770_v17 = vld [vmem:[%s1842_s9 + $0x150] ss:$20 sps:$4 sm:$0xff]  }
  0x2a   : > { %1518 = vmatprep.subr.bf16.mxu1 %v1694_v20  ;;  %1601 = vmatprep.subr.bf16.mxu0 %v1779_v24 }
  0x2c   : > { %813 = vmatmul.mubr.bf16.vlgmr.msra.gmra.mxu0 %v1688_v18  ;;  %853 = vmatmul.mubr.bf16.vlgmr.msra.gmra.mxu1 %v1691_v19 }
  0x2d   : > { %1519 = vmatpush3.bf16.msra.mxu1 %v1695_v21  ;;  %1602 = vmatpush3.bf16.msra.mxu0 %v1696_v22 }
  0x2e   : > { %1520 = vmatprep.subr.bf16.mxu1 %v1697_v23  ;;  %820 = vmatprep.mubr.bf16.mxu0 %v1699_v25 }
  0x2f   : > { %860 = vmatprep.mubr.bf16.mxu1 %v1701_v26  ;;  %1603 = vmatprep.subr.bf16.mxu0 %v1779_v24 }
  0x31   : > { %1521 = vmatpush3.bf16.msra.mxu1 %v1698_v27  ;;  %1604 = vmatpush3.bf16.msra.mxu0 %v1707_v28 }
  0x32   : > { %1522 = vmatprep.subr.bf16.mxu1 %v1705_v31  ;;  %1605 = vmatprep.subr.bf16.mxu0 %v1779_v24 }
  0x34   : > { %821 = vmatmul.mubr.bf16.gmra.mxu0 %v1703_v29  ;;  %861 = vmatmul.mubr.bf16.gmra.mxu1 %v1704_v30 }
  0x35   : > { %1523 = vmatpush3.bf16.msra.mxu1 %v1706_v32  ;;  %828 = vmatprep.mubr.bf16.mxu0 %v1710_v34 }
  0x36   : > { %1524 = vmatprep.subr.bf16.mxu1 %v1708_v33  ;;  %868 = vmatprep.mubr.bf16.mxu1 %v1712_v35 }
  0x37   : > { %1606 = vmatpush3.bf16.msra.mxu0 %v1720_v36 }
  0x38   : > { %1607 = vmatprep.subr.bf16.mxu0 %v1779_v24 }
  0x39   : > { %1525 = vmatpush3.bf16.msra.mxu1 %v1709_v37 }
  0x3a   : > { %1526 = vmatprep.subr.bf16.mxu1 %v1716_v39 }
  0x3b   : > { %1608 = vmatpush3.bf16.msra.mxu0 %v1736_v45 }
  0x3c   : > { %829 = vmatmul.mubr.bf16.gmra.mxu0 %v1714_v38  ;;  %869 = vmatmul.mubr.bf16.gmra.mxu1 %v1715_v40 }
  0x3d   : > { %1527 = vmatpush3.bf16.msra.mxu1 %v1717_v41  ;;  %836 = vmatprep.mubr.bf16.mxu0 %v1721_v43 }
  0x3e   : > { %1528 = vmatprep.subr.bf16.mxu1 %v1718_v42  ;;  %876 = vmatprep.mubr.bf16.mxu1 %v1723_v44 }
  0x41   : > { %1529 = vmatpush3.bf16.msra.mxu1 %v1719_v46 }
  0x42   : > { %1530 = vmatprep.subr.bf16.mxu1 %v1727_v49 }
  0x44   : > { %837 = vmatmul.mubr.bf16.gmra.mxu0 %v1725_v47  ;;  %877 = vmatmul.mubr.bf16.gmra.mxu1 %v1726_v48 }
  0x45   : > { %1531 = vmatpush3.bf16.msra.mxu1 %v1728_v50  ;;  %844 = vmatprep.mubr.bf16.mxu0 %v1731_v52 }
  0x46   : > { %1532 = vmatprep.subr.bf16.mxu1 %v1729_v51  ;;  %917 = vmatprep.mubr.bf16.mxu1 %v1735_v53  ;;  %v2028_v53 = vld [vmem:[%s2104_s2] ss:$0 sm:$0xff] }
  0x49   : > { %1533 = vmatpush3.bf16.msra.mxu1 %v1730_v54 }
  0x4c   : > { %845 = vmatmul.mubr.bf16.gmra.mxu0 %v1737_v56  ;;  %918 = vmatmul.mubr.bf16.vlgmr.msra.gmra.mxu1 %v1733_v55 }
  0x4d   : > { %925 = vmatprep.mubr.bf16.mxu1 %v1738_v57  ;;  %1609 = vmatprep.mubr.msk.bf16.mxu0 %vm1780_vm0, %v1779_v24 }
  0x54   : > { %926 = vmatmul.mubr.bf16.gmra.mxu1 %v1740_v58  ;;  %1610 = vmatmul.mubr.msk.bf16.vlgmr.msra.gmra.mxu0 %vm752_vm1, %v1741_v59 }
  0x55   : > { %933 = vmatprep.mubr.bf16.mxu1 %v1742_v60  ;;  %1613 = vmatprep.mubr.msk.bf16.mxu0 %vm1780_vm0, %v1779_v24 }
  0x5c   : > { %934 = vmatmul.mubr.bf16.gmra.mxu1 %v1744_v61  ;;  %1614 = vmatmul.mubr.msk.bf16.gmra.mxu0 %vm752_vm1, %v1745_v62 }
  0x5d   : > { %941 = vmatprep.mubr.bf16.mxu1 %v1746_v63  ;;  %1617 = vmatprep.mubr.msk.bf16.mxu0 %vm1780_vm0, %v1779_v24 }
  0x64   : > { %942 = vmatmul.mubr.bf16.gmra.mxu1 %v1748_v0  ;;  %1618 = vmatmul.mubr.msk.bf16.gmra.mxu0 %vm752_vm1, %v1749_v1 }
  0x65   : > { %949 = vmatprep.mubr.bf16.mxu1 %v1750_v2  ;;  %1621 = vmatprep.mubr.msk.bf16.mxu0 %vm1780_vm0, %v1779_v24 }
  0x6c   : > { %950 = vmatmul.mubr.bf16.gmra.mxu1 %v1752_v3  ;;  %1622 = vmatmul.mubr.msk.bf16.gmra.mxu0 %vm752_vm1, %v1753_v4 }
  0x6d   : > { %957 = vmatprep.mubr.bf16.mxu1 %v1754_v5  ;;  %1625 = vmatprep.mubr.msk.bf16.mxu0 %vm1780_vm0, %v1779_v24 }
  0x74   : > { %958 = vmatmul.mubr.bf16.gmra.mxu1 %v1756_v6  ;;  %1626 = vmatmul.mubr.msk.bf16.gmra.mxu0 %vm752_vm1, %v1757_v7 }
  0x75   : > { %965 = vmatprep.mubr.bf16.mxu1 %v1758_v8  ;;  %1629 = vmatprep.mubr.msk.bf16.mxu0 %vm1780_vm0, %v1779_v24 }
  0x7c   : > { %966 = vmatmul.mubr.bf16.gmra.mxu1 %v1760_v9  ;;  %1630 = vmatmul.mubr.msk.bf16.gmra.mxu0 %vm752_vm1, %v1761_v10 }
  0x7d   : > { %973 = vmatprep.mubr.bf16.mxu1 %v1762_v11  ;;  %1633 = vmatprep.mubr.msk.bf16.mxu0 %vm1780_vm0, %v1779_v24 }
  0x84   : > { %974 = vmatmul.mubr.bf16.gmra.mxu1 %v1764_v12  ;;  %1634 = vmatmul.mubr.msk.bf16.gmra.mxu0 %vm752_vm1, %v1765_v13 }
  0x85   : > { %981 = vmatprep.mubr.bf16.mxu1 %v1766_v14  ;;  %1637 = vmatprep.mubr.msk.bf16.mxu0 %vm1780_vm0, %v1779_v24 }
  0x8c   : > { %982 = vmatmul.mubr.bf16.gmra.mxu1 %v1768_v15  ;;  %1638 = vmatmul.mubr.msk.bf16.gmra.mxu0 %vm752_vm1, %v1769_v16 }
  0x8d   : > { %1641 = vmatprep.mubr.msk.bf16.mxu0 %vm1780_vm0, %v1779_v24 }
  0x94   : > { %1642 = vmatmul.mubr.msk.bf16.gmra.mxu0 %vm752_vm1, %v1770_v17 }
  0xec   : > { %v1464_v18 = vpop.f32.mrf.mxu0  ;;  %v1494_v19 = vpop.f32.mrf.mxu1 }
  0xee   : > { %v1465_v20 = vpop.f32.mrf.mxu0  ;;  %v1495_v21 = vpop.f32.mrf.mxu1 }
  0xef   : > { %v2001_v22 = vadd.f32 %v1495_v21, %v1494_v19  ;;  %v1466_v1 = vadd.f32 %v1465_v20, %v1464_v18 }
  0xf0   : > { %v1467_v23 = vpop.f32.mrf.mxu0  ;;  %v1497_v25 = vpop.f32.mrf.mxu1 }
  0xf1   : > { %v815_v8 = vadd.f32 %v1466_v1, %v2028_v53 }
  0xf2   : > { %v1468_v26 = vpop.f32.mrf.mxu0  ;;  %v1498_v27 = vpop.f32.mrf.mxu1 }
  0xf3   : > { %v2003_v28 = vadd.f32 %v1498_v27, %v1497_v25  ;;  %v1469_v4 = vadd.f32 %v1468_v26, %v1467_v23 }
  0xf4   : > { %v1470_v29 = vpop.f32.mrf.mxu0  ;;  %v1500_v30 = vpop.f32.mrf.mxu1 }
  0xf5   : > { %v818_v12 = vadd.f32 %v1469_v4, %v2028_v53 }
  0xf6   : > { %v1471_v31 = vpop.f32.mrf.mxu0  ;;  %v1501_v32 = vpop.f32.mrf.mxu1 }
  0xf7   : > { %v2005_v24 = vadd.f32 %v1501_v32, %v1500_v30  ;;  %v1472_v16 = vadd.f32 %v1471_v31, %v1470_v29 }
  0xf8   : > { %v1473_v33 = vpop.f32.mrf.mxu0  ;;  %v1503_v34 = vpop.f32.mrf.mxu1 }
  0xf9   : > { %v823_v30 = vadd.f32 %v1472_v16, %v2028_v53 }
  0xfa   : > { %v1474_v35 = vpop.f32.mrf.mxu0  ;;  %v1504_v36 = vpop.f32.mrf.mxu1 }
  0xfb   : > { %v2007_v37 = vadd.f32 %v1504_v36, %v1503_v34  ;;  %v1475_v21 = vadd.f32 %v1474_v35, %v1473_v33 }
  0xfc   : > { %v2009_v38 = vpop.f32.mrf.mxu0  ;;  %v1506_v39 = vpop.f32.mrf.mxu1 }
  0xfd   : > { %v826_v33 = vadd.f32 %v1475_v21, %v2028_v53 }
  0xfe   : > { %v2011_v40 = vpop.f32.mrf.mxu0  ;;  %v1507_v41 = vpop.f32.mrf.mxu1 }
  0xff   : > { %v2013_v42 = vadd.f32 %v1507_v41, %v1506_v39 }
 0x100   : > { %v2015_v43 = vpop.f32.mrf.mxu0  ;;  %v1509_v44 = vpop.f32.mrf.mxu1 }
 0x102   : > { %v2017_v45 = vpop.f32.mrf.mxu0  ;;  %v1510_v46 = vpop.f32.mrf.mxu1 }
 0x103   : > { %v2019_v47 = vadd.f32 %v1510_v46, %v1509_v44  ;;  %v1478_v46 = vadd.f32 %v2011_v40, %v2009_v38 }
 0x104   : > { %v2021_v48 = vpop.f32.mrf.mxu0  ;;  %v1512_v49 = vpop.f32.mrf.mxu1 }
 0x106   : > { %v2023_v50 = vpop.f32.mrf.mxu0  ;;  %v1513_v51 = vpop.f32.mrf.mxu1 }
 0x107   : > { %v1514_v52 = vadd.f32 %v1513_v51, %v1512_v49 }
 0x108   : > { %v2030_v54 = vpop.f32.mrf.mxu0  ;;  %v1515_v55 = vpop.f32.mrf.mxu1 }
 0x109   : > { %v2033_v56 = vadd.f32 %v1514_v52, %v2028_v53 }
 0x10a   : > { %v2035_v57 = vpop.f32.mrf.mxu0  ;;  %v1516_v58 = vpop.f32.mrf.mxu1 }
 0x10b   : > { %v1517_v59 = vadd.f32 %v1516_v58, %v1515_v55  ;;  %v1481_v58 = vadd.f32 %v2017_v45, %v2015_v43  ;;  %v1484_v43 = vadd.f32 %v2023_v50, %v2021_v48  ;;  %v1487_v16 = vadd.f32 %v2035_v57, %v2030_v54 }
 0x10c   : > { %v2037_v60 = vpop.f32.mrf.mxu0  ;;  %v1534_v61 = vpop.f32.mrf.mxu1 }
 0x10d   : > { %v2040_v62 = vadd.f32 %v1517_v59, %v2028_v53  ;;  %v834_v40 = vadd.f32 %v1481_v58, %v2028_v53  ;;  %v839_v21 = vadd.f32 %v1484_v43, %v2028_v53  ;;  %v842_v50 = vadd.f32 %v1487_v16, %v2028_v53 }
 0x10e   : > { %v2042_v63 = vpop.f32.mrf.mxu0  ;;  %v1535_v0 = vpop.f32.mrf.mxu1 }
 0x10f   : > { %v1536_v5 = vadd.f32 %v1535_v0, %v1534_v61  ;;  %v1490_v54 = vadd.f32 %v2042_v63, %v2037_v60 }
 0x110   : > { %v2044_v2 = vpop.f32.mrf.mxu0  ;;  %v1537_v3 = vpop.f32.mrf.mxu1 }
 0x111   : > { %v920_v13 = vadd.f32 %v1536_v5, %v815_v8 }
 0x112   : > { %v2046_v6 = vpop.f32.mrf.mxu0  ;;  %v1538_v7 = vpop.f32.mrf.mxu1 }
 0x113   : > { %v1539_v9 = vadd.f32 %v1538_v7, %v1537_v3  ;;  %v831_v3 = vadd.f32 %v1478_v46, %v2028_v53 }
 0x114   : > { %v1540_v10 = vpop.f32.mrf.mxu1  ;;  %v1024_v11 = vpop.f32.mrf.mxu0 }
 0x115   : > { %v1025_v17 = vadd.f32 %v1024_v11, %v920_v13  ;;  %v923_v18 = vadd.f32 %v1539_v9, %v818_v12 }
 0x116   : > { %v1541_v14 = vpop.f32.mrf.mxu1  ;;  %v1611_v15 = vpop.f32.mrf.mxu0 }
 0x117   : > { %v1542_v23 = vadd.f32 %v1541_v14, %v1540_v10  ;;  %v1095_v32 = vmax.f32 %v1025_v17, 0.0 }
 0x118   : > { %v1543_v19 = vpop.f32.mrf.mxu1  ;;  %v1027_v20 = vpop.f32.mrf.mxu0 }
 0x119   : > { %v1028_v25 = vadd.f32 %v1027_v20, %v923_v18  ;;  %v928_v39 = vadd.f32 %v1542_v23, %v823_v30 }
 0x11a   : > { %v1544_v26 = vpop.f32.mrf.mxu1  ;;  %v1612_v27 = vpop.f32.mrf.mxu0 }
 0x11b   : > { %v1096_v34 = vmax.f32 %v1028_v25, 0.0  ;;  %v1545_v36 = vadd.f32 %v1544_v26, %v1543_v19 }
 0x11c   : > { %v1546_v29 = vpop.f32.mrf.mxu1  ;;  %v1032_v31 = vpop.f32.mrf.mxu0 }
 0x11d   : > { %v1398_v35 = vpack.c.bf16 %v1096_v34, %v1095_v32  ;;  %v1033_v49 = vadd.f32 %v1032_v31, %v928_v39  ;;  %v931_v51 = vadd.f32 %v1545_v36, %v826_v33 }
 0x11e   : > { %v1547_v41 = vpop.f32.mrf.mxu1  ;;  %v1615_v44 = vpop.f32.mrf.mxu0 }
 0x11f   : > { %1399 = vst [vmem:[%s2055_s22] sm:$0xff] %v1398_v35   ;;  %v1548_v59 = vadd.f32 %v1547_v41, %v1546_v29  ;;  %v1097_v4 = vmax.f32 %v1033_v49, 0.0  ;;  %v1493_v35 = vadd.f32 %v2046_v6, %v2044_v2  ;;  %v847_v49 = vadd.f32 %v1490_v54, %v2028_v53 }
 0x120   : > { %v1549_v52 = vpop.f32.mrf.mxu1  ;;  %v1035_v55 = vpop.f32.mrf.mxu0 }
 0x121   : > { %v1036_v61 = vadd.f32 %v1035_v55, %v931_v51  ;;  %v936_v10 = vadd.f32 %v1548_v59, %v831_v3  ;;  %v850_v63 = vadd.f32 %v1493_v35, %v2028_v53 }
 0x122   : > { %v1550_v0 = vpop.f32.mrf.mxu1  ;;  %v1616_v1 = vpop.f32.mrf.mxu0 }
 0x123   : > { %v1098_v5 = vmax.f32 %v1036_v61, 0.0  ;;  %v1551_v7 = vadd.f32 %v1550_v0, %v1549_v52 }
 0x124   : > { %v1552_v8 = vpop.f32.mrf.mxu1  ;;  %v1040_v38 = vpop.f32.mrf.mxu0 }
 0x125   : > { %v1403_v9 = vpack.c.bf16 %v1098_v5, %v1097_v4  ;;  %v1041_v45 = vadd.f32 %v1040_v38, %v936_v10  ;;  %v939_v13 = vadd.f32 %v1551_v7, %v834_v40  ;;  %v855_v40 = vadd.f32 %v2001_v22, %v2028_v53 }
 0x126   : > { %v1553_v11 = vpop.f32.mrf.mxu1  ;;  %v1619_v12 = vpop.f32.mrf.mxu0 }
 0x127   : > { %1440 = vst [vmem:[%s2055_s22 + $0x8] sm:$0xff] %v1403_v9   ;;  %v1554_v17 = vadd.f32 %v1553_v11, %v1552_v8  ;;  %v1099_v23 = vmax.f32 %v1041_v45, 0.0  ;;  %v858_v45 = vadd.f32 %v2003_v28, %v2028_v53 }
 0x128   : > { %v1555_v14 = vpop.f32.mrf.mxu1  ;;  %v1043_v15 = vpop.f32.mrf.mxu0 }
 0x129   : > { %v1044_v18 = vadd.f32 %v1043_v15, %v939_v13  ;;  %v944_v32 = vadd.f32 %v1554_v17, %v839_v21 }
 0x12a   : > { %v1556_v19 = vpop.f32.mrf.mxu1  ;;  %v1620_v20 = vpop.f32.mrf.mxu0 }
 0x12b   : > { %v1100_v25 = vmax.f32 %v1044_v18, 0.0  ;;  %v1557_v26 = vadd.f32 %v1556_v19, %v1555_v14 }
 0x12c   : > { %v1558_v27 = vpop.f32.mrf.mxu1  ;;  %v1048_v48 = vpop.f32.mrf.mxu0 }
 0x12d   : > { %v1408_v30 = vpack.c.bf16 %v1100_v25, %v1099_v23  ;;  %v1049_v57 = vadd.f32 %v1048_v48, %v944_v32  ;;  %v947_v29 = vadd.f32 %v1557_v26, %v842_v50  ;;  %v863_v26 = vadd.f32 %v2005_v24, %v2028_v53 }
 0x12e   : > { %v1559_v34 = vpop.f32.mrf.mxu1  ;;  %v1623_v36 = vpop.f32.mrf.mxu0  ;;  %v866_v32 = vadd.f32 %v2007_v37, %v2028_v53 }
 0x12f   : > { %1441 = vst [vmem:[%s2055_s22 + $0x10] sm:$0xff] %v1408_v30   ;;  %v1560_v39 = vadd.f32 %v1559_v34, %v1558_v27  ;;  %v1101_v51 = vmax.f32 %v1049_v57, 0.0 }
 0x130   : > { %v1561_v31 = vpop.f32.mrf.mxu1  ;;  %v1051_v33 = vpop.f32.mrf.mxu0 }
 0x131   : > { %v1052_v41 = vadd.f32 %v1051_v33, %v947_v29  ;;  %v952_v61 = vadd.f32 %v1560_v39, %v847_v49 }
 0x132   : > { %v1562_v44 = vpop.f32.mrf.mxu1  ;;  %v1624_v46 = vpop.f32.mrf.mxu0 }
 0x133   : > { %v1102_v52 = vmax.f32 %v1052_v41, 0.0  ;;  %v1563_v55 = vadd.f32 %v1562_v44, %v1561_v31  ;;  %v871_v46 = vadd.f32 %v2013_v42, %v2028_v53 }
 0x134   : > { %v1564_v58 = vpop.f32.mrf.mxu1  ;;  %v1056_v60 = vpop.f32.mrf.mxu0 }
 0x135   : > { %v1413_v59 = vpack.c.bf16 %v1102_v52, %v1101_v51  ;;  %v1057_v2 = vadd.f32 %v1056_v60, %v952_v61  ;;  %v955_v6 = vadd.f32 %v1563_v55, %v850_v63 }
 0x136   : > { %v1565_v0 = vpop.f32.mrf.mxu1  ;;  %v1627_v1 = vpop.f32.mrf.mxu0 }
 0x137   : > { %1442 = vst [vmem:[%s2055_s22 + $0x18] sm:$0xff] %v1413_v59   ;;  %v1566_v5 = vadd.f32 %v1565_v0, %v1564_v58  ;;  %v1103_v9 = vmax.f32 %v1057_v2, 0.0  ;;  %v874_v58 = vadd.f32 %v2019_v47, %v2028_v53 }
 0x138   : > { %v1567_v3 = vpop.f32.mrf.mxu1  ;;  %v1059_v4 = vpop.f32.mrf.mxu0 }
 0x139   : > { %v1060_v7 = vadd.f32 %v1059_v4, %v955_v6  ;;  %v960_v14 = vadd.f32 %v1566_v5, %v855_v40 }
 0x13a   : > { %v1568_v8 = vpop.f32.mrf.mxu1  ;;  %v1628_v38 = vpop.f32.mrf.mxu0 }
 0x13b   : > { %v1104_v10 = vmax.f32 %v1060_v7, 0.0  ;;  %v1569_v11 = vadd.f32 %v1568_v8, %v1567_v3 }
 0x13c   : > { %v1570_v12 = vpop.f32.mrf.mxu1  ;;  %v1064_v43 = vpop.f32.mrf.mxu0 }
 0x13d   : > { %v1418_v13 = vpack.c.bf16 %v1104_v10, %v1103_v9  ;;  %v1065_v17 = vadd.f32 %v1064_v43, %v960_v14  ;;  %v963_v18 = vadd.f32 %v1569_v11, %v858_v45 }
 0x13e   : > { %v1571_v15 = vpop.f32.mrf.mxu1  ;;  %v1631_v16 = vpop.f32.mrf.mxu0 }
 0x13f   : > { %1443 = vst [vmem:[%s2055_s22 + $0x20] sm:$0xff] %v1418_v13   ;;  %v1572_v21 = vadd.f32 %v1571_v15, %v1570_v12  ;;  %v1105_v27 = vmax.f32 %v1065_v17, 0.0 }
 0x140   : > { %v1573_v19 = vpop.f32.mrf.mxu1  ;;  %v1067_v20 = vpop.f32.mrf.mxu0 }
 0x141   : > { %v1068_v22 = vadd.f32 %v1067_v20, %v963_v18  ;;  %v968_v36 = vadd.f32 %v1572_v21, %v863_v26 }
 0x142   : > { %v1574_v23 = vpop.f32.mrf.mxu1  ;;  %v1632_v25 = vpop.f32.mrf.mxu0 }
 0x143   : > { %v1106_v48 = vmax.f32 %v1068_v22, 0.0  ;;  %v1575_v28 = vadd.f32 %v1574_v23, %v1573_v19 }
 0x144   : > { %v1576_v50 = vpop.f32.mrf.mxu1  ;;  %v1072_v30 = vpop.f32.mrf.mxu0 }
 0x145   : > { %v1423_v34 = vpack.c.bf16 %v1106_v48, %v1105_v27  ;;  %v1073_v29 = vadd.f32 %v1072_v30, %v968_v36  ;;  %v971_v31 = vadd.f32 %v1575_v28, %v866_v32 }
 0x146   : > { %v1577_v54 = vpop.f32.mrf.mxu1  ;;  %v1635_v57 = vpop.f32.mrf.mxu0 }
 0x147   : > { %1444 = vst [vmem:[%s2055_s22 + $0x28] sm:$0xff] %v1423_v34   ;;  %v1578_v39 = vadd.f32 %v1577_v54, %v1576_v50  ;;  %v1107_v49 = vmax.f32 %v1073_v29, 0.0 }
 0x148   : > { %v1579_v33 = vpop.f32.mrf.mxu1  ;;  %v1075_v35 = vpop.f32.mrf.mxu0 }
 0x149   : > { %v1076_v24 = vadd.f32 %v1075_v35, %v971_v31  ;;  %v976_v63 = vadd.f32 %v1578_v39, %v871_v46 }
 0x14a   : > { %v1580_v41 = vpop.f32.mrf.mxu1  ;;  %v1636_v44 = vpop.f32.mrf.mxu0 }
 0x14b   : > { %v1108_v51 = vmax.f32 %v1076_v24, 0.0  ;;  %v1581_v37 = vadd.f32 %v1580_v41, %v1579_v33 }
 0x14c   : > { %v1582_v52 = vpop.f32.mrf.mxu1  ;;  %v1080_v55 = vpop.f32.mrf.mxu0 }
 0x14d   : > { %v1428_v60 = vpack.c.bf16 %v1108_v51, %v1107_v49  ;;  %v1081_v0 = vadd.f32 %v1080_v55, %v976_v63  ;;  %v979_v1 = vadd.f32 %v1581_v37, %v874_v58 }
 0x14e   : > { %v1583_v59 = vpop.f32.mrf.mxu1  ;;  %v1639_v61 = vpop.f32.mrf.mxu0 }
 0x14f   : > { %1445 = vst [vmem:[%s2055_s22 + $0x30] sm:$0xff] %v1428_v60   ;;  %v1584_v3 = vadd.f32 %v1583_v59, %v1582_v52  ;;  %v1109_v7 = vmax.f32 %v1081_v0, 0.0 }
 0x150   : > { %v1585_v2 = vpop.f32.mrf.mxu1  ;;  %v1083_v6 = vpop.f32.mrf.mxu0 }
 0x151   : > { %v1084_v42 = vadd.f32 %v1083_v6, %v979_v1  ;;  %v984_v53 = vadd.f32 %v1584_v3, %v2033_v56 }
 0x152   : > { %v1586_v4 = vpop.f32.mrf.mxu1  ;;  %v1640_v5 = vpop.f32.mrf.mxu0 }
 0x153   : > { %v1110_v8 = vmax.f32 %v1084_v42, 0.0  ;;  %v1587_v38 = vadd.f32 %v1586_v4, %v1585_v2 }
 0x154   : > { %v1088_v40 = vpop.f32.mrf.mxu0 }
 0x155   : > { %v1433_v47 = vpack.c.bf16 %v1110_v8, %v1109_v7  ;;  %v1089_v10 = vadd.f32 %v1088_v40, %v984_v53  ;;  %v987_v11 = vadd.f32 %v1587_v38, %v2040_v62 }
 0x156   : > { %v1643_v9 = vpop.f32.mrf.mxu0 }
 0x157   : > { %1446 = vst [vmem:[%s2055_s22 + $0x38] sm:$0xff] %v1433_v47   ;;  %v1111_v13 = vmax.f32 %v1089_v10, 0.0 }
 0x158   : > { %v1091_v12 = vpop.f32.mrf.mxu0 }
 0x159   : > { %v1092_v43 = vadd.f32 %v1091_v12, %v987_v11 }
 0x15a   : > { %v1644_v45 = vpop.f32.mrf.mxu0 }
 0x15b   : > { %v1112_v14 = vmax.f32 %v1092_v43, 0.0 }
 0x15d   : > { %v1438_v15 = vpack.c.bf16 %v1112_v14, %v1111_v13 }
 0x15f   : > { %1447 = vst [vmem:[%s2055_s22 + $0x40] sm:$0xff] %v1438_v15  }
 0x160 PF: > { %s13_s12 = sadd.s32 1, %s1777_s12  }
 0x161   : > { %p10_p4 = scmp.ge.s32.totalorder %s13_s12, 4  }
 0x163   :  { %12 = sbr.rel (!%p10_p4) target bundleno = 1 (0x1), region = 62 }

// kernel: cnn_policy_net_forward.8
= control target key start
LH: loop header
LB: loop body
LE: loop exit
PB: predicated region body
PF: predicated region fallthrough
CT: control target
= control target key end

     0   :  { %vm1822_vm0 = vmmov 0   ;;  %s2286_s1 = inlined_call_operand.vmem [shape: bf16[1152,128], index: 1, kind: input, shape index: {}]   ;;  %s2287_s0 = inlined_call_operand.vmem [shape: bf16[72,1152], index: 0, kind: input, shape index: {}]   ;;  %s2288_s2 = inlined_call_operand.vmem [shape: f32[1,128], index: 2, kind: input, shape index: {}]   ;;  %s2289_s3 = inlined_call_operand.vmem [shape: bf16[72,128], index: 3, kind: output, shape index: {}]  }
   0x1   :  { %v1688_v0 = vld [vmem:[%s2286_s1 + $0x78] sm:$0xff]   ;;  %v1692_v4 = vld [vmem:[%s2286_s1 + $0x70] sm:$0xff]   ;;  %v1696_v8 = vld [vmem:[%s2286_s1 + $0x68] sm:$0xff]  }
   0x2   :  { %v1689_v1 = vld [vmem:[%s2286_s1 + $0xf8] sm:$0xff]   ;;  %1437 = vmatprep.subr.bf16.mxu0 %v1688_v0  ;;  %v1693_v5 = vld [vmem:[%s2286_s1 + $0xf0] sm:$0xff]   ;;  %v1697_v9 = vld [vmem:[%s2286_s1 + $0xe8] sm:$0xff]  }
   0x3   :  { %v1690_v2 = vld [vmem:[%s2286_s1 + $0x38] sm:$0xff]   ;;  %1483 = vmatprep.subr.bf16.mxu1 %v1689_v1  ;;  %v1694_v6 = vld [vmem:[%s2286_s1 + $0x30] sm:$0xff]   ;;  %v1698_v10 = vld [vmem:[%s2286_s1 + $0x28] sm:$0xff]  }
   0x4   :  { %v1691_v3 = vld [vmem:[%s2286_s1 + $0xb8] sm:$0xff]   ;;  %1438 = vmatpush3.bf16.msra.mxu0 %v1690_v2  ;;  %v1695_v7 = vld [vmem:[%s2286_s1 + $0xb0] sm:$0xff]   ;;  %v1699_v11 = vld [vmem:[%s2286_s1 + $0xa8] sm:$0xff]  }
   0x5   :  { %1484 = vmatpush3.bf16.msra.mxu1 %v1691_v3  ;;  %1439 = vmatprep.subr.bf16.mxu0 %v1692_v4  ;;  %v1700_v12 = vld [vmem:[%s2286_s1 + $0x60] sm:$0xff]   ;;  %v1704_v16 = vld [vmem:[%s2286_s1 + $0x58] sm:$0xff]   ;;  %v1708_v20 = vld [vmem:[%s2286_s1 + $0x50] sm:$0xff]  }
   0x6   :  { %1485 = vmatprep.subr.bf16.mxu1 %v1693_v5  ;;  %v1701_v13 = vld [vmem:[%s2286_s1 + $0xe0] sm:$0xff]   ;;  %v1705_v17 = vld [vmem:[%s2286_s1 + $0xd8] sm:$0xff]   ;;  %v1709_v21 = vld [vmem:[%s2286_s1 + $0xd0] sm:$0xff]  }
   0x7   :  { %v1702_v14 = vld [vmem:[%s2286_s1 + $0x20] sm:$0xff]   ;;  %v1706_v18 = vld [vmem:[%s2286_s1 + $0x18] sm:$0xff]   ;;  %v1710_v22 = vld [vmem:[%s2286_s1 + $0x10] sm:$0xff]  }
   0x8   :  { %1440 = vmatpush3.bf16.msra.mxu0 %v1694_v6  ;;  %v1703_v15 = vld [vmem:[%s2286_s1 + $0xa0] sm:$0xff]   ;;  %v1707_v19 = vld [vmem:[%s2286_s1 + $0x98] sm:$0xff]   ;;  %v1711_v23 = vld [vmem:[%s2286_s1 + $0x90] sm:$0xff]  }
   0x9   :  { %1486 = vmatpush3.bf16.msra.mxu1 %v1695_v7  ;;  %1441 = vmatprep.subr.bf16.mxu0 %v1696_v8  ;;  %v1712_v24 = vld [vmem:[%s2286_s1 + $0x48] sm:$0xff]   ;;  %v1716_v28 = vld [vmem:[%s2286_s1 + $0x40] sm:$0xff]   ;;  %v1726_v36 = vld [vmem:[%s2286_s1 + $0x178] sm:$0xff]  }
   0xa   :  { %1487 = vmatprep.subr.bf16.mxu1 %v1697_v9  ;;  %v1713_v25 = vld [vmem:[%s2286_s1 + $0xc8] sm:$0xff]   ;;  %v1717_v29 = vld [vmem:[%s2286_s1 + $0xc0] sm:$0xff]   ;;  %v1727_v37 = vld [vmem:[%s2286_s1 + $0x138] sm:$0xff]  }
   0xb   :  { %v1714_v26 = vld [vmem:[%s2286_s1 + $0x8] sm:$0xff]   ;;  %v1718_v30 = vld [vmem:[%s2286_s1] sm:$0xff]   ;;  %v1728_v38 = vld [vmem:[%s2286_s1 + $0x170] sm:$0xff]  }
   0xc   :  { %1442 = vmatpush3.bf16.msra.mxu0 %v1698_v10  ;;  %v1715_v27 = vld [vmem:[%s2286_s1 + $0x88] sm:$0xff]   ;;  %v1719_v31 = vld [vmem:[%s2286_s1 + $0x80] sm:$0xff]   ;;  %v1729_v39 = vld [vmem:[%s2286_s1 + $0x130] sm:$0xff]  }
   0xd   :  { %1488 = vmatpush3.bf16.msra.mxu1 %v1699_v11  ;;  %1443 = vmatprep.subr.bf16.mxu0 %v1700_v12  ;;  %v1720_v32 = vld [vmem:[%s2287_s0] ss:$36 sps:$4 sm:$0xff]   ;;  %v1723_v34 = vld [vmem:[%s2287_s0 + $0x8] ss:$36 sps:$4 sm:$0xff]   ;;  %v1732_v41 = vld [vmem:[%s2287_s0 + $0x54] ss:$36 sps:$4 sm:$0xff]  }
   0xe   :  { %1489 = vmatprep.subr.bf16.mxu1 %v1701_v13  ;;  %v1722_v33 = vld [vmem:[%s2287_s0 + $0x4] ss:$36 sps:$4 sm:$0xff]   ;;  %v1725_v35 = vld [vmem:[%s2287_s0 + $0xc] ss:$36 sps:$4 sm:$0xff]   ;;  %v1736_v44 = vld [vmem:[%s2286_s1 + $0x1f8] sm:$0xff]  }
   0xf   :  { %891 = vmatprep.mubr.bf16.mxu0 %v1722_v33  ;;  %963 = vmatprep.mubr.bf16.mxu1 %v1725_v35  ;;  %v1730_v40 = vld [vmem:[%s2287_s0 + $0x4c] ss:$36 sps:$4 sm:$0xff]   ;;  %v1737_v45 = vld [vmem:[%s2286_s1 + $0x1b8] sm:$0xff]   ;;  %v1746_v52 = vld [vmem:[%s2286_s1 + $0x160] sm:$0xff]  }
  0x10   :  { %1444 = vmatpush3.bf16.msra.mxu0 %v1702_v14  ;;  %v1734_v42 = vld [vmem:[%s2287_s0 + $0x48] ss:$36 sps:$4 sm:$0xff]   ;;  %v1735_v43 = vld [vmem:[%s2287_s0 + $0x50] ss:$36 sps:$4 sm:$0xff]   ;;  %v1744_v51 = vld [vmem:[%s2287_s0 + $0x9c] ss:$36 sps:$4 sm:$0xff]  }
  0x11   :  { %1490 = vmatpush3.bf16.msra.mxu1 %v1703_v15  ;;  %1445 = vmatprep.subr.bf16.mxu0 %v1704_v16  ;;  %v1738_v46 = vld [vmem:[%s2286_s1 + $0x168] sm:$0xff]   ;;  %v1740_v48 = vld [vmem:[%s2286_s1 + $0x1f0] sm:$0xff]   ;;  %v1748_v54 = vld [vmem:[%s2287_s0 + $0x98] ss:$36 sps:$4 sm:$0xff]  }
  0x12   :  { %1491 = vmatprep.subr.bf16.mxu1 %v1705_v17  ;;  %v1739_v47 = vld [vmem:[%s2286_s1 + $0x128] sm:$0xff]   ;;  %v1741_v49 = vld [vmem:[%s2286_s1 + $0x1b0] sm:$0xff]   ;;  %v1749_v55 = vld [vmem:[%s2286_s1 + $0x120] sm:$0xff]  }
  0x13   :  { %v1742_v50 = vld [vmem:[%s2287_s0 + $0x94] ss:$36 sps:$4 sm:$0xff]   ;;  %v1750_v56 = vld [vmem:[%s2286_s1 + $0x1e8] sm:$0xff]   ;;  %v1753_v59 = vld [vmem:[%s2286_s1 + $0x1e0] sm:$0xff]  }
  0x14   :  { %1446 = vmatpush3.bf16.msra.mxu0 %v1706_v18  ;;  %v1747_v53 = vld [vmem:[%s2287_s0 + $0x90] ss:$36 sps:$4 sm:$0xff]   ;;  %v1751_v57 = vld [vmem:[%s2286_s1 + $0x1a8] sm:$0xff]   ;;  %v1752_v58 = vld [vmem:[%s2286_s1 + $0x158] sm:$0xff]  }
  0x15   :  { %1492 = vmatpush3.bf16.msra.mxu1 %v1707_v19  ;;  %1447 = vmatprep.subr.bf16.mxu0 %v1708_v20  ;;  %v1754_v60 = vld [vmem:[%s2286_s1 + $0x118] sm:$0xff]   ;;  %v1755_v61 = vld [vmem:[%s2286_s1 + $0x1a0] sm:$0xff]   ;;  %v1763_v3 = vld [vmem:[%s2286_s1 + $0x150] sm:$0xff]  }
  0x16   :  { %1493 = vmatprep.subr.bf16.mxu1 %v1709_v21  ;;  %v1756_v62 = vld [vmem:[%s2287_s0 + $0xdc] ss:$36 sps:$4 sm:$0xff]   ;;  %v1758_v63 = vld [vmem:[%s2287_s0 + $0xe4] ss:$36 sps:$4 sm:$0xff]   ;;  %v1765_v5 = vld [vmem:[%s2286_s1 + $0x110] sm:$0xff]  }
  0x17   :  { %v1760_v0 = vld [vmem:[%s2287_s0 + $0xd8] ss:$36 sps:$4 sm:$0xff]   ;;  %v1761_v1 = vld [vmem:[%s2287_s0 + $0xe0] ss:$36 sps:$4 sm:$0xff]   ;;  %v1766_v6 = vld [vmem:[%s2286_s1 + $0x1d0] sm:$0xff]  }
  0x18   :  { %1448 = vmatpush3.bf16.msra.mxu0 %v1710_v22  ;;  %v1762_v2 = vld [vmem:[%s2286_s1 + $0x1d8] sm:$0xff]   ;;  %v1767_v7 = vld [vmem:[%s2286_s1 + $0x190] sm:$0xff]   ;;  %v1768_v8 = vld [vmem:[%s2286_s1 + $0x148] sm:$0xff]  }
  0x19   :  { %1494 = vmatpush3.bf16.msra.mxu1 %v1711_v23  ;;  %1449 = vmatprep.subr.bf16.mxu0 %v1712_v24  ;;  %v1764_v4 = vld [vmem:[%s2286_s1 + $0x198] sm:$0xff]   ;;  %v55_v9 = vld [vmem:[%s2287_s0 + $0x120] sm:$0xff]  ;;  %v56_v11 = vld [vmem:[%s2287_s0 + $0x128] sm:$0xff]  ;;  %v1821_v24 = vmov 0.0  }
  0x1a   :  { %1495 = vmatprep.subr.bf16.mxu1 %v1713_v25  ;;  %v1316_v10 = vcombine.high %v55_v9, %v55_v9  ;;  %v1315_v12 = vcombine.low %v55_v9, %v55_v9  ;;  %v1318_v13 = vcombine.high %v56_v11, %v56_v11  ;;  %v1771_v14 = vld [vmem:[%s2286_s1 + $0x108] sm:$0xff]   ;;  %v1317_v15 = vcombine.low %v56_v11, %v56_v11  ;;  %v1776_v18 = vld [vmem:[%s2286_s1 + $0x140] sm:$0xff]   ;;  %v1780_v22 = vld [vmem:[%s2287_s0 + $0x10] ss:$36 sps:$4 sm:$0xff]  }
  0x1b   :  { %v1774_v16 = vld [vmem:[%s2286_s1 + $0x1c8] sm:$0xff]   ;;  %v1777_v19 = vld [vmem:[%s2286_s1 + $0x100] sm:$0xff]   ;;  %v1782_v23 = vld [vmem:[%s2287_s0 + $0x14] ss:$36 sps:$4 sm:$0xff]  }
  0x1c   :  { %1450 = vmatpush3.bf16.msra.mxu0 %v1714_v26  ;;  %v1775_v17 = vld [vmem:[%s2286_s1 + $0x188] sm:$0xff]   ;;  %v1778_v20 = vld [vmem:[%s2286_s1 + $0x1c0] sm:$0xff]   ;;  %v1783_v25 = vld [vmem:[%s2287_s0 + $0x18] ss:$36 sps:$4 sm:$0xff]  }
  0x1d   :  { %1496 = vmatpush3.bf16.msra.mxu1 %v1715_v27  ;;  %1451 = vmatprep.subr.bf16.mxu0 %v1716_v28  ;;  %v1779_v21 = vld [vmem:[%s2286_s1 + $0x180] sm:$0xff]   ;;  %v1786_v27 = vld [vmem:[%s2286_s1 + $0x238] sm:$0xff]   ;;  %v1787_v28 = vld [vmem:[%s2286_s1 + $0x230] sm:$0xff]  }
  0x1e   :  { %1497 = vmatprep.subr.bf16.mxu1 %v1717_v29  ;;  %v1785_v26 = vld [vmem:[%s2287_s0 + $0x1c] ss:$36 sps:$4 sm:$0xff]   ;;  %v1794_v33 = vld [vmem:[%s2286_s1 + $0x228] sm:$0xff]  }
  0x1f   :  { %v1788_v29 = vld [vmem:[%s2287_s0 + $0x5c] ss:$36 sps:$4 sm:$0xff]   ;;  %v1797_v35 = vld [vmem:[%s2287_s0 + $0xac] ss:$36 sps:$4 sm:$0xff]  }
  0x20   :  { %1452 = vmatpush3.bf16.msra.mxu0 %v1718_v30  ;;  %v1790_v30 = vld [vmem:[%s2287_s0 + $0x64] ss:$36 sps:$4 sm:$0xff]  }
  0x21   :  { %1498 = vmatpush3.bf16.msra.mxu1 %v1719_v31  ;;  %1529 = vmatprep.subr.bf16.mxu0 %v1726_v36  ;;  %v1792_v31 = vld [vmem:[%s2287_s0 + $0x58] ss:$36 sps:$4 sm:$0xff]   ;;  %v1801_v36 = vld [vmem:[%s2286_s1 + $0x220] sm:$0xff]  }
  0x22   :  { %1575 = vmatprep.subr.bf16.mxu1 %v1736_v44  ;;  %v58_v44 = vld [vmem:[%s2287_s0 + $0x138] sm:$0xff] }
  0x23   :  { %892 = vmatmul.mubr.bf16.vlgmr.msra.gmra.mxu0 %v1720_v32  ;;  %v1793_v32 = vld [vmem:[%s2287_s0 + $0x60] ss:$36 sps:$4 sm:$0xff]  }
  0x24   :  { %964 = vmatmul.mubr.bf16.vlgmr.msra.gmra.mxu1 %v1723_v34  ;;  %1530 = vmatpush3.bf16.msra.mxu0 %v1727_v37  ;;  %v1795_v34 = vld [vmem:[%s2287_s0 + $0xa4] ss:$36 sps:$4 sm:$0xff]  }
  0x25   :  { %1531 = vmatprep.subr.bf16.mxu0 %v1728_v38  ;;  %899 = vmatprep.mubr.bf16.mxu0 %v1730_v40  ;;  %v1799_v37 = vld [vmem:[%s2287_s0 + $0xa0] ss:$36 sps:$4 sm:$0xff]   ;;  %v1800_v38 = vld [vmem:[%s2287_s0 + $0xa8] ss:$36 sps:$4 sm:$0xff]  }
  0x26   :  { %971 = vmatprep.mubr.bf16.mxu1 %v1732_v41  ;;  %1576 = vmatpush3.bf16.msra.mxu1 %v1737_v45  ;;  %v1803_v40 = vld [vmem:[%s2287_s0 + $0xec] ss:$36 sps:$4 sm:$0xff]   ;;  %v1805_v41 = vld [vmem:[%s2287_s0 + $0xf4] ss:$36 sps:$4 sm:$0xff]  }
  0x27   :  { %1577 = vmatprep.subr.bf16.mxu1 %v1740_v48  ;;  %v1807_v45 = vld [vmem:[%s2287_s0 + $0xe8] ss:$36 sps:$4 sm:$0xff]   ;;  %v1322_v48 = vcombine.high %v58_v44, %v58_v44 }
  0x28   :  { %1532 = vmatpush3.bf16.msra.mxu0 %v1729_v39  ;;  %v1802_v39 = vld [vmem:[%s2286_s1 + $0x218] sm:$0xff]  }
  0x29   :  { %1533 = vmatprep.subr.bf16.mxu0 %v1738_v46  ;;  %v1808_v46 = vld [vmem:[%s2287_s0 + $0xf0] ss:$36 sps:$4 sm:$0xff]  }
  0x2a   :  { %1578 = vmatpush3.bf16.msra.mxu1 %v1741_v49  ;;  %v1812_v49 = vld [vmem:[%s2286_s1 + $0x208] sm:$0xff]  }
  0x2b   :  { %900 = vmatmul.mubr.bf16.gmra.mxu0 %v1734_v42  ;;  %1579 = vmatprep.subr.bf16.mxu1 %v1750_v56  ;;  %v1809_v42 = vld [vmem:[%s2286_s1 + $0x210] sm:$0xff]   ;;  %v1819_v56 = vld [vmem:[%s2287_s0 + $0x140] ss:$0 sps:$4 sm:$0xff]  }
  0x2c   :  { %972 = vmatmul.mubr.bf16.gmra.mxu1 %v1735_v43  ;;  %1534 = vmatpush3.bf16.msra.mxu0 %v1739_v47  ;;  %v57_v43 = vld [vmem:[%s2287_s0 + $0x130] sm:$0xff] }
  0x2d   :  { %907 = vmatprep.mubr.bf16.mxu0 %v1742_v50  ;;  %979 = vmatprep.mubr.bf16.mxu1 %v1744_v51  ;;  %v1320_v47 = vcombine.high %v57_v43, %v57_v43  ;;  %v1815_v50 = vld [vmem:[%s2286_s1 + $0x200] sm:$0xff]   ;;  %v1319_v51 = vcombine.low %v57_v43, %v57_v43 }
  0x2e   :  { %1535 = vmatprep.subr.bf16.mxu0 %v1746_v52  ;;  %1580 = vmatpush3.bf16.msra.mxu1 %v1751_v57  ;;  %v1321_v52 = vcombine.low %v58_v44, %v58_v44  ;;  %v1820_v57 = vld [vmem:[%s2287_s0 + $0xb0] ss:$36 sps:$4 sm:$0xff]  }
  0x2f   :  { %1581 = vmatprep.subr.bf16.mxu1 %v1753_v59 }
  0x30   :  { %1536 = vmatpush3.bf16.msra.mxu0 %v1749_v55  ;;  %v1818_v55 = vld [vmem:[%s2287_s0 + $0x68] ss:$36 sps:$4 sm:$0xff]  }
  0x31   :  { %1537 = vmatprep.subr.bf16.mxu0 %v1752_v58 }
  0x32   :  { %1582 = vmatpush3.bf16.msra.mxu1 %v1755_v61 }
  0x33   :  { %908 = vmatmul.mubr.bf16.gmra.mxu0 %v1747_v53  ;;  %1583 = vmatprep.subr.bf16.mxu1 %v1762_v2  ;;  %v1816_v53 = vld [vmem:[%s2287_s0 + $0x20] ss:$36 sps:$4 sm:$0xff]  }
  0x34   :  { %980 = vmatmul.mubr.bf16.gmra.mxu1 %v1748_v54  ;;  %1538 = vmatpush3.bf16.msra.mxu0 %v1754_v60  ;;  %v1817_v54 = vld [vmem:[%s2287_s0 + $0xf8] ss:$36 sps:$4 sm:$0xff]   ;;  %v2206_v60 = vld [vmem:[%s2288_s2] ss:$0 sm:$0xff] }
  0x35   :  { %915 = vmatprep.mubr.bf16.mxu0 %v1756_v62  ;;  %987 = vmatprep.mubr.bf16.mxu1 %v1758_v63 }
  0x36   :  { %1539 = vmatprep.subr.bf16.mxu0 %v1763_v3  ;;  %1584 = vmatpush3.bf16.msra.mxu1 %v1764_v4 }
  0x37   :  { %1585 = vmatprep.subr.bf16.mxu1 %v1766_v6 }
  0x38   :  { %1540 = vmatpush3.bf16.msra.mxu0 %v1765_v5 }
  0x39   :  { %1541 = vmatprep.subr.bf16.mxu0 %v1768_v8 }
  0x3a   :  { %1586 = vmatpush3.bf16.msra.mxu1 %v1767_v7 }
  0x3b   :  { %916 = vmatmul.mubr.bf16.gmra.mxu0 %v1760_v0  ;;  %1587 = vmatprep.subr.bf16.mxu1 %v1774_v16 }
  0x3c   :  { %988 = vmatmul.mubr.bf16.gmra.mxu1 %v1761_v1  ;;  %923 = vmatprep.mubr.bf16.mxu0 %v1316_v10 }
  0x3d   :  { %995 = vmatprep.mubr.bf16.mxu1 %v1318_v13  ;;  %1542 = vmatpush3.bf16.msra.mxu0 %v1771_v14 }
  0x3e   :  { %1588 = vmatpush3.bf16.msra.mxu1 %v1775_v17  ;;  %1543 = vmatprep.subr.bf16.mxu0 %v1776_v18 }
  0x3f   :  { %1589 = vmatprep.subr.bf16.mxu1 %v1778_v20 }
  0x41   :  { %1544 = vmatpush3.bf16.msra.mxu0 %v1777_v19 }
  0x42   :  { %1634 = vmatprep.subr.bf16.mxu0 %v1821_v24  ;;  %1590 = vmatpush3.bf16.msra.mxu1 %v1779_v21 }
  0x43   :  { %924 = vmatmul.mubr.bf16.gmra.mxu0 %v1315_v12  ;;  %1670 = vmatprep.subr.bf16.mxu1 %v1821_v24 }
  0x44   :  { %996 = vmatmul.mubr.bf16.gmra.mxu1 %v1317_v15  ;;  %1035 = vmatprep.mubr.bf16.mxu0 %v1782_v23 }
  0x45   :  { %1107 = vmatprep.mubr.bf16.mxu1 %v1785_v26 }
  0x4b   :  { %1036 = vmatmul.mubr.bf16.vlgmr.msra.gmra.mxu0 %v1780_v22 }
  0x4c   :  { %1108 = vmatmul.mubr.bf16.vlgmr.msra.gmra.mxu1 %v1783_v25  ;;  %1635 = vmatpush3.bf16.msra.mxu0 %v1786_v27 }
  0x4d   :  { %1636 = vmatprep.subr.bf16.mxu0 %v1821_v24  ;;  %1043 = vmatprep.mubr.bf16.mxu0 %v1788_v29 }
  0x4e   :  { %1115 = vmatprep.mubr.bf16.mxu1 %v1790_v30  ;;  %1678 = vmatpush3.bf16.msra.mxu1 %v1786_v27 }
  0x4f   :  { %1671 = vmatprep.subr.bf16.mxu1 %v1821_v24 }
  0x50   :  { %1637 = vmatpush3.bf16.msra.mxu0 %v1787_v28 }
  0x51   :  { %1638 = vmatprep.subr.bf16.mxu0 %v1821_v24 }
  0x52   :  { %1679 = vmatpush3.bf16.msra.mxu1 %v1787_v28 }
  0x53   :  { %1044 = vmatmul.mubr.bf16.gmra.mxu0 %v1792_v31  ;;  %1672 = vmatprep.subr.bf16.mxu1 %v1821_v24 }
  0x54   :  { %1116 = vmatmul.mubr.bf16.gmra.mxu1 %v1793_v32  ;;  %1639 = vmatpush3.bf16.msra.mxu0 %v1794_v33 }
  0x55   :  { %1051 = vmatprep.mubr.bf16.mxu0 %v1795_v34  ;;  %1123 = vmatprep.mubr.bf16.mxu1 %v1797_v35 }
  0x56   :  { %1640 = vmatprep.subr.bf16.mxu0 %v1821_v24  ;;  %1680 = vmatpush3.bf16.msra.mxu1 %v1794_v33 }
  0x57   :  { %1673 = vmatprep.subr.bf16.mxu1 %v1821_v24 }
  0x58   :  { %1641 = vmatpush3.bf16.msra.mxu0 %v1801_v36 }
  0x59   :  { %1642 = vmatprep.subr.bf16.mxu0 %v1821_v24 }
  0x5a   :  { %1681 = vmatpush3.bf16.msra.mxu1 %v1801_v36 }
  0x5b   :  { %1052 = vmatmul.mubr.bf16.gmra.mxu0 %v1799_v37  ;;  %1674 = vmatprep.subr.bf16.mxu1 %v1821_v24 }
  0x5c   :  { %1124 = vmatmul.mubr.bf16.gmra.mxu1 %v1800_v38  ;;  %1643 = vmatpush3.bf16.msra.mxu0 %v1802_v39 }
  0x5d   :  { %1059 = vmatprep.mubr.bf16.mxu0 %v1803_v40  ;;  %1131 = vmatprep.mubr.bf16.mxu1 %v1805_v41 }
  0x5e   :  { %1682 = vmatpush3.bf16.msra.mxu1 %v1802_v39  ;;  %1644 = vmatprep.subr.bf16.mxu0 %v1821_v24 }
  0x5f   :  { %1675 = vmatprep.subr.bf16.mxu1 %v1821_v24 }
  0x60   :  { %1645 = vmatpush3.bf16.msra.mxu0 %v1809_v42 }
  0x61   :  { %1646 = vmatprep.subr.bf16.mxu0 %v1821_v24 }
  0x62   :  { %1683 = vmatpush3.bf16.msra.mxu1 %v1809_v42 }
  0x63   :  { %1060 = vmatmul.mubr.bf16.gmra.mxu0 %v1807_v45  ;;  %1676 = vmatprep.subr.bf16.mxu1 %v1821_v24 }
  0x64   :  { %1132 = vmatmul.mubr.bf16.gmra.mxu1 %v1808_v46  ;;  %1067 = vmatprep.mubr.bf16.mxu0 %v1320_v47 }
  0x65   :  { %1139 = vmatprep.mubr.bf16.mxu1 %v1322_v48  ;;  %1647 = vmatpush3.bf16.msra.mxu0 %v1812_v49 }
  0x66   :  { %1684 = vmatpush3.bf16.msra.mxu1 %v1812_v49  ;;  %1648 = vmatprep.subr.bf16.mxu0 %v1821_v24 }
  0x67   :  { %1677 = vmatprep.subr.bf16.mxu1 %v1821_v24 }
  0x69   :  { %1649 = vmatpush3.bf16.msra.mxu0 %v1815_v50 }
  0x6a   :  { %1685 = vmatpush3.bf16.msra.mxu1 %v1815_v50 }
  0x6b   :  { %1068 = vmatmul.mubr.bf16.gmra.mxu0 %v1319_v51 }
  0x6c   :  { %1140 = vmatmul.mubr.bf16.gmra.mxu1 %v1321_v52  ;;  %1650 = vmatprep.mubr.msk.bf16.mxu0 %vm1822_vm0, %v1821_v24 }
  0x6d   :  { %1662 = vmatprep.mubr.msk.bf16.mxu1 %vm1822_vm0, %v1821_v24 }
  0x73   :  { %1651 = vmatmul.mubr.bf16.vlgmr.msra.gmra.mxu0 %v1816_v53 }
  0x74   :  { %1663 = vmatmul.mubr.bf16.vlgmr.msra.gmra.mxu1 %v1817_v54  ;;  %1654 = vmatprep.mubr.msk.bf16.mxu0 %vm1822_vm0, %v1821_v24 }
  0x75   :  { %1666 = vmatprep.mubr.msk.bf16.mxu1 %vm1822_vm0, %v1821_v24 }
  0x7b   :  { %1655 = vmatmul.mubr.bf16.gmra.mxu0 %v1818_v55 }
  0x7c   :  { %1667 = vmatmul.mubr.bf16.gmra.mxu1 %v1819_v56  ;;  %1658 = vmatprep.mubr.msk.bf16.mxu0 %vm1822_vm0, %v1821_v24 }
  0x83   :  { %1659 = vmatmul.mubr.bf16.gmra.mxu0 %v1820_v57 }
  0xe3   :  { %v1453_v58 = vpop.f32.mrf.mxu0 }
  0xe4   :  { %v1499_v59 = vpop.f32.mrf.mxu1 }
  0xe5   :  { %v1454_v61 = vpop.f32.mrf.mxu0 }
  0xe6   :  { %v1455_v62 = vadd.f32 %v1454_v61, %v1453_v58  ;;  %v1500_v63 = vpop.f32.mrf.mxu1 }
  0xe7   :  { %v1501_v0 = vadd.f32 %v1500_v63, %v1499_v59  ;;  %v1456_v1 = vpop.f32.mrf.mxu0 }
  0xe8   :  { %v894_v2 = vadd.f32 %v1455_v62, %v2206_v60  ;;  %v1502_v3 = vpop.f32.mrf.mxu1 }
  0xe9   :  { %v1457_v4 = vpop.f32.mrf.mxu0 }
  0xea   :  { %v2209_v5 = vadd.f32 %v1501_v0, %v894_v2  ;;  %v1458_v6 = vadd.f32 %v1457_v4, %v1456_v1  ;;  %v1503_v7 = vpop.f32.mrf.mxu1 }
  0xeb   :  { %v1504_v8 = vadd.f32 %v1503_v7, %v1502_v3  ;;  %v1459_v9 = vpop.f32.mrf.mxu0 }
  0xec   :  { %v897_v10 = vadd.f32 %v1458_v6, %v2206_v60  ;;  %v1505_v11 = vpop.f32.mrf.mxu1 }
  0xed   :  { %v1460_v12 = vpop.f32.mrf.mxu0 }
  0xee   :  { %v2212_v13 = vadd.f32 %v1504_v8, %v897_v10  ;;  %v1461_v14 = vadd.f32 %v1460_v12, %v1459_v9  ;;  %v1506_v15 = vpop.f32.mrf.mxu1 }
  0xef   :  { %v1507_v16 = vadd.f32 %v1506_v15, %v1505_v11  ;;  %v1462_v17 = vpop.f32.mrf.mxu0 }
  0xf0   :  { %v902_v18 = vadd.f32 %v1461_v14, %v2206_v60  ;;  %v1508_v19 = vpop.f32.mrf.mxu1 }
  0xf1   :  { %v1463_v20 = vpop.f32.mrf.mxu0 }
  0xf2   :  { %v2215_v21 = vadd.f32 %v1507_v16, %v902_v18  ;;  %v1464_v22 = vadd.f32 %v1463_v20, %v1462_v17  ;;  %v1509_v23 = vpop.f32.mrf.mxu1 }
  0xf3   :  { %v1510_v24 = vadd.f32 %v1509_v23, %v1508_v19  ;;  %v1465_v25 = vpop.f32.mrf.mxu0 }
  0xf4   :  { %v905_v26 = vadd.f32 %v1464_v22, %v2206_v60  ;;  %v1511_v27 = vpop.f32.mrf.mxu1 }
  0xf5   :  { %v1466_v28 = vpop.f32.mrf.mxu0 }
  0xf6   :  { %v2218_v29 = vadd.f32 %v1510_v24, %v905_v26  ;;  %v1467_v30 = vadd.f32 %v1466_v28, %v1465_v25  ;;  %v1512_v31 = vpop.f32.mrf.mxu1 }
  0xf7   :  { %v1513_v32 = vadd.f32 %v1512_v31, %v1511_v27  ;;  %v1468_v33 = vpop.f32.mrf.mxu0 }
  0xf8   :  { %v910_v34 = vadd.f32 %v1467_v30, %v2206_v60  ;;  %v1514_v35 = vpop.f32.mrf.mxu1 }
  0xf9   :  { %v1469_v36 = vpop.f32.mrf.mxu0 }
  0xfa   :  { %v2221_v37 = vadd.f32 %v1513_v32, %v910_v34  ;;  %v1470_v38 = vadd.f32 %v1469_v36, %v1468_v33  ;;  %v1515_v39 = vpop.f32.mrf.mxu1 }
  0xfb   :  { %v1516_v40 = vadd.f32 %v1515_v39, %v1514_v35  ;;  %v1471_v42 = vpop.f32.mrf.mxu0 }
  0xfc   :  { %v913_v41 = vadd.f32 %v1470_v38, %v2206_v60  ;;  %v1517_v43 = vpop.f32.mrf.mxu1 }
  0xfd   :  { %v1472_v45 = vpop.f32.mrf.mxu0 }
  0xfe   :  { %v2224_v44 = vadd.f32 %v1516_v40, %v913_v41  ;;  %v1518_v46 = vpop.f32.mrf.mxu1  ;;  %v1473_v27 = vadd.f32 %v1472_v45, %v1471_v42 }
  0xff   :  { %v1474_v47 = vpop.f32.mrf.mxu0  ;;  %v1519_v35 = vadd.f32 %v1518_v46, %v1517_v43 }
 0x100   :  { %2290 = vst [vmem:[#allocation2_spill] sm:$0xff] %v2224_v44  ;;  %v1520_v48 = vpop.f32.mrf.mxu1  ;;  %v918_v34 = vadd.f32 %v1473_v27, %v2206_v60 }
 0x101   :  { %v1475_v49 = vpop.f32.mrf.mxu0 }
 0x102   :  { %v1521_v50 = vpop.f32.mrf.mxu1  ;;  %v1476_v30 = vadd.f32 %v1475_v49, %v1474_v47  ;;  %v990_v42 = vadd.f32 %v1519_v35, %v918_v34 }
 0x103   :  { %v1477_v51 = vpop.f32.mrf.mxu0  ;;  %v1522_v39 = vadd.f32 %v1521_v50, %v1520_v48 }
 0x104   :  { %v1523_v52 = vpop.f32.mrf.mxu1  ;;  %v921_v38 = vadd.f32 %v1476_v30, %v2206_v60 }
 0x105   :  { %v1478_v53 = vpop.f32.mrf.mxu0 }
 0x106   :  { %v1524_v54 = vpop.f32.mrf.mxu1  ;;  %v993_v49 = vadd.f32 %v1522_v39, %v921_v38 }
 0x107   :  { %v1480_v55 = vpop.f32.mrf.mxu0  ;;  %v1525_v46 = vadd.f32 %v1524_v54, %v1523_v52 }
 0x108   :  { %v1526_v56 = vpop.f32.mrf.mxu1  ;;  %v1479_v55 = vadd.f32 %v1478_v53, %v1477_v51 }
 0x109   :  { %v1481_v57 = vpop.f32.mrf.mxu0 }
 0x10a   :  { %v1527_v58 = vpop.f32.mrf.mxu1  ;;  %v926_v43 = vadd.f32 %v1479_v55, %v2206_v60 }
 0x10b   :  { %v1545_v59 = vpop.f32.mrf.mxu0 }
 0x10c   :  { %v1591_v61 = vpop.f32.mrf.mxu1 }
 0x10d   :  { %v1546_v62 = vpop.f32.mrf.mxu0 }
 0x10e   :  { %v1592_v63 = vpop.f32.mrf.mxu1  ;;  %v1547_v40 = vadd.f32 %v1546_v62, %v1545_v59 }
 0x10f   :  { %v1548_v0 = vpop.f32.mrf.mxu0  ;;  %v1593_v44 = vadd.f32 %v1592_v63, %v1591_v61 }
 0x110   :  { %v1594_v1 = vpop.f32.mrf.mxu1 }
 0x111   :  { %v1549_v2 = vpop.f32.mrf.mxu0 }
 0x112   :  { %v1595_v3 = vpop.f32.mrf.mxu1  ;;  %v1550_v58 = vadd.f32 %v1549_v2, %v1548_v0 }
 0x113   :  { %v1551_v4 = vpop.f32.mrf.mxu0  ;;  %v1596_v53 = vadd.f32 %v1595_v3, %v1594_v1 }
 0x114   :  { %v2226_v6 = vpop.f32.mrf.mxu1  ;;  %v1041_v51 = vadd.f32 %v1550_v58, %v2212_v13 }
 0x115   :  { %v1552_v7 = vpop.f32.mrf.mxu0 }
 0x116   :  { %v2228_v8 = vpop.f32.mrf.mxu1  ;;  %v1113_v54 = vadd.f32 %v1596_v53, %v1041_v51 }
 0x117   :  { %v1554_v9 = vpop.f32.mrf.mxu0 }
 0x118   :  { %v2230_v10 = vpop.f32.mrf.mxu1 }
 0x119   :  { %v1555_v11 = vpop.f32.mrf.mxu0 }
 0x11a   :  { %v2232_v12 = vpop.f32.mrf.mxu1  ;;  %v1556_v34 = vadd.f32 %v1555_v11, %v1554_v9 }
 0x11b   :  { %v2234_v14 = vpop.f32.mrf.mxu0  ;;  %v1602_v9 = vadd.f32 %v2232_v12, %v2230_v10 }
 0x11c   :  { %v2236_v15 = vpop.f32.mrf.mxu1 }
 0x11d   :  { %v2238_v16 = vpop.f32.mrf.mxu0 }
 0x11e   :  { %v2240_v17 = vpop.f32.mrf.mxu1 }
 0x11f   :  { %v2242_v18 = vpop.f32.mrf.mxu0 }
 0x120   :  { %v2244_v19 = vpop.f32.mrf.mxu1 }
 0x121   :  { %2291 = vst [vmem:[#allocation3_spill] sm:$0xff] %v2244_v19  ;;  %v2246_v20 = vpop.f32.mrf.mxu0  ;;  %v1038_v19 = vadd.f32 %v1547_v40, %v2209_v5  ;;  %v998_v5 = vadd.f32 %v1525_v46, %v926_v43  ;;  %v2293_v43 = vld [vmem:[#allocation2_spill] sm:$0xff] }
 0x122   :  { %v2248_v22 = vpop.f32.mrf.mxu1 }
 0x123   :  { %2292 = vst [vmem:[#allocation4_spill] sm:$0xff] %v2248_v22  ;;  %v1563_v23 = vpop.f32.mrf.mxu0 }
 0x124   :  { %v1609_v24 = vpop.f32.mrf.mxu1 }
 0x125   :  { %v1564_v25 = vpop.f32.mrf.mxu0 }
 0x126   :  { %v1610_v26 = vpop.f32.mrf.mxu1  ;;  %v1565_v56 = vadd.f32 %v1564_v25, %v1563_v23  ;;  %v1553_v25 = vadd.f32 %v1552_v7, %v1551_v4 }
 0x127   :  { %v1566_v28 = vpop.f32.mrf.mxu0  ;;  %v1611_v48 = vadd.f32 %v1610_v26, %v1609_v24 }
 0x128   :  { %v1612_v31 = vpop.f32.mrf.mxu1  ;;  %v1062_v30 = vadd.f32 %v1565_v56, %v990_v42  ;;  %v1046_v3 = vadd.f32 %v1553_v25, %v2215_v21  ;;  %v1559_v21 = vadd.f32 %v2238_v16, %v2234_v14 }
 0x129   :  { %v1567_v32 = vpop.f32.mrf.mxu0 }
 0x12a   :  { %v1613_v33 = vpop.f32.mrf.mxu1  ;;  %v1568_v45 = vadd.f32 %v1567_v32, %v1566_v28  ;;  %v1110_v28 = vadd.f32 %v1593_v44, %v1038_v19  ;;  %v1134_v61 = vadd.f32 %v1611_v48, %v1062_v30  ;;  %v2294_v30 = vld [vmem:[#allocation3_spill] sm:$0xff]  ;;  %v2295_v48 = vld [vmem:[#allocation4_spill] sm:$0xff] }
 0x12b   :  { %v1569_v36 = vpop.f32.mrf.mxu0  ;;  %v1614_v0 = vadd.f32 %v1613_v33, %v1612_v31  ;;  %v1599_v31 = vadd.f32 %v2228_v8, %v2226_v6  ;;  %v1049_v33 = vadd.f32 %v1556_v34, %v2218_v29  ;;  %v1562_v29 = vadd.f32 %v2246_v20, %v2242_v18 }
 0x12c   :  { %v1615_v41 = vpop.f32.mrf.mxu1  ;;  %v1065_v62 = vadd.f32 %v1568_v45, %v993_v49  ;;  %v1054_v45 = vadd.f32 %v1559_v21, %v2221_v37 }
 0x12d   :  { %v1570_v57 = vpop.f32.mrf.mxu0  ;;  %v1118_v8 = vadd.f32 %v1599_v31, %v1046_v3  ;;  %v1121_v12 = vadd.f32 %v1602_v9, %v1049_v33  ;;  %v1057_v46 = vadd.f32 %v1562_v29, %v2293_v43 }
 0x12e   :  { %v1616_v22 = vpop.f32.mrf.mxu1  ;;  %v1571_v2 = vadd.f32 %v1570_v57, %v1569_v36  ;;  %v1137_v1 = vadd.f32 %v1614_v0, %v1065_v62 }
 0x12f   :  { %v1572_v47 = vpop.f32.mrf.mxu0  ;;  %v1617_v26 = vadd.f32 %v1616_v22, %v1615_v41 }
 0x130   :  { %v1618_v27 = vpop.f32.mrf.mxu1  ;;  %v1070_v24 = vadd.f32 %v1571_v2, %v998_v5  ;;  %v1605_v47 = vadd.f32 %v2240_v17, %v2236_v15 }
 0x131   :  { %v1573_v50 = vpop.f32.mrf.mxu0 }
 0x132   :  { %v1619_v59 = vpop.f32.mrf.mxu1  ;;  %v1142_v41 = vadd.f32 %v1617_v26, %v1070_v24  ;;  %v1608_v50 = vadd.f32 %v2295_v48, %v2294_v30  ;;  %v1126_v0 = vadd.f32 %v1605_v47, %v1054_v45 }
 0x133   :  { %v1181_v23 = vpop.f32.mrf.mxu0 }
 0x134   :  { %v1205_v32 = vpop.f32.mrf.mxu1  ;;  %v1182_v60 = vadd.f32 %v1181_v23, %v1110_v28  ;;  %v1129_v2 = vadd.f32 %v1608_v50, %v1057_v46 }
 0x135   :  { %v1652_v63 = vpop.f32.mrf.mxu0  ;;  %v1206_v35 = vadd.f32 %v1205_v32, %v1134_v61 }
 0x136   :  { %v1664_v52 = vpop.f32.mrf.mxu1  ;;  %v1219_v11 = vmax.f32 %v1182_v60, 0.0 }
 0x137   :  { %v1184_v13 = vpop.f32.mrf.mxu0  ;;  %v1225_v38 = vmax.f32 %v1206_v35, 0.0 }
 0x138   :  { %v1185_v4 = vadd.f32 %v1184_v13, %v1113_v54  ;;  %v1208_v44 = vpop.f32.mrf.mxu1 }
 0x139   :  { %v1209_v7 = vadd.f32 %v1208_v44, %v1137_v1  ;;  %v1653_v19 = vpop.f32.mrf.mxu0 }
 0x13a   :  { %v1220_v36 = vmax.f32 %v1185_v4, 0.0  ;;  %v1665_v22 = vpop.f32.mrf.mxu1 }
 0x13b   :  { %v1226_v39 = vmax.f32 %v1209_v7, 0.0  ;;  %v1189_v40 = vpop.f32.mrf.mxu0 }
 0x13c   :  { %v1417_v6 = vpack.c.bf16 %v1220_v36, %v1219_v11  ;;  %v1213_v55 = vpop.f32.mrf.mxu1  ;;  %v1190_v10 = vadd.f32 %v1189_v40, %v1118_v8 }
 0x13d   :  { %v1432_v56 = vpack.c.bf16 %v1226_v39, %v1225_v38  ;;  %v1214_v57 = vadd.f32 %v1213_v55, %v1142_v41  ;;  %v1656_v58 = vpop.f32.mrf.mxu0 }
 0x13e   :  { %1418 = vst [vmem:[%s2289_s3] sm:$0xff] %v1417_v6   ;;  %v1668_v42 = vpop.f32.mrf.mxu1  ;;  %v1221_v51 = vmax.f32 %v1190_v10, 0.0 }
 0x13f   :  { %1436 = vst [vmem:[%s2289_s3 + $0x18] sm:$0xff] %v1432_v56   ;;  %v1227_v14 = vmax.f32 %v1214_v57, 0.0  ;;  %v1192_v16 = vpop.f32.mrf.mxu0 }
 0x140   :  { %v1193_v49 = vadd.f32 %v1192_v16, %v1121_v12  ;;  %v1216_v18 = vpop.f32.mrf.mxu1 }
 0x141   :  { %v1413_v20 = vpack.c.bf16 %v1227_v14, %v1227_v14  ;;  %v1657_v27 = vpop.f32.mrf.mxu0 }
 0x142   :  { %v1222_v53 = vmax.f32 %v1193_v49, 0.0  ;;  %v1669_v59 = vpop.f32.mrf.mxu1 }
 0x143   :  { %1273 = vst [vmem:[%s2289_s3 + $0x20] sm:$0xf] %v1413_v20  ;;  %v1197_v37 = vpop.f32.mrf.mxu0 }
 0x144   :  { %v1422_v62 = vpack.c.bf16 %v1222_v53, %v1221_v51  ;;  %v1198_v17 = vadd.f32 %v1197_v37, %v1126_v0 }
 0x145   :  { %v1660_v15 = vpop.f32.mrf.mxu0 }
 0x146   :  { %1434 = vst [vmem:[%s2289_s3 + $0x8] sm:$0xff] %v1422_v62   ;;  %v1223_v32 = vmax.f32 %v1198_v17, 0.0 }
 0x147   :  { %v1200_v23 = vpop.f32.mrf.mxu0 }
 0x148   :  { %v1201_v25 = vadd.f32 %v1200_v23, %v1129_v2 }
 0x149   :  { %v1661_v28 = vpop.f32.mrf.mxu0 }
 0x14a   :  { %v1224_v5 = vmax.f32 %v1201_v25, 0.0 }
 0x14c   :  { %v1427_v61 = vpack.c.bf16 %v1224_v5, %v1223_v32 }
 0x14e   :  { %1435 = vst [vmem:[%s2289_s3 + $0x10] sm:$0xff] %v1427_v61  }

// kernel: cnn_policy_net_forward.9
= control target key start
LH: loop header
LB: loop body
LE: loop exit
PB: predicated region body
PF: predicated region fallthrough
CT: control target
= control target key end

     0   :  { %v4464_v22 = vmov 1966171168   ;;  %v618_v24 = vlaneseq  ;;  %vm4466_vm0 = vmmov 0   ;;  %vm3431_vm1 = vcmask 50176   ;;  %s5463_s1 = inlined_call_operand.vmem [shape: bf16[4608,128], index: 1, kind: input, shape index: {}]   ;;  %s5464_s0 = inlined_call_operand.vmem [shape: bf16[2,4608], index: 0, kind: input, shape index: {}]   ;;  %s5465_s2 = inlined_call_operand.vmem [shape: f32[1,128], index: 2, kind: input, shape index: {}]   ;;  %s5466_s3 = inlined_call_operand.vmem [shape: bf16[128,7], index: 3, kind: input, shape index: {}]   ;;  %s5467_s4 = inlined_call_operand.vmem [shape: f32[1,7], index: 4, kind: input, shape index: {}]   ;;  %s5468_s5 = inlined_call_operand.vmem [shape: f32[2,7], index: 5, kind: output, shape index: {}]  }
   0x1   :  { %v4164_v0 = vld [vmem:[%s5463_s1 + $0x78] sm:$0xff]   ;;  %v4168_v4 = vld [vmem:[%s5463_s1 + $0x70] sm:$0xff]   ;;  %v4172_v8 = vld [vmem:[%s5463_s1 + $0x68] sm:$0xff]   ;;  %v616_v23 = vunpack.c.l.s4 %v4464_v22 }
   0x2   :  { %v4165_v1 = vld [vmem:[%s5463_s1 + $0xf8] sm:$0xff]   ;;  %3736 = vmatprep.subr.bf16.mxu0 %v4164_v0  ;;  %v4169_v5 = vld [vmem:[%s5463_s1 + $0xf0] sm:$0xff]   ;;  %v4173_v9 = vld [vmem:[%s5463_s1 + $0xe8] sm:$0xff]   ;;  %v619_v30 = vshrl.u32 %v618_v24, 7 }
   0x3   :  { %v4166_v2 = vld [vmem:[%s5463_s1 + $0x38] sm:$0xff]   ;;  %3758 = vmatprep.subr.bf16.mxu1 %v4165_v1  ;;  %v4170_v6 = vld [vmem:[%s5463_s1 + $0x30] sm:$0xff]   ;;  %v4174_v10 = vld [vmem:[%s5463_s1 + $0x28] sm:$0xff]   ;;  %v617_v29 = vunpack.c.0.s8 %v616_v23 }
   0x4   :  { %v4167_v3 = vld [vmem:[%s5463_s1 + $0xb8] sm:$0xff]   ;;  %3737 = vmatpush3.bf16.msra.mxu0 %v4166_v2  ;;  %v4171_v7 = vld [vmem:[%s5463_s1 + $0xb0] sm:$0xff]   ;;  %v4175_v11 = vld [vmem:[%s5463_s1 + $0xa8] sm:$0xff]  }
   0x5   :  { %3759 = vmatpush3.bf16.msra.mxu1 %v4167_v3  ;;  %3738 = vmatprep.subr.bf16.mxu0 %v4168_v4  ;;  %v4176_v12 = vld [vmem:[%s5463_s1 + $0x60] sm:$0xff]   ;;  %v4180_v16 = vld [vmem:[%s5463_s1 + $0x58] sm:$0xff]   ;;  %v4184_v20 = vld [vmem:[%s5463_s1 + $0x50] sm:$0xff]   ;;  %v4587_v35 = vsub.s32 %v617_v29, %v619_v30 }
   0x6   :  { %3760 = vmatprep.subr.bf16.mxu1 %v4169_v5  ;;  %v4177_v13 = vld [vmem:[%s5463_s1 + $0xe0] sm:$0xff]   ;;  %v4181_v17 = vld [vmem:[%s5463_s1 + $0xd8] sm:$0xff]   ;;  %v4185_v21 = vld [vmem:[%s5463_s1 + $0xd0] sm:$0xff]  }
   0x7   :  { %v4178_v14 = vld [vmem:[%s5463_s1 + $0x20] sm:$0xff]   ;;  %v4182_v18 = vld [vmem:[%s5463_s1 + $0x18] sm:$0xff]   ;;  %v4186_v25 = vld [vmem:[%s5463_s1 + $0x10] sm:$0xff]  }
   0x8   :  { %3739 = vmatpush3.bf16.msra.mxu0 %v4170_v6  ;;  %v4179_v15 = vld [vmem:[%s5463_s1 + $0xa0] sm:$0xff]   ;;  %v4183_v19 = vld [vmem:[%s5463_s1 + $0x98] sm:$0xff]   ;;  %v4187_v26 = vld [vmem:[%s5463_s1 + $0x90] sm:$0xff]  }
   0x9   :  { %3761 = vmatpush3.bf16.msra.mxu1 %v4171_v7  ;;  %3740 = vmatprep.subr.bf16.mxu0 %v4172_v8  ;;  %v4188_v27 = vld [vmem:[%s5463_s1 + $0x48] sm:$0xff]   ;;  %v4192_v33 = vld [vmem:[%s5463_s1 + $0x40] sm:$0xff]   ;;  %v4197_v41 = vld [vmem:[%s5463_s1 + $0x178] sm:$0xff]  }
   0xa   :  { %3762 = vmatprep.subr.bf16.mxu1 %v4173_v9  ;;  %v4189_v28 = vld [vmem:[%s5463_s1 + $0xc8] sm:$0xff]   ;;  %v4193_v34 = vld [vmem:[%s5463_s1 + $0xc0] sm:$0xff]   ;;  %v4198_v42 = vld [vmem:[%s5463_s1 + $0x1f8] sm:$0xff]  }
   0xb   :  { %v4190_v31 = vld [vmem:[%s5463_s1 + $0x8] sm:$0xff]   ;;  %v4194_v36 = vld [vmem:[%s5463_s1] sm:$0xff]   ;;  %v4199_v46 = vld [vmem:[%s5463_s1 + $0x138] sm:$0xff]  }
   0xc   :  { %3741 = vmatpush3.bf16.msra.mxu0 %v4174_v10  ;;  %v4191_v32 = vld [vmem:[%s5463_s1 + $0x88] sm:$0xff]   ;;  %v4195_v37 = vld [vmem:[%s5463_s1 + $0x80] sm:$0xff]   ;;  %v4200_v48 = vld [vmem:[%s5463_s1 + $0x1b8] sm:$0xff]  }
   0xd   :  { %3763 = vmatpush3.bf16.msra.mxu1 %v4175_v11  ;;  %3742 = vmatprep.subr.bf16.mxu0 %v4176_v12  ;;  %v21_v38 = vld [vmem:[%s5464_s0] sm:$0xff]  ;;  %v4201_v51 = vld [vmem:[%s5463_s1 + $0x170] sm:$0xff]   ;;  %v4205_v58 = vld [vmem:[%s5463_s1 + $0x168] sm:$0xff]  }
   0xe   :  { %3764 = vmatprep.subr.bf16.mxu1 %v4177_v13  ;;  %v614_v39 = vcombine.high %v21_v38, %v21_v38  ;;  %v621_v40 = vrot.slane %v21_v38, %v4587_v35  ;;  %v4202_v53 = vld [vmem:[%s5463_s1 + $0x1f0] sm:$0xff]   ;;  %v4206_v59 = vld [vmem:[%s5463_s1 + $0x1e8] sm:$0xff]   ;;  %v4209_v62 = vld [vmem:[%s5463_s1 + $0x160] sm:$0xff]  }
   0xf   :  { %v4203_v55 = vld [vmem:[%s5463_s1 + $0x130] sm:$0xff]   ;;  %v4207_v60 = vld [vmem:[%s5463_s1 + $0x128] sm:$0xff]   ;;  %v4210_v63 = vld [vmem:[%s5463_s1 + $0x1e0] sm:$0xff]  }
  0x10   :  { %3743 = vmatpush3.bf16.msra.mxu0 %v4178_v14  ;;  %v629_v43 = vcombine.high %v621_v40, %v621_v40  ;;  %v637_v44 = vrot.slane %v621_v40, %v4587_v35  ;;  %v4607_v45 = vrot.slane %v614_v39, %v4587_v35  ;;  %v4204_v56 = vld [vmem:[%s5463_s1 + $0x1b0] sm:$0xff]   ;;  %v4208_v61 = vld [vmem:[%s5463_s1 + $0x1a8] sm:$0xff]   ;;  %v4211_v0 = vld [vmem:[%s5463_s1 + $0x120] sm:$0xff]  }
  0x11   :  { %3765 = vmatpush3.bf16.msra.mxu1 %v4179_v15  ;;  %3744 = vmatprep.subr.bf16.mxu0 %v4180_v16  ;;  %v4212_v1 = vld [vmem:[%s5463_s1 + $0x1a0] sm:$0xff]   ;;  %v4213_v2 = vld [vmem:[%s5463_s1 + $0x158] sm:$0xff]   ;;  %v4217_v6 = vld [vmem:[%s5463_s1 + $0x150] sm:$0xff]  }
  0x12   :  { %3766 = vmatprep.subr.bf16.mxu1 %v4181_v17  ;;  %v651_v47 = vrot.slane %v629_v43, %v4587_v35  ;;  %v630_v49 = vcombine.high %v4607_v45, %v4607_v45  ;;  %v659_v50 = vcombine.high %v637_v44, %v637_v44  ;;  %v4214_v3 = vld [vmem:[%s5463_s1 + $0x1d8] sm:$0xff]   ;;  %v4218_v7 = vld [vmem:[%s5463_s1 + $0x1d0] sm:$0xff]   ;;  %v4221_v10 = vld [vmem:[%s5463_s1 + $0x148] sm:$0xff]  }
  0x13   :  { %v4215_v4 = vld [vmem:[%s5463_s1 + $0x118] sm:$0xff]   ;;  %v4219_v8 = vld [vmem:[%s5463_s1 + $0x110] sm:$0xff]   ;;  %v4222_v11 = vld [vmem:[%s5463_s1 + $0x1c8] sm:$0xff]  }
  0x14   :  { %3745 = vmatpush3.bf16.msra.mxu0 %v4182_v18  ;;  %2630 = vmatprep.mubr.bf16.mxu0 %v651_v47  ;;  %v661_v52 = vcombine.high %v651_v47, %v651_v47  ;;  %v658_v54 = vrot.slane %v630_v49, %v4587_v35  ;;  %v4216_v5 = vld [vmem:[%s5463_s1 + $0x198] sm:$0xff]   ;;  %v4220_v9 = vld [vmem:[%s5463_s1 + $0x190] sm:$0xff]   ;;  %v4223_v12 = vld [vmem:[%s5463_s1 + $0x108] sm:$0xff]   ;;  %v644_v18 = vrot.slane %v4607_v45, %v4587_v35 }
  0x15   :  { %3767 = vmatpush3.bf16.msra.mxu1 %v4183_v19  ;;  %3746 = vmatprep.subr.bf16.mxu0 %v4184_v20  ;;  %v4224_v13 = vld [vmem:[%s5463_s1 + $0x188] sm:$0xff]   ;;  %v4225_v14 = vld [vmem:[%s5463_s1 + $0x140] sm:$0xff]   ;;  %v4229_v19 = vld [vmem:[%s5463_s1 + $0x278] sm:$0xff]  }
  0x16   :  { %3768 = vmatprep.subr.bf16.mxu1 %v4185_v21  ;;  %2670 = vmatprep.mubr.bf16.mxu1 %v661_v52  ;;  %v662_v57 = vcombine.high %v658_v54, %v658_v54  ;;  %v4226_v15 = vld [vmem:[%s5463_s1 + $0x1c0] sm:$0xff]   ;;  %v4230_v20 = vld [vmem:[%s5463_s1 + $0x2f8] sm:$0xff]   ;;  %v660_v23 = vcombine.high %v644_v18, %v644_v18  ;;  %v4233_v24 = vld [vmem:[%s5463_s1 + $0x270] sm:$0xff]  }
  0x17   :  { %v4227_v16 = vld [vmem:[%s5463_s1 + $0x100] sm:$0xff]   ;;  %v4231_v21 = vld [vmem:[%s5463_s1 + $0x238] sm:$0xff]   ;;  %v4238_v29 = vld [vmem:[%s5463_s1 + $0x2e8] sm:$0xff]  }
  0x18   :  { %3747 = vmatpush3.bf16.msra.mxu0 %v4186_v25  ;;  %v4228_v17 = vld [vmem:[%s5463_s1 + $0x180] sm:$0xff]   ;;  %v4232_v22 = vld [vmem:[%s5463_s1 + $0x2b8] sm:$0xff]   ;;  %v4234_v25 = vld [vmem:[%s5463_s1 + $0x2f0] sm:$0xff]  }
  0x19   :  { %3769 = vmatpush3.bf16.msra.mxu1 %v4187_v26  ;;  %3748 = vmatprep.subr.bf16.mxu0 %v4188_v27  ;;  %v4235_v26 = vld [vmem:[%s5463_s1 + $0x230] sm:$0xff]   ;;  %v4239_v30 = vld [vmem:[%s5463_s1 + $0x228] sm:$0xff]   ;;  %v4246_v38 = vld [vmem:[%s5463_s1 + $0x2d8] sm:$0xff]  }
  0x1a   :  { %3770 = vmatprep.subr.bf16.mxu1 %v4189_v28  ;;  %v4236_v27 = vld [vmem:[%s5463_s1 + $0x2b0] sm:$0xff]   ;;  %v4237_v28 = vld [vmem:[%s5463_s1 + $0x268] sm:$0xff]   ;;  %v4247_v39 = vld [vmem:[%s5463_s1 + $0x218] sm:$0xff]  }
  0x1b   :  { %v4248_v40 = vld [vmem:[%s5463_s1 + $0x298] sm:$0xff]   ;;  %v4251_v43 = vld [vmem:[%s5463_s1 + $0x210] sm:$0xff]   ;;  %v4253_v45 = vld [vmem:[%s5463_s1 + $0x248] sm:$0xff]  }
  0x1c   :  { %3749 = vmatpush3.bf16.msra.mxu0 %v4190_v31  ;;  %v4240_v31 = vld [vmem:[%s5463_s1 + $0x2a8] sm:$0xff]   ;;  %v4257_v49 = vld [vmem:[%s5463_s1 + $0x240] sm:$0xff]  }
  0x1d   :  { %3771 = vmatpush3.bf16.msra.mxu1 %v4191_v32  ;;  %3750 = vmatprep.subr.bf16.mxu0 %v4192_v33  ;;  %v4241_v32 = vld [vmem:[%s5463_s1 + $0x260] sm:$0xff]   ;;  %v4255_v47 = vld [vmem:[%s5463_s1 + $0x208] sm:$0xff]  }
  0x1e   :  { %3772 = vmatprep.subr.bf16.mxu1 %v4193_v34  ;;  %v4242_v33 = vld [vmem:[%s5463_s1 + $0x2e0] sm:$0xff]   ;;  %v22_v52 = vld [vmem:[%s5464_s0 + $0x8] sm:$0xff] }
  0x1f   :  { %v4243_v34 = vld [vmem:[%s5463_s1 + $0x220] sm:$0xff]  }
  0x20   :  { %3751 = vmatpush3.bf16.msra.mxu0 %v4194_v36  ;;  %v4244_v36 = vld [vmem:[%s5463_s1 + $0x2a0] sm:$0xff]  }
  0x21   :  { %3773 = vmatpush3.bf16.msra.mxu1 %v4195_v37  ;;  %3780 = vmatprep.subr.bf16.mxu0 %v4197_v41  ;;  %v4245_v37 = vld [vmem:[%s5463_s1 + $0x258] sm:$0xff]   ;;  %v4249_v41 = vld [vmem:[%s5463_s1 + $0x250] sm:$0xff]  }
  0x22   :  { %3802 = vmatprep.subr.bf16.mxu1 %v4198_v42  ;;  %v4250_v42 = vld [vmem:[%s5463_s1 + $0x2d0] sm:$0xff]  }
  0x23   :  { %2631 = vmatmul.mubr.bf16.vlgmr.msra.gmra.mxu0 %v637_v44  ;;  %v4252_v44 = vld [vmem:[%s5463_s1 + $0x290] sm:$0xff]  }
  0x24   :  { %3781 = vmatpush3.bf16.msra.mxu0 %v4199_v46  ;;  %2671 = vmatmul.mubr.bf16.vlgmr.msra.gmra.mxu1 %v659_v50  ;;  %v4254_v46 = vld [vmem:[%s5463_s1 + $0x2c8] sm:$0xff]   ;;  %v4258_v50 = vld [vmem:[%s5463_s1 + $0x2c0] sm:$0xff]  }
  0x25   :  { %3782 = vmatprep.subr.bf16.mxu0 %v4201_v51  ;;  %3803 = vmatpush3.bf16.msra.mxu1 %v4200_v48  ;;  %v4256_v48 = vld [vmem:[%s5463_s1 + $0x288] sm:$0xff]   ;;  %v4259_v51 = vld [vmem:[%s5463_s1 + $0x200] sm:$0xff]  }
  0x26   :  { %2710 = vmatprep.mubr.bf16.mxu0 %v658_v54  ;;  %3804 = vmatprep.subr.bf16.mxu1 %v4202_v53  ;;  %v4260_v53 = vld [vmem:[%s5463_s1 + $0x280] sm:$0xff]   ;;  %v670_v54 = vrot.slane %v22_v52, %v4587_v35 }
  0x27   :  { %2750 = vmatprep.mubr.bf16.mxu1 %v662_v57 }
  0x28   :  { %3783 = vmatpush3.bf16.msra.mxu0 %v4203_v55  ;;  %v663_v55 = vcombine.high %v22_v52, %v22_v52  ;;  %v678_v57 = vcombine.high %v670_v54, %v670_v54  ;;  %v4310_v52 = vld [vmem:[%s5463_s1 + $0x458] sm:$0xff]  }
  0x29   :  { %3784 = vmatprep.subr.bf16.mxu0 %v4205_v58  ;;  %3805 = vmatpush3.bf16.msra.mxu1 %v4204_v56  ;;  %v4261_v56 = vld [vmem:[%s5463_s1 + $0x378] sm:$0xff]   ;;  %v686_v58 = vrot.slane %v670_v54, %v4587_v35 }
  0x2a   :  { %3806 = vmatprep.subr.bf16.mxu1 %v4206_v59  ;;  %v4262_v59 = vld [vmem:[%s5463_s1 + $0x3f8] sm:$0xff]  }
  0x2b   :  { %v4312_v54 = vld [vmem:[%s5463_s1 + $0x418] sm:$0xff]  }
  0x2c   :  { %3785 = vmatpush3.bf16.msra.mxu0 %v4207_v60  ;;  %v4813_v60 = vrot.slane %v663_v55, %v4587_v35  ;;  %v4313_v55 = vld [vmem:[%s5463_s1 + $0x498] sm:$0xff]  }
  0x2d   :  { %3786 = vmatprep.subr.bf16.mxu0 %v4209_v62  ;;  %3807 = vmatpush3.bf16.msra.mxu1 %v4208_v61  ;;  %v4263_v61 = vld [vmem:[%s5463_s1 + $0x338] sm:$0xff]   ;;  %v700_v62 = vrot.slane %v678_v57, %v4587_v35  ;;  %v4315_v57 = vld [vmem:[%s5463_s1 + $0x4d0] sm:$0xff]  }
  0x2e   :  { %3808 = vmatprep.subr.bf16.mxu1 %v4210_v63  ;;  %v4264_v63 = vld [vmem:[%s5463_s1 + $0x3b8] sm:$0xff]  }
  0x30   :  { %3787 = vmatpush3.bf16.msra.mxu0 %v4211_v0  ;;  %v679_v0 = vcombine.high %v4813_v60, %v4813_v60 }
  0x31   :  { %3788 = vmatprep.subr.bf16.mxu0 %v4213_v2  ;;  %3809 = vmatpush3.bf16.msra.mxu1 %v4212_v1  ;;  %v708_v1 = vcombine.high %v686_v58, %v686_v58  ;;  %v4265_v2 = vld [vmem:[%s5463_s1 + $0x370] sm:$0xff]  }
  0x32   :  { %3810 = vmatprep.subr.bf16.mxu1 %v4214_v3  ;;  %v710_v3 = vcombine.high %v700_v62, %v700_v62 }
  0x34   :  { %3789 = vmatpush3.bf16.msra.mxu0 %v4215_v4  ;;  %v4266_v4 = vld [vmem:[%s5463_s1 + $0x3f0] sm:$0xff]  }
  0x35   :  { %3790 = vmatprep.subr.bf16.mxu0 %v4217_v6  ;;  %3811 = vmatpush3.bf16.msra.mxu1 %v4216_v5  ;;  %v707_v5 = vrot.slane %v679_v0, %v4587_v35  ;;  %v4267_v6 = vld [vmem:[%s5463_s1 + $0x330] sm:$0xff]   ;;  %v4322_v0 = vld [vmem:[%s5463_s1 + $0x440] sm:$0xff]  }
  0x36   :  { %3812 = vmatprep.subr.bf16.mxu1 %v4218_v7  ;;  %v4268_v7 = vld [vmem:[%s5463_s1 + $0x3b0] sm:$0xff]  }
  0x38   :  { %3791 = vmatpush3.bf16.msra.mxu0 %v4219_v8  ;;  %v711_v8 = vcombine.high %v707_v5, %v707_v5 }
  0x39   :  { %3792 = vmatprep.subr.bf16.mxu0 %v4221_v10  ;;  %3813 = vmatpush3.bf16.msra.mxu1 %v4220_v9  ;;  %v4269_v9 = vld [vmem:[%s5463_s1 + $0x368] sm:$0xff]  }
  0x3a   :  { %3814 = vmatprep.subr.bf16.mxu1 %v4222_v11  ;;  %v4270_v10 = vld [vmem:[%s5463_s1 + $0x3e8] sm:$0xff]  }
  0x3b   :  { %v4271_v11 = vld [vmem:[%s5463_s1 + $0x328] sm:$0xff]  }
  0x3c   :  { %3793 = vmatpush3.bf16.msra.mxu0 %v4223_v12  ;;  %v4272_v12 = vld [vmem:[%s5463_s1 + $0x3a8] sm:$0xff]  }
  0x3d   :  { %3794 = vmatprep.subr.bf16.mxu0 %v4225_v14  ;;  %3815 = vmatpush3.bf16.msra.mxu1 %v4224_v13  ;;  %v4273_v13 = vld [vmem:[%s5463_s1 + $0x360] sm:$0xff]  }
  0x3e   :  { %3816 = vmatprep.subr.bf16.mxu1 %v4226_v15  ;;  %v4274_v14 = vld [vmem:[%s5463_s1 + $0x3e0] sm:$0xff]  }
  0x3f   :  { %v4275_v15 = vld [vmem:[%s5463_s1 + $0x320] sm:$0xff]  }
  0x40   :  { %3795 = vmatpush3.bf16.msra.mxu0 %v4227_v16  ;;  %v4276_v16 = vld [vmem:[%s5463_s1 + $0x3a0] sm:$0xff]  }
  0x41   :  { %3824 = vmatprep.subr.bf16.mxu0 %v4229_v19  ;;  %3817 = vmatpush3.bf16.msra.mxu1 %v4228_v17  ;;  %v4277_v17 = vld [vmem:[%s5463_s1 + $0x358] sm:$0xff]  }
  0x42   :  { %3846 = vmatprep.subr.bf16.mxu1 %v4230_v20  ;;  %v4279_v19 = vld [vmem:[%s5463_s1 + $0x318] sm:$0xff]  }
  0x43   :  { %2711 = vmatmul.mubr.bf16.vlgmr.msra.gmra.mxu0 %v644_v18  ;;  %v4278_v18 = vld [vmem:[%s5463_s1 + $0x3d8] sm:$0xff]  }
  0x44   :  { %3825 = vmatpush3.bf16.msra.mxu0 %v4231_v21  ;;  %2751 = vmatmul.mubr.bf16.vlgmr.msra.gmra.mxu1 %v660_v23  ;;  %v4280_v20 = vld [vmem:[%s5463_s1 + $0x398] sm:$0xff]   ;;  %v4281_v21 = vld [vmem:[%s5463_s1 + $0x350] sm:$0xff]  }
  0x45   :  { %3826 = vmatprep.subr.bf16.mxu0 %v4233_v24  ;;  %3847 = vmatpush3.bf16.msra.mxu1 %v4232_v22  ;;  %v4282_v22 = vld [vmem:[%s5463_s1 + $0x3d0] sm:$0xff]  }
  0x46   :  { %3848 = vmatprep.subr.bf16.mxu1 %v4234_v25  ;;  %2790 = vmatprep.mubr.bf16.mxu0 %v700_v62  ;;  %v4283_v23 = vld [vmem:[%s5463_s1 + $0x310] sm:$0xff]   ;;  %v4285_v25 = vld [vmem:[%s5463_s1 + $0x348] sm:$0xff]  }
  0x47   :  { %2830 = vmatprep.mubr.bf16.mxu1 %v710_v3  ;;  %v4284_v24 = vld [vmem:[%s5463_s1 + $0x390] sm:$0xff]   ;;  %v4320_v62 = vld [vmem:[%s5463_s1 + $0x408] sm:$0xff]  }
  0x48   :  { %3827 = vmatpush3.bf16.msra.mxu0 %v4235_v26  ;;  %v4286_v26 = vld [vmem:[%s5463_s1 + $0x3c8] sm:$0xff]   ;;  %v23_v3 = vld [vmem:[%s5464_s0 + $0x10] sm:$0xff] }
  0x49   :  { %3828 = vmatprep.subr.bf16.mxu0 %v4237_v28  ;;  %3849 = vmatpush3.bf16.msra.mxu1 %v4236_v27  ;;  %v4287_v27 = vld [vmem:[%s5463_s1 + $0x308] sm:$0xff]  }
  0x4a   :  { %3850 = vmatprep.subr.bf16.mxu1 %v4238_v29  ;;  %v4288_v28 = vld [vmem:[%s5463_s1 + $0x388] sm:$0xff]   ;;  %v4289_v29 = vld [vmem:[%s5463_s1 + $0x340] sm:$0xff]  }
  0x4c   :  { %3829 = vmatpush3.bf16.msra.mxu0 %v4239_v30  ;;  %v4290_v30 = vld [vmem:[%s5463_s1 + $0x3c0] sm:$0xff]  }
  0x4d   :  { %3830 = vmatprep.subr.bf16.mxu0 %v4241_v32  ;;  %3851 = vmatpush3.bf16.msra.mxu1 %v4240_v31  ;;  %v4291_v31 = vld [vmem:[%s5463_s1 + $0x300] sm:$0xff]  }
  0x4e   :  { %3852 = vmatprep.subr.bf16.mxu1 %v4242_v33  ;;  %v4292_v32 = vld [vmem:[%s5463_s1 + $0x380] sm:$0xff]   ;;  %v693_v33 = vrot.slane %v4813_v60, %v4587_v35  ;;  %v4318_v60 = vld [vmem:[%s5463_s1 + $0x448] sm:$0xff]  }
  0x50   :  { %3831 = vmatpush3.bf16.msra.mxu0 %v4243_v34  ;;  %v4294_v34 = vld [vmem:[%s5463_s1 + $0x478] sm:$0xff]  }
  0x51   :  { %3832 = vmatprep.subr.bf16.mxu0 %v4245_v37  ;;  %3853 = vmatpush3.bf16.msra.mxu1 %v4244_v36  ;;  %v4295_v36 = vld [vmem:[%s5463_s1 + $0x4f8] sm:$0xff]  }
  0x52   :  { %3854 = vmatprep.subr.bf16.mxu1 %v4246_v38  ;;  %v4296_v37 = vld [vmem:[%s5463_s1 + $0x438] sm:$0xff]  }
  0x53   :  { %v4297_v38 = vld [vmem:[%s5463_s1 + $0x4b8] sm:$0xff]  }
  0x54   :  { %3833 = vmatpush3.bf16.msra.mxu0 %v4247_v39  ;;  %v709_v39 = vcombine.high %v693_v33, %v693_v33 }
  0x55   :  { %3834 = vmatprep.subr.bf16.mxu0 %v4249_v41  ;;  %3855 = vmatpush3.bf16.msra.mxu1 %v4248_v40  ;;  %v4298_v40 = vld [vmem:[%s5463_s1 + $0x470] sm:$0xff]  }
  0x56   :  { %3856 = vmatprep.subr.bf16.mxu1 %v4250_v42  ;;  %v4299_v41 = vld [vmem:[%s5463_s1 + $0x4f0] sm:$0xff]  }
  0x57   :  { %v4300_v42 = vld [vmem:[%s5463_s1 + $0x430] sm:$0xff]  }
  0x58   :  { %3835 = vmatpush3.bf16.msra.mxu0 %v4251_v43  ;;  %v4301_v43 = vld [vmem:[%s5463_s1 + $0x4b0] sm:$0xff]  }
  0x59   :  { %3836 = vmatprep.subr.bf16.mxu0 %v4253_v45  ;;  %3857 = vmatpush3.bf16.msra.mxu1 %v4252_v44  ;;  %v4302_v44 = vld [vmem:[%s5463_s1 + $0x468] sm:$0xff]  }
  0x5a   :  { %3858 = vmatprep.subr.bf16.mxu1 %v4254_v46  ;;  %v4303_v45 = vld [vmem:[%s5463_s1 + $0x4e8] sm:$0xff]  }
  0x5b   :  { %v4304_v46 = vld [vmem:[%s5463_s1 + $0x428] sm:$0xff]  }
  0x5c   :  { %3837 = vmatpush3.bf16.msra.mxu0 %v4255_v47  ;;  %v4305_v47 = vld [vmem:[%s5463_s1 + $0x4a8] sm:$0xff]  }
  0x5d   :  { %3838 = vmatprep.subr.bf16.mxu0 %v4257_v49  ;;  %3859 = vmatpush3.bf16.msra.mxu1 %v4256_v48  ;;  %v4306_v48 = vld [vmem:[%s5463_s1 + $0x460] sm:$0xff]  }
  0x5e   :  { %3860 = vmatprep.subr.bf16.mxu1 %v4258_v50  ;;  %v4307_v49 = vld [vmem:[%s5463_s1 + $0x4e0] sm:$0xff]  }
  0x5f   :  { %v4308_v50 = vld [vmem:[%s5463_s1 + $0x420] sm:$0xff]  }
  0x60   :  { %3839 = vmatpush3.bf16.msra.mxu0 %v4259_v51  ;;  %v4309_v51 = vld [vmem:[%s5463_s1 + $0x4a0] sm:$0xff]  }
  0x61   :  { %3868 = vmatprep.subr.bf16.mxu0 %v4261_v56  ;;  %3861 = vmatpush3.bf16.msra.mxu1 %v4260_v53  ;;  %v4311_v53 = vld [vmem:[%s5463_s1 + $0x4d8] sm:$0xff]   ;;  %v4314_v56 = vld [vmem:[%s5463_s1 + $0x450] sm:$0xff]  }
  0x62   :  { %3890 = vmatprep.subr.bf16.mxu1 %v4262_v59  ;;  %v4317_v59 = vld [vmem:[%s5463_s1 + $0x490] sm:$0xff]  }
  0x63   :  { %2791 = vmatmul.mubr.bf16.vlgmr.msra.gmra.mxu0 %v686_v58  ;;  %v4316_v58 = vld [vmem:[%s5463_s1 + $0x410] sm:$0xff]  }
  0x64   :  { %3869 = vmatpush3.bf16.msra.mxu0 %v4263_v61  ;;  %2831 = vmatmul.mubr.bf16.vlgmr.msra.gmra.mxu1 %v708_v1  ;;  %v4319_v61 = vld [vmem:[%s5463_s1 + $0x4c8] sm:$0xff]   ;;  %v4323_v1 = vld [vmem:[%s5463_s1 + $0x4c0] sm:$0xff]  }
  0x65   :  { %3870 = vmatprep.subr.bf16.mxu0 %v4265_v2  ;;  %3891 = vmatpush3.bf16.msra.mxu1 %v4264_v63  ;;  %v4321_v63 = vld [vmem:[%s5463_s1 + $0x488] sm:$0xff]   ;;  %v4324_v2 = vld [vmem:[%s5463_s1 + $0x400] sm:$0xff]  }
  0x66   :  { %2870 = vmatprep.mubr.bf16.mxu0 %v707_v5  ;;  %3892 = vmatprep.subr.bf16.mxu1 %v4266_v4  ;;  %v4325_v4 = vld [vmem:[%s5463_s1 + $0x480] sm:$0xff]   ;;  %v719_v5 = vrot.slane %v23_v3, %v4587_v35 }
  0x67   :  { %2910 = vmatprep.mubr.bf16.mxu1 %v711_v8 }
  0x68   :  { %3871 = vmatpush3.bf16.msra.mxu0 %v4267_v6  ;;  %v712_v6 = vcombine.high %v23_v3, %v23_v3  ;;  %v727_v8 = vcombine.high %v719_v5, %v719_v5  ;;  %v4375_v3 = vld [vmem:[%s5463_s1 + $0x658] sm:$0xff]  }
  0x69   :  { %3872 = vmatprep.subr.bf16.mxu0 %v4269_v9  ;;  %3893 = vmatpush3.bf16.msra.mxu1 %v4268_v7  ;;  %v4326_v7 = vld [vmem:[%s5463_s1 + $0x578] sm:$0xff]   ;;  %v735_v9 = vrot.slane %v719_v5, %v4587_v35 }
  0x6a   :  { %3894 = vmatprep.subr.bf16.mxu1 %v4270_v10  ;;  %v4327_v10 = vld [vmem:[%s5463_s1 + $0x5f8] sm:$0xff]  }
  0x6b   :  { %v4377_v5 = vld [vmem:[%s5463_s1 + $0x618] sm:$0xff]  }
  0x6c   :  { %3873 = vmatpush3.bf16.msra.mxu0 %v4271_v11  ;;  %v5019_v11 = vrot.slane %v712_v6, %v4587_v35  ;;  %v4378_v6 = vld [vmem:[%s5463_s1 + $0x698] sm:$0xff]  }
  0x6d   :  { %3874 = vmatprep.subr.bf16.mxu0 %v4273_v13  ;;  %3895 = vmatpush3.bf16.msra.mxu1 %v4272_v12  ;;  %v4328_v12 = vld [vmem:[%s5463_s1 + $0x538] sm:$0xff]   ;;  %v749_v13 = vrot.slane %v727_v8, %v4587_v35  ;;  %v4380_v8 = vld [vmem:[%s5463_s1 + $0x6d0] sm:$0xff]  }
  0x6e   :  { %3896 = vmatprep.subr.bf16.mxu1 %v4274_v14  ;;  %v4329_v14 = vld [vmem:[%s5463_s1 + $0x5b8] sm:$0xff]  }
  0x70   :  { %3875 = vmatpush3.bf16.msra.mxu0 %v4275_v15  ;;  %v728_v15 = vcombine.high %v5019_v11, %v5019_v11 }
  0x71   :  { %3876 = vmatprep.subr.bf16.mxu0 %v4277_v17  ;;  %3897 = vmatpush3.bf16.msra.mxu1 %v4276_v16  ;;  %v757_v16 = vcombine.high %v735_v9, %v735_v9  ;;  %v4330_v17 = vld [vmem:[%s5463_s1 + $0x570] sm:$0xff]  }
  0x72   :  { %3898 = vmatprep.subr.bf16.mxu1 %v4278_v18  ;;  %v759_v18 = vcombine.high %v749_v13, %v749_v13 }
  0x74   :  { %3877 = vmatpush3.bf16.msra.mxu0 %v4279_v19  ;;  %v4331_v19 = vld [vmem:[%s5463_s1 + $0x5f0] sm:$0xff]  }
  0x75   :  { %3878 = vmatprep.subr.bf16.mxu0 %v4281_v21  ;;  %3899 = vmatpush3.bf16.msra.mxu1 %v4280_v20  ;;  %v756_v20 = vrot.slane %v728_v15, %v4587_v35  ;;  %v4332_v21 = vld [vmem:[%s5463_s1 + $0x530] sm:$0xff]   ;;  %v4387_v15 = vld [vmem:[%s5463_s1 + $0x640] sm:$0xff]  }
  0x76   :  { %3900 = vmatprep.subr.bf16.mxu1 %v4282_v22  ;;  %v4333_v22 = vld [vmem:[%s5463_s1 + $0x5b0] sm:$0xff]  }
  0x78   :  { %3879 = vmatpush3.bf16.msra.mxu0 %v4283_v23  ;;  %v760_v23 = vcombine.high %v756_v20, %v756_v20 }
  0x79   :  { %3880 = vmatprep.subr.bf16.mxu0 %v4285_v25  ;;  %3901 = vmatpush3.bf16.msra.mxu1 %v4284_v24  ;;  %v4334_v24 = vld [vmem:[%s5463_s1 + $0x568] sm:$0xff]  }
  0x7a   :  { %3902 = vmatprep.subr.bf16.mxu1 %v4286_v26  ;;  %v4335_v25 = vld [vmem:[%s5463_s1 + $0x5e8] sm:$0xff]  }
  0x7b   :  { %v4336_v26 = vld [vmem:[%s5463_s1 + $0x528] sm:$0xff]  }
  0x7c   :  { %3881 = vmatpush3.bf16.msra.mxu0 %v4287_v27  ;;  %v4337_v27 = vld [vmem:[%s5463_s1 + $0x5a8] sm:$0xff]  }
  0x7d   :  { %3882 = vmatprep.subr.bf16.mxu0 %v4289_v29  ;;  %3903 = vmatpush3.bf16.msra.mxu1 %v4288_v28  ;;  %v4338_v28 = vld [vmem:[%s5463_s1 + $0x560] sm:$0xff]  }
  0x7e   :  { %3904 = vmatprep.subr.bf16.mxu1 %v4290_v30  ;;  %v4339_v29 = vld [vmem:[%s5463_s1 + $0x5e0] sm:$0xff]  }
  0x7f   :  { %v4340_v30 = vld [vmem:[%s5463_s1 + $0x520] sm:$0xff]  }
  0x80   :  { %3883 = vmatpush3.bf16.msra.mxu0 %v4291_v31  ;;  %v4341_v31 = vld [vmem:[%s5463_s1 + $0x5a0] sm:$0xff]  }
  0x81   :  { %3912 = vmatprep.subr.bf16.mxu0 %v4294_v34  ;;  %3905 = vmatpush3.bf16.msra.mxu1 %v4292_v32  ;;  %v4342_v32 = vld [vmem:[%s5463_s1 + $0x558] sm:$0xff]  }
  0x82   :  { %3934 = vmatprep.subr.bf16.mxu1 %v4295_v36  ;;  %v4344_v34 = vld [vmem:[%s5463_s1 + $0x518] sm:$0xff]  }
  0x83   :  { %2871 = vmatmul.mubr.bf16.vlgmr.msra.gmra.mxu0 %v693_v33  ;;  %v4343_v33 = vld [vmem:[%s5463_s1 + $0x5d8] sm:$0xff]  }
  0x84   :  { %3913 = vmatpush3.bf16.msra.mxu0 %v4296_v37  ;;  %2911 = vmatmul.mubr.bf16.vlgmr.msra.gmra.mxu1 %v709_v39  ;;  %v4345_v36 = vld [vmem:[%s5463_s1 + $0x598] sm:$0xff]   ;;  %v4346_v37 = vld [vmem:[%s5463_s1 + $0x550] sm:$0xff]  }
  0x85   :  { %3914 = vmatprep.subr.bf16.mxu0 %v4298_v40  ;;  %3935 = vmatpush3.bf16.msra.mxu1 %v4297_v38  ;;  %v4347_v38 = vld [vmem:[%s5463_s1 + $0x5d0] sm:$0xff]  }
  0x86   :  { %3936 = vmatprep.subr.bf16.mxu1 %v4299_v41  ;;  %2950 = vmatprep.mubr.bf16.mxu0 %v749_v13  ;;  %v4348_v39 = vld [vmem:[%s5463_s1 + $0x510] sm:$0xff]   ;;  %v4350_v41 = vld [vmem:[%s5463_s1 + $0x548] sm:$0xff]  }
  0x87   :  { %2990 = vmatprep.mubr.bf16.mxu1 %v759_v18  ;;  %v4349_v40 = vld [vmem:[%s5463_s1 + $0x590] sm:$0xff]   ;;  %v4385_v13 = vld [vmem:[%s5463_s1 + $0x608] sm:$0xff]   ;;  %v24_v18 = vld [vmem:[%s5464_s0 + $0x18] sm:$0xff] }
  0x88   :  { %3915 = vmatpush3.bf16.msra.mxu0 %v4300_v42  ;;  %v4351_v42 = vld [vmem:[%s5463_s1 + $0x5c8] sm:$0xff]  }
  0x89   :  { %3916 = vmatprep.subr.bf16.mxu0 %v4302_v44  ;;  %3937 = vmatpush3.bf16.msra.mxu1 %v4301_v43  ;;  %v4352_v43 = vld [vmem:[%s5463_s1 + $0x508] sm:$0xff]  }
  0x8a   :  { %3938 = vmatprep.subr.bf16.mxu1 %v4303_v45  ;;  %v4353_v44 = vld [vmem:[%s5463_s1 + $0x588] sm:$0xff]   ;;  %v4354_v45 = vld [vmem:[%s5463_s1 + $0x540] sm:$0xff]  }
  0x8c   :  { %3917 = vmatpush3.bf16.msra.mxu0 %v4304_v46  ;;  %v4355_v46 = vld [vmem:[%s5463_s1 + $0x5c0] sm:$0xff]  }
  0x8d   :  { %3918 = vmatprep.subr.bf16.mxu0 %v4306_v48  ;;  %3939 = vmatpush3.bf16.msra.mxu1 %v4305_v47  ;;  %v4356_v47 = vld [vmem:[%s5463_s1 + $0x500] sm:$0xff]  }
  0x8e   :  { %3940 = vmatprep.subr.bf16.mxu1 %v4307_v49  ;;  %v4357_v48 = vld [vmem:[%s5463_s1 + $0x580] sm:$0xff]   ;;  %v742_v49 = vrot.slane %v5019_v11, %v4587_v35  ;;  %v4383_v11 = vld [vmem:[%s5463_s1 + $0x648] sm:$0xff]  }
  0x90   :  { %3919 = vmatpush3.bf16.msra.mxu0 %v4308_v50  ;;  %v4359_v50 = vld [vmem:[%s5463_s1 + $0x678] sm:$0xff]  }
  0x91   :  { %3920 = vmatprep.subr.bf16.mxu0 %v4310_v52  ;;  %3941 = vmatpush3.bf16.msra.mxu1 %v4309_v51  ;;  %v4360_v51 = vld [vmem:[%s5463_s1 + $0x6f8] sm:$0xff]  }
  0x92   :  { %3942 = vmatprep.subr.bf16.mxu1 %v4311_v53  ;;  %v4361_v52 = vld [vmem:[%s5463_s1 + $0x638] sm:$0xff]  }
  0x93   :  { %v4362_v53 = vld [vmem:[%s5463_s1 + $0x6b8] sm:$0xff]  }
  0x94   :  { %3921 = vmatpush3.bf16.msra.mxu0 %v4312_v54  ;;  %v758_v54 = vcombine.high %v742_v49, %v742_v49 }
  0x95   :  { %3922 = vmatprep.subr.bf16.mxu0 %v4314_v56  ;;  %3943 = vmatpush3.bf16.msra.mxu1 %v4313_v55  ;;  %v4363_v55 = vld [vmem:[%s5463_s1 + $0x670] sm:$0xff]  }
  0x96   :  { %3944 = vmatprep.subr.bf16.mxu1 %v4315_v57  ;;  %v4364_v56 = vld [vmem:[%s5463_s1 + $0x6f0] sm:$0xff]  }
  0x97   :  { %v4365_v57 = vld [vmem:[%s5463_s1 + $0x630] sm:$0xff]  }
  0x98   :  { %3923 = vmatpush3.bf16.msra.mxu0 %v4316_v58  ;;  %v4366_v58 = vld [vmem:[%s5463_s1 + $0x6b0] sm:$0xff]  }
  0x99   :  { %3924 = vmatprep.subr.bf16.mxu0 %v4318_v60  ;;  %3945 = vmatpush3.bf16.msra.mxu1 %v4317_v59  ;;  %v4367_v59 = vld [vmem:[%s5463_s1 + $0x668] sm:$0xff]  }
  0x9a   :  { %3946 = vmatprep.subr.bf16.mxu1 %v4319_v61  ;;  %v4368_v60 = vld [vmem:[%s5463_s1 + $0x6e8] sm:$0xff]  }
  0x9b   :  { %v4369_v61 = vld [vmem:[%s5463_s1 + $0x628] sm:$0xff]  }
  0x9c   :  { %3925 = vmatpush3.bf16.msra.mxu0 %v4320_v62  ;;  %v4370_v62 = vld [vmem:[%s5463_s1 + $0x6a8] sm:$0xff]  }
  0x9d   :  { %3926 = vmatprep.subr.bf16.mxu0 %v4322_v0  ;;  %3947 = vmatpush3.bf16.msra.mxu1 %v4321_v63  ;;  %v4371_v63 = vld [vmem:[%s5463_s1 + $0x660] sm:$0xff]  }
  0x9e   :  { %3948 = vmatprep.subr.bf16.mxu1 %v4323_v1  ;;  %v4372_v0 = vld [vmem:[%s5463_s1 + $0x6e0] sm:$0xff]  }
  0x9f   :  { %v4373_v1 = vld [vmem:[%s5463_s1 + $0x620] sm:$0xff]  }
  0xa0   :  { %3927 = vmatpush3.bf16.msra.mxu0 %v4324_v2  ;;  %v4374_v2 = vld [vmem:[%s5463_s1 + $0x6a0] sm:$0xff]  }
  0xa1   :  { %3956 = vmatprep.subr.bf16.mxu0 %v4326_v7  ;;  %3949 = vmatpush3.bf16.msra.mxu1 %v4325_v4  ;;  %v4376_v4 = vld [vmem:[%s5463_s1 + $0x6d8] sm:$0xff]   ;;  %v4379_v7 = vld [vmem:[%s5463_s1 + $0x650] sm:$0xff]  }
  0xa2   :  { %3978 = vmatprep.subr.bf16.mxu1 %v4327_v10  ;;  %v4382_v10 = vld [vmem:[%s5463_s1 + $0x690] sm:$0xff]  }
  0xa3   :  { %2951 = vmatmul.mubr.bf16.vlgmr.msra.gmra.mxu0 %v735_v9  ;;  %v4381_v9 = vld [vmem:[%s5463_s1 + $0x610] sm:$0xff]  }
  0xa4   :  { %3957 = vmatpush3.bf16.msra.mxu0 %v4328_v12  ;;  %2991 = vmatmul.mubr.bf16.vlgmr.msra.gmra.mxu1 %v757_v16  ;;  %v4384_v12 = vld [vmem:[%s5463_s1 + $0x6c8] sm:$0xff]   ;;  %v4388_v16 = vld [vmem:[%s5463_s1 + $0x6c0] sm:$0xff]  }
  0xa5   :  { %3958 = vmatprep.subr.bf16.mxu0 %v4330_v17  ;;  %3979 = vmatpush3.bf16.msra.mxu1 %v4329_v14  ;;  %v4386_v14 = vld [vmem:[%s5463_s1 + $0x688] sm:$0xff]   ;;  %v4389_v17 = vld [vmem:[%s5463_s1 + $0x600] sm:$0xff]  }
  0xa6   :  { %3030 = vmatprep.mubr.bf16.mxu0 %v756_v20  ;;  %3980 = vmatprep.subr.bf16.mxu1 %v4331_v19  ;;  %v768_v19 = vrot.slane %v24_v18, %v4587_v35  ;;  %v4391_v20 = vld [vmem:[%s5463_s1 + $0x778] sm:$0xff]  }
  0xa7   :  { %3070 = vmatprep.mubr.bf16.mxu1 %v760_v23 }
  0xa8   :  { %3959 = vmatpush3.bf16.msra.mxu0 %v4332_v21  ;;  %v761_v21 = vcombine.high %v24_v18, %v24_v18  ;;  %v776_v23 = vcombine.high %v768_v19, %v768_v19  ;;  %v4428_v18 = vld [vmem:[%s5463_s1 + $0x870] sm:$0xff]  }
  0xa9   :  { %3960 = vmatprep.subr.bf16.mxu0 %v4334_v24  ;;  %3981 = vmatpush3.bf16.msra.mxu1 %v4333_v22  ;;  %v4390_v22 = vld [vmem:[%s5463_s1 + $0x680] sm:$0xff]   ;;  %v784_v24 = vrot.slane %v768_v19, %v4587_v35 }
  0xaa   :  { %3982 = vmatprep.subr.bf16.mxu1 %v4335_v25  ;;  %v4392_v25 = vld [vmem:[%s5463_s1 + $0x7f8] sm:$0xff]  }
  0xac   :  { %3961 = vmatpush3.bf16.msra.mxu0 %v4336_v26  ;;  %v5225_v26 = vrot.slane %v761_v21, %v4587_v35  ;;  %v4429_v21 = vld [vmem:[%s5463_s1 + $0x8f0] sm:$0xff]  }
  0xad   :  { %3962 = vmatprep.subr.bf16.mxu0 %v4338_v28  ;;  %3983 = vmatpush3.bf16.msra.mxu1 %v4337_v27  ;;  %v4393_v27 = vld [vmem:[%s5463_s1 + $0x738] sm:$0xff]   ;;  %v798_v28 = vrot.slane %v776_v23, %v4587_v35 }
  0xae   :  { %3984 = vmatprep.subr.bf16.mxu1 %v4339_v29  ;;  %v4394_v29 = vld [vmem:[%s5463_s1 + $0x7b8] sm:$0xff]  }
  0xb0   :  { %3963 = vmatpush3.bf16.msra.mxu0 %v4340_v30  ;;  %v777_v30 = vcombine.high %v5225_v26, %v5225_v26 }
  0xb1   :  { %3964 = vmatprep.subr.bf16.mxu0 %v4342_v32  ;;  %3985 = vmatpush3.bf16.msra.mxu1 %v4341_v31  ;;  %v806_v31 = vcombine.high %v784_v24, %v784_v24  ;;  %v4395_v32 = vld [vmem:[%s5463_s1 + $0x770] sm:$0xff]  }
  0xb2   :  { %3986 = vmatprep.subr.bf16.mxu1 %v4343_v33  ;;  %v808_v33 = vcombine.high %v798_v28, %v798_v28 }
  0xb4   :  { %3965 = vmatpush3.bf16.msra.mxu0 %v4344_v34 }
  0xb5   :  { %3966 = vmatprep.subr.bf16.mxu0 %v4346_v37  ;;  %3987 = vmatpush3.bf16.msra.mxu1 %v4345_v36  ;;  %v3437_v36 = vld [vmem:[%s5465_s2] ss:$0 sm:$0xff]  ;;  %v805_v37 = vrot.slane %v777_v30, %v4587_v35 }
  0xb6   :  { %3988 = vmatprep.subr.bf16.mxu1 %v4347_v38  ;;  %v4396_v38 = vld [vmem:[%s5463_s1 + $0x7f0] sm:$0xff]  }
  0xb8   :  { %3967 = vmatpush3.bf16.msra.mxu0 %v4348_v39 }
  0xb9   :  { %3968 = vmatprep.subr.bf16.mxu0 %v4350_v41  ;;  %3989 = vmatpush3.bf16.msra.mxu1 %v4349_v40  ;;  %v4397_v41 = vld [vmem:[%s5463_s1 + $0x730] sm:$0xff]  }
  0xba   :  { %3990 = vmatprep.subr.bf16.mxu1 %v4351_v42  ;;  %v809_v42 = vcombine.high %v805_v37, %v805_v37 }
  0xbc   :  { %3969 = vmatpush3.bf16.msra.mxu0 %v4352_v43 }
  0xbd   :  { %3970 = vmatprep.subr.bf16.mxu0 %v4354_v45  ;;  %3991 = vmatpush3.bf16.msra.mxu1 %v4353_v44  ;;  %v4399_v44 = vld [vmem:[%s5463_s1 + $0x768] sm:$0xff]  }
  0xbe   :  { %3992 = vmatprep.subr.bf16.mxu1 %v4355_v46 }
  0xc0   :  { %3971 = vmatpush3.bf16.msra.mxu0 %v4356_v47  ;;  %v4398_v47 = vld [vmem:[%s5463_s1 + $0x7b0] sm:$0xff]  }
  0xc1   :  { %4000 = vmatprep.subr.bf16.mxu0 %v4359_v50  ;;  %3993 = vmatpush3.bf16.msra.mxu1 %v4357_v48  ;;  %v4400_v50 = vld [vmem:[%s5463_s1 + $0x7e8] sm:$0xff]  }
  0xc2   :  { %4022 = vmatprep.subr.bf16.mxu1 %v4360_v51 }
  0xc3   :  { %3031 = vmatmul.mubr.bf16.vlgmr.msra.gmra.mxu0 %v742_v49 }
  0xc4   :  { %4001 = vmatpush3.bf16.msra.mxu0 %v4361_v52  ;;  %3071 = vmatmul.mubr.bf16.vlgmr.msra.gmra.mxu1 %v758_v54 }
  0xc5   :  { %4002 = vmatprep.subr.bf16.mxu0 %v4363_v55  ;;  %4023 = vmatpush3.bf16.msra.mxu1 %v4362_v53  ;;  %v4401_v53 = vld [vmem:[%s5463_s1 + $0x728] sm:$0xff]   ;;  %v4403_v55 = vld [vmem:[%s5463_s1 + $0x760] sm:$0xff]  }
  0xc6   :  { %4024 = vmatprep.subr.bf16.mxu1 %v4364_v56  ;;  %3110 = vmatprep.mubr.bf16.mxu0 %v798_v28 }
  0xc7   :  { %3150 = vmatprep.mubr.bf16.mxu1 %v808_v33 }
  0xc8   :  { %4003 = vmatpush3.bf16.msra.mxu0 %v4365_v57  ;;  %v4402_v57 = vld [vmem:[%s5463_s1 + $0x7a8] sm:$0xff]  }
  0xc9   :  { %4004 = vmatprep.subr.bf16.mxu0 %v4367_v59  ;;  %4025 = vmatpush3.bf16.msra.mxu1 %v4366_v58  ;;  %v4404_v58 = vld [vmem:[%s5463_s1 + $0x7e0] sm:$0xff]  }
  0xca   :  { %4026 = vmatprep.subr.bf16.mxu1 %v4368_v60  ;;  %v4405_v59 = vld [vmem:[%s5463_s1 + $0x720] sm:$0xff]   ;;  %v4407_v60 = vld [vmem:[%s5463_s1 + $0x758] sm:$0xff]  }
  0xcc   :  { %4005 = vmatpush3.bf16.msra.mxu0 %v4369_v61  ;;  %v4406_v61 = vld [vmem:[%s5463_s1 + $0x7a0] sm:$0xff]  }
  0xcd   :  { %4006 = vmatprep.subr.bf16.mxu0 %v4371_v63  ;;  %4027 = vmatpush3.bf16.msra.mxu1 %v4370_v62  ;;  %v4408_v62 = vld [vmem:[%s5463_s1 + $0x7d8] sm:$0xff]  }
  0xce   :  { %4028 = vmatprep.subr.bf16.mxu1 %v4372_v0  ;;  %v4409_v63 = vld [vmem:[%s5463_s1 + $0x718] sm:$0xff]   ;;  %v4411_v0 = vld [vmem:[%s5463_s1 + $0x750] sm:$0xff]  }
  0xd0   :  { %4007 = vmatpush3.bf16.msra.mxu0 %v4373_v1  ;;  %v4410_v1 = vld [vmem:[%s5463_s1 + $0x798] sm:$0xff]  }
  0xd1   :  { %4008 = vmatprep.subr.bf16.mxu0 %v4375_v3  ;;  %4029 = vmatpush3.bf16.msra.mxu1 %v4374_v2  ;;  %v4412_v2 = vld [vmem:[%s5463_s1 + $0x7d0] sm:$0xff]  }
  0xd2   :  { %4030 = vmatprep.subr.bf16.mxu1 %v4376_v4  ;;  %v4413_v3 = vld [vmem:[%s5463_s1 + $0x710] sm:$0xff]   ;;  %v4415_v4 = vld [vmem:[%s5463_s1 + $0x748] sm:$0xff]  }
  0xd4   :  { %4009 = vmatpush3.bf16.msra.mxu0 %v4377_v5  ;;  %v4414_v5 = vld [vmem:[%s5463_s1 + $0x790] sm:$0xff]  }
  0xd5   :  { %4010 = vmatprep.subr.bf16.mxu0 %v4379_v7  ;;  %4031 = vmatpush3.bf16.msra.mxu1 %v4378_v6  ;;  %v4416_v6 = vld [vmem:[%s5463_s1 + $0x7c8] sm:$0xff]  }
  0xd6   :  { %4032 = vmatprep.subr.bf16.mxu1 %v4380_v8  ;;  %v4417_v7 = vld [vmem:[%s5463_s1 + $0x708] sm:$0xff]   ;;  %v4419_v8 = vld [vmem:[%s5463_s1 + $0x740] sm:$0xff]  }
  0xd8   :  { %4011 = vmatpush3.bf16.msra.mxu0 %v4381_v9  ;;  %v4418_v9 = vld [vmem:[%s5463_s1 + $0x788] sm:$0xff]  }
  0xd9   :  { %4012 = vmatprep.subr.bf16.mxu0 %v4383_v11  ;;  %4033 = vmatpush3.bf16.msra.mxu1 %v4382_v10  ;;  %v4420_v10 = vld [vmem:[%s5463_s1 + $0x7c0] sm:$0xff]  }
  0xda   :  { %4034 = vmatprep.subr.bf16.mxu1 %v4384_v12  ;;  %v4421_v11 = vld [vmem:[%s5463_s1 + $0x700] sm:$0xff]   ;;  %v791_v12 = vrot.slane %v5225_v26, %v4587_v35  ;;  %v4432_v26 = vld [vmem:[%s5463_s1 + $0x868] sm:$0xff]  }
  0xdc   :  { %4013 = vmatpush3.bf16.msra.mxu0 %v4385_v13  ;;  %v4424_v13 = vld [vmem:[%s5463_s1 + $0x878] sm:$0xff]  }
  0xdd   :  { %4014 = vmatprep.subr.bf16.mxu0 %v4387_v15  ;;  %4035 = vmatpush3.bf16.msra.mxu1 %v4386_v14  ;;  %v4422_v14 = vld [vmem:[%s5463_s1 + $0x780] sm:$0xff]   ;;  %v4425_v15 = vld [vmem:[%s5463_s1 + $0x8f8] sm:$0xff]  }
  0xde   :  { %4036 = vmatprep.subr.bf16.mxu1 %v4388_v16  ;;  %v4426_v16 = vld [vmem:[%s5463_s1 + $0x838] sm:$0xff]  }
  0xe0   :  { %4015 = vmatpush3.bf16.msra.mxu0 %v4389_v17  ;;  %v807_v17 = vcombine.high %v791_v12, %v791_v12 }
  0xe1   :  { %4044 = vmatprep.subr.bf16.mxu0 %v4391_v20  ;;  %4037 = vmatpush3.bf16.msra.mxu1 %v4390_v22  ;;  %v4427_v20 = vld [vmem:[%s5463_s1 + $0x8b8] sm:$0xff]  }
  0xe2   :  { %4066 = vmatprep.subr.bf16.mxu1 %v4392_v25 }
  0xe3   :  { %v3752_v34 = vpop.f32.mrf.mxu0  ;;  %3111 = vmatmul.mubr.bf16.vlgmr.msra.gmra.mxu0 %v784_v24  ;;  %v4430_v24 = vld [vmem:[%s5463_s1 + $0x830] sm:$0xff]  }
  0xe4   :  { %v3774_v39 = vpop.f32.mrf.mxu1  ;;  %4045 = vmatpush3.bf16.msra.mxu0 %v4393_v27  ;;  %3151 = vmatmul.mubr.bf16.vlgmr.msra.gmra.mxu1 %v806_v31 }
  0xe5   :  { %v3753_v40 = vpop.f32.mrf.mxu0  ;;  %4046 = vmatprep.subr.bf16.mxu0 %v4395_v32  ;;  %4067 = vmatpush3.bf16.msra.mxu1 %v4394_v29  ;;  %v4431_v29 = vld [vmem:[%s5463_s1 + $0x8b0] sm:$0xff]   ;;  %v4433_v32 = vld [vmem:[%s5463_s1 + $0x8e8] sm:$0xff]  }
  0xe6   :  { %v3754_v43 = vadd.f32 %v3753_v40, %v3752_v34  ;;  %v3775_v45 = vpop.f32.mrf.mxu1  ;;  %3190 = vmatprep.mubr.bf16.mxu0 %v805_v37  ;;  %4068 = vmatprep.subr.bf16.mxu1 %v4396_v38  ;;  %v4436_v38 = vld [vmem:[%s5463_s1 + $0x860] sm:$0xff]   ;;  %v4435_v40 = vld [vmem:[%s5463_s1 + $0x8a8] sm:$0xff]  }
  0xe7   :  { %v3755_v46 = vpop.f32.mrf.mxu0  ;;  %v3776_v49 = vadd.f32 %v3775_v45, %v3774_v39  ;;  %3230 = vmatprep.mubr.bf16.mxu1 %v809_v42  ;;  %v4438_v42 = vld [vmem:[%s5463_s1 + $0x820] sm:$0xff]   ;;  %v4441_v45 = vld [vmem:[%s5463_s1 + $0x8d8] sm:$0xff]  }
  0xe8   :  { %v2633_v48 = vadd.f32 %v3754_v43, %v3437_v36  ;;  %v3777_v51 = vpop.f32.mrf.mxu1  ;;  %4047 = vmatpush3.bf16.msra.mxu0 %v4397_v41  ;;  %v4434_v36 = vld [vmem:[%s5463_s1 + $0x828] sm:$0xff]   ;;  %v4437_v41 = vld [vmem:[%s5463_s1 + $0x8e0] sm:$0xff]   ;;  %v4440_v43 = vld [vmem:[%s5463_s1 + $0x858] sm:$0xff]  }
  0xe9   :  { %v3756_v52 = vpop.f32.mrf.mxu0  ;;  %4048 = vmatprep.subr.bf16.mxu0 %v4399_v44  ;;  %4069 = vmatpush3.bf16.msra.mxu1 %v4398_v47  ;;  %v4439_v44 = vld [vmem:[%s5463_s1 + $0x8a0] sm:$0xff]   ;;  %v4442_v46 = vld [vmem:[%s5463_s1 + $0x818] sm:$0xff]   ;;  %v4444_v47 = vld [vmem:[%s5463_s1 + $0x850] sm:$0xff]  }
  0xea   :  { %v5261_v54 = vadd.f32 %v3776_v49, %v2633_v48  ;;  %v3778_v56 = vpop.f32.mrf.mxu1  ;;  %4070 = vmatprep.subr.bf16.mxu1 %v4400_v50  ;;  %v4443_v48 = vld [vmem:[%s5463_s1 + $0x898] sm:$0xff]   ;;  %v4445_v49 = vld [vmem:[%s5463_s1 + $0x8d0] sm:$0xff]   ;;  %v4448_v51 = vld [vmem:[%s5463_s1 + $0x848] sm:$0xff]  }
  0xeb   :  { %v4446_v50 = vld [vmem:[%s5463_s1 + $0x810] sm:$0xff]   ;;  %v4451_v56 = vld [vmem:[%s5463_s1 + $0x888] sm:$0xff]  }
  0xec   :  { %4049 = vmatpush3.bf16.msra.mxu0 %v4401_v53  ;;  %v4447_v52 = vld [vmem:[%s5463_s1 + $0x890] sm:$0xff]   ;;  %v4449_v53 = vld [vmem:[%s5463_s1 + $0x8c8] sm:$0xff]  }
  0xed   :  { %4050 = vmatprep.subr.bf16.mxu0 %v4403_v55  ;;  %4071 = vmatpush3.bf16.msra.mxu1 %v4402_v57  ;;  %v4452_v55 = vld [vmem:[%s5463_s1 + $0x840] sm:$0xff]  }
  0xee   :  { %4072 = vmatprep.subr.bf16.mxu1 %v4404_v58  ;;  %v4453_v57 = vld [vmem:[%s5463_s1 + $0x8c0] sm:$0xff]  }
  0xef   :  { %v4454_v58 = vld [vmem:[%s5463_s1 + $0x800] sm:$0xff]  }
  0xf0   :  { %4051 = vmatpush3.bf16.msra.mxu0 %v4405_v59  ;;  %v3438_v59 = vld.sshfl [vmem:[%s5464_s0 + $0x20] sm:$0x33 pattern:$0x75316420] }
  0xf1   :  { %4052 = vmatprep.subr.bf16.mxu0 %v4407_v60  ;;  %4073 = vmatpush3.bf16.msra.mxu1 %v4406_v61  ;;  %v817_v60 = vcombine.high %v3438_v59, %v3438_v59  ;;  %v824_v61 = vrot.slane %v3438_v59, %v4587_v35 }
  0xf2   :  { %4074 = vmatprep.subr.bf16.mxu1 %v4408_v62  ;;  %v4455_v62 = vld [vmem:[%s5463_s1 + $0x880] sm:$0xff]  }
  0xf4   :  { %4053 = vmatpush3.bf16.msra.mxu0 %v4409_v63  ;;  %v831_v63 = vrot.slane %v817_v60, %v4587_v35 }
  0xf5   :  { %4054 = vmatprep.subr.bf16.mxu0 %v4411_v0  ;;  %4075 = vmatpush3.bf16.msra.mxu1 %v4410_v1  ;;  %v832_v1 = vcombine.high %v824_v61, %v824_v61 }
  0xf6   :  { %4076 = vmatprep.subr.bf16.mxu1 %v4412_v2  ;;  %v833_v0 = vcombine.high %v831_v63, %v831_v63 }
  0xf8   :  { %4055 = vmatpush3.bf16.msra.mxu0 %v4413_v3 }
  0xf9   :  { %4056 = vmatprep.subr.bf16.mxu0 %v4415_v4  ;;  %4077 = vmatpush3.bf16.msra.mxu1 %v4414_v5 }
  0xfa   :  { %4078 = vmatprep.subr.bf16.mxu1 %v4416_v6 }
  0xfc   :  { %4057 = vmatpush3.bf16.msra.mxu0 %v4417_v7 }
  0xfd   :  { %4058 = vmatprep.subr.bf16.mxu0 %v4419_v8  ;;  %4079 = vmatpush3.bf16.msra.mxu1 %v4418_v9 }
  0xfe   :  { %4080 = vmatprep.subr.bf16.mxu1 %v4420_v10 }
 0x100   :  { %4059 = vmatpush3.bf16.msra.mxu0 %v4421_v11 }
 0x101   :  { %4088 = vmatprep.subr.bf16.mxu0 %v4424_v13  ;;  %4081 = vmatpush3.bf16.msra.mxu1 %v4422_v14 }
 0x102   :  { %4110 = vmatprep.subr.bf16.mxu1 %v4425_v15 }
 0x103   :  { %v3796_v19 = vpop.f32.mrf.mxu0  ;;  %3191 = vmatmul.mubr.bf16.vlgmr.msra.gmra.mxu0 %v791_v12 }
 0x104   :  { %v3818_v22 = vpop.f32.mrf.mxu1  ;;  %4089 = vmatpush3.bf16.msra.mxu0 %v4426_v16  ;;  %3231 = vmatmul.mubr.bf16.vlgmr.msra.gmra.mxu1 %v807_v17 }
 0x105   :  { %v3797_v23 = vpop.f32.mrf.mxu0  ;;  %4090 = vmatprep.subr.bf16.mxu0 %v4428_v18  ;;  %4111 = vmatpush3.bf16.msra.mxu1 %v4427_v20 }
 0x106   :  { %v3798_v25 = vadd.f32 %v3797_v23, %v3796_v19  ;;  %v3819_v27 = vpop.f32.mrf.mxu1  ;;  %4112 = vmatprep.subr.bf16.mxu1 %v4429_v21  ;;  %3270 = vmatprep.mubr.bf16.mxu0 %v831_v63 }
 0x107   :  { %v3799_v28 = vpop.f32.mrf.mxu0  ;;  %v3820_v31 = vadd.f32 %v3819_v27, %v3818_v22  ;;  %3310 = vmatprep.mubr.bf16.mxu1 %v833_v0  ;;  %v4457_v27 = vld [vmem:[%s5466_s3 + $0x30] sm:$0xff]  }
 0x108   :  { %v2713_v30 = vadd.f32 %v3798_v25, %v5261_v54  ;;  %v3821_v33 = vpop.f32.mrf.mxu1  ;;  %4091 = vmatpush3.bf16.msra.mxu0 %v4430_v24  ;;  %v4450_v54 = vld [vmem:[%s5463_s1 + $0x808] sm:$0xff]   ;;  %v4465_v25 = vmov 0.0  }
 0x109   :  { %v3800_v34 = vpop.f32.mrf.mxu0  ;;  %4092 = vmatprep.subr.bf16.mxu0 %v4432_v26  ;;  %4113 = vmatpush3.bf16.msra.mxu1 %v4431_v29  ;;  %v4456_v26 = vld [vmem:[%s5466_s3 + $0x38] sm:$0xff]   ;;  %v4458_v28 = vld [vmem:[%s5466_s3 + $0x28] sm:$0xff]   ;;  %v4459_v29 = vld [vmem:[%s5466_s3 + $0x20] sm:$0xff]  }
 0x10a   :  { %v5362_v37 = vadd.f32 %v3820_v31, %v2713_v30  ;;  %v3822_v39 = vpop.f32.mrf.mxu1  ;;  %4114 = vmatprep.subr.bf16.mxu1 %v4433_v32  ;;  %v4460_v30 = vld [vmem:[%s5466_s3 + $0x18] sm:$0xff]  }
 0x10c   :  { %4093 = vmatpush3.bf16.msra.mxu0 %v4434_v36  ;;  %v4461_v36 = vld [vmem:[%s5466_s3 + $0x10] sm:$0xff]  }
 0x10d   :  { %4094 = vmatprep.subr.bf16.mxu0 %v4436_v38  ;;  %4115 = vmatpush3.bf16.msra.mxu1 %v4435_v40 }
 0x10e   :  { %4116 = vmatprep.subr.bf16.mxu1 %v4437_v41 }
 0x110   :  { %4095 = vmatpush3.bf16.msra.mxu0 %v4438_v42 }
 0x111   :  { %4096 = vmatprep.subr.bf16.mxu0 %v4440_v43  ;;  %4117 = vmatpush3.bf16.msra.mxu1 %v4439_v44  ;;  %v4462_v44 = vld [vmem:[%s5466_s3 + $0x8] sm:$0xff]  }
 0x112   :  { %4118 = vmatprep.subr.bf16.mxu1 %v4441_v45 }
 0x114   :  { %4097 = vmatpush3.bf16.msra.mxu0 %v4442_v46  ;;  %v4463_v46 = vld [vmem:[%s5466_s3] sm:$0xff]  }
 0x115   :  { %4098 = vmatprep.subr.bf16.mxu0 %v4444_v47  ;;  %4119 = vmatpush3.bf16.msra.mxu1 %v4443_v48 }
 0x116   :  { %4120 = vmatprep.subr.bf16.mxu1 %v4445_v49 }
 0x118   :  { %4099 = vmatpush3.bf16.msra.mxu0 %v4446_v50 }
 0x119   :  { %4100 = vmatprep.subr.bf16.mxu0 %v4448_v51  ;;  %4121 = vmatpush3.bf16.msra.mxu1 %v4447_v52 }
 0x11a   :  { %4122 = vmatprep.subr.bf16.mxu1 %v4449_v53 }
 0x11c   :  { %4101 = vmatpush3.bf16.msra.mxu0 %v4450_v54 }
 0x11d   :  { %4102 = vmatprep.subr.bf16.mxu0 %v4452_v55  ;;  %4123 = vmatpush3.bf16.msra.mxu1 %v4451_v56 }
 0x11e   :  { %4124 = vmatprep.subr.bf16.mxu1 %v4453_v57 }
 0x120   :  { %4103 = vmatpush3.bf16.msra.mxu0 %v4454_v58 }
 0x121   :  { %4125 = vmatpush3.bf16.msra.mxu1 %v4455_v62  ;;  %4141 = vmatprep.subr.bf16.mxu0 %v4465_v25 }
 0x123   :  { %v3840_v2 = vpop.f32.mrf.mxu0  ;;  %3271 = vmatmul.mubr.bf16.vlgmr.msra.gmra.mxu0 %v824_v61 }
 0x124   :  { %v3862_v3 = vpop.f32.mrf.mxu1  ;;  %3311 = vmatmul.mubr.bf16.vlgmr.msra.gmra.mxu1 %v832_v1  ;;  %4142 = vmatpush3.bf16.msra.mxu0 %v4456_v26 }
 0x125   :  { %v3841_v4 = vpop.f32.mrf.mxu0  ;;  %4143 = vmatprep.subr.bf16.mxu0 %v4465_v25  ;;  %4157 = vmatprep.mubr.msk.bf16.mxu0 %vm4466_vm0, %v4465_v25 }
 0x126   :  { %v3842_v5 = vadd.f32 %v3841_v4, %v3840_v2  ;;  %v3863_v6 = vpop.f32.mrf.mxu1 }
 0x127   :  { %v3843_v7 = vpop.f32.mrf.mxu0  ;;  %v3864_v9 = vadd.f32 %v3863_v6, %v3862_v3 }
 0x128   :  { %v2793_v8 = vadd.f32 %v3842_v5, %v5362_v37  ;;  %v3865_v10 = vpop.f32.mrf.mxu1  ;;  %4144 = vmatpush3.bf16.msra.mxu0 %v4457_v27 }
 0x129   :  { %v3844_v11 = vpop.f32.mrf.mxu0  ;;  %4145 = vmatprep.subr.bf16.mxu0 %v4465_v25 }
 0x12a   :  { %v2833_v35 = vadd.f32 %v3864_v9, %v2793_v8  ;;  %v3866_v12 = vpop.f32.mrf.mxu1 }
 0x12c   :  { %4146 = vmatpush3.bf16.msra.mxu0 %v4458_v28 }
 0x12d   :  { %4147 = vmatprep.subr.bf16.mxu0 %v4465_v25 }
 0x130   :  { %4148 = vmatpush3.bf16.msra.mxu0 %v4459_v29 }
 0x131   :  { %4149 = vmatprep.subr.bf16.mxu0 %v4465_v25 }
 0x134   :  { %4150 = vmatpush3.bf16.msra.mxu0 %v4460_v30 }
 0x135   :  { %4151 = vmatprep.subr.bf16.mxu0 %v4465_v25 }
 0x138   :  { %4152 = vmatpush3.bf16.msra.mxu0 %v4461_v36 }
 0x139   :  { %4153 = vmatprep.subr.bf16.mxu0 %v4465_v25 }
 0x13c   :  { %4154 = vmatpush3.bf16.msra.mxu0 %v4462_v44 }
 0x13d   :  { %4155 = vmatprep.subr.bf16.mxu0 %v4465_v25 }
 0x140   :  { %4156 = vmatpush3.bf16.msra.mxu0 %v4463_v46 }
 0x143   :  { %v3884_v13 = vpop.f32.mrf.mxu0 }
 0x144   :  { %v3906_v14 = vpop.f32.mrf.mxu1 }
 0x145   :  { %v3885_v15 = vpop.f32.mrf.mxu0 }
 0x146   :  { %v3886_v16 = vadd.f32 %v3885_v15, %v3884_v13  ;;  %v3907_v17 = vpop.f32.mrf.mxu1 }
 0x147   :  { %v3887_v18 = vpop.f32.mrf.mxu0  ;;  %v3908_v20 = vadd.f32 %v3907_v17, %v3906_v14 }
 0x148   :  { %v2873_v19 = vadd.f32 %v3886_v16, %v2833_v35  ;;  %v3909_v21 = vpop.f32.mrf.mxu1 }
 0x149   :  { %v3888_v22 = vpop.f32.mrf.mxu0 }
 0x14a   :  { %v2913_v23 = vadd.f32 %v3908_v20, %v2873_v19  ;;  %v3910_v24 = vpop.f32.mrf.mxu1 }
 0x163   :  { %v3928_v31 = vpop.f32.mrf.mxu0 }
 0x164   :  { %v3950_v32 = vpop.f32.mrf.mxu1 }
 0x165   :  { %v3929_v33 = vpop.f32.mrf.mxu0 }
 0x166   :  { %v3930_v34 = vadd.f32 %v3929_v33, %v3928_v31  ;;  %v3951_v37 = vpop.f32.mrf.mxu1 }
 0x167   :  { %v3931_v38 = vpop.f32.mrf.mxu0  ;;  %v3952_v40 = vadd.f32 %v3951_v37, %v3950_v32  ;;  %v3727_v32 = vld [vmem:[%s5467_s4] ss:$0 sm:$0xff] }
 0x168   :  { %v2953_v39 = vadd.f32 %v3930_v34, %v2913_v23  ;;  %v3953_v41 = vpop.f32.mrf.mxu1 }
 0x169   :  { %v3932_v42 = vpop.f32.mrf.mxu0 }
 0x16a   :  { %v2993_v43 = vadd.f32 %v3952_v40, %v2953_v39  ;;  %v3954_v45 = vpop.f32.mrf.mxu1 }
 0x183   :  { %v3972_v47 = vpop.f32.mrf.mxu0 }
 0x184   :  { %v3994_v48 = vpop.f32.mrf.mxu1 }
 0x185   :  { %v3973_v49 = vpop.f32.mrf.mxu0 }
 0x186   :  { %v3974_v50 = vadd.f32 %v3973_v49, %v3972_v47  ;;  %v3995_v51 = vpop.f32.mrf.mxu1 }
 0x187   :  { %v3975_v52 = vpop.f32.mrf.mxu0  ;;  %v3996_v54 = vadd.f32 %v3995_v51, %v3994_v48 }
 0x188   :  { %v3033_v53 = vadd.f32 %v3974_v50, %v2993_v43  ;;  %v3997_v55 = vpop.f32.mrf.mxu1 }
 0x189   :  { %v3976_v56 = vpop.f32.mrf.mxu0 }
 0x18a   :  { %v3073_v57 = vadd.f32 %v3996_v54, %v3033_v53  ;;  %v3998_v58 = vpop.f32.mrf.mxu1 }
 0x1a3   :  { %v4016_v59 = vpop.f32.mrf.mxu0 }
 0x1a4   :  { %v4038_v60 = vpop.f32.mrf.mxu1 }
 0x1a5   :  { %v4017_v61 = vpop.f32.mrf.mxu0 }
 0x1a6   :  { %v4039_v62 = vpop.f32.mrf.mxu1  ;;  %v4018_v11 = vadd.f32 %v4017_v61, %v4016_v59 }
 0x1a7   :  { %v4019_v63 = vpop.f32.mrf.mxu0  ;;  %v4040_v12 = vadd.f32 %v4039_v62, %v4038_v60 }
 0x1a8   :  { %v4041_v0 = vpop.f32.mrf.mxu1  ;;  %v3113_v35 = vadd.f32 %v4018_v11, %v3073_v57 }
 0x1a9   :  { %v4020_v1 = vpop.f32.mrf.mxu0 }
 0x1aa   :  { %v4042_v2 = vpop.f32.mrf.mxu1  ;;  %v3153_v14 = vadd.f32 %v4040_v12, %v3113_v35 }
 0x1c3   :  { %v4060_v3 = vpop.f32.mrf.mxu0 }
 0x1c4   :  { %v4082_v4 = vpop.f32.mrf.mxu1 }
 0x1c5   :  { %v4061_v5 = vpop.f32.mrf.mxu0 }
 0x1c6   :  { %v4083_v6 = vpop.f32.mrf.mxu1  ;;  %v4062_v13 = vadd.f32 %v4061_v5, %v4060_v3 }
 0x1c7   :  { %v4063_v7 = vpop.f32.mrf.mxu0  ;;  %v4084_v16 = vadd.f32 %v4083_v6, %v4082_v4 }
 0x1c8   :  { %v4085_v8 = vpop.f32.mrf.mxu1  ;;  %v3193_v15 = vadd.f32 %v4062_v13, %v3153_v14 }
 0x1c9   :  { %v4064_v9 = vpop.f32.mrf.mxu0 }
 0x1ca   :  { %v4086_v10 = vpop.f32.mrf.mxu1  ;;  %v3233_v20 = vadd.f32 %v4084_v16, %v3193_v15 }
 0x1e3   :  { %v4104_v17 = vpop.f32.mrf.mxu0 }
 0x1e4   :  { %v4126_v18 = vpop.f32.mrf.mxu1 }
 0x1e5   :  { %v4105_v19 = vpop.f32.mrf.mxu0 }
 0x1e6   :  { %v4106_v21 = vadd.f32 %v4105_v19, %v4104_v17  ;;  %v4127_v22 = vpop.f32.mrf.mxu1 }
 0x1e7   :  { %v4107_v23 = vpop.f32.mrf.mxu0  ;;  %v4128_v25 = vadd.f32 %v4127_v22, %v4126_v18 }
 0x1e8   :  { %v3273_v24 = vadd.f32 %v4106_v21, %v3233_v20  ;;  %v4129_v26 = vpop.f32.mrf.mxu1 }
 0x1e9   :  { %v4108_v27 = vpop.f32.mrf.mxu0 }
 0x1ea   :  { %v3313_v28 = vadd.f32 %v4128_v25, %v3273_v24  ;;  %v4130_v29 = vpop.f32.mrf.mxu1 }
 0x1ec   :  { %v3318_v30 = vmax.f32 %v3313_v28, 0.0 }
 0x1ee   :  { %v3319_v31 = vpack.c.bf16 %v3318_v30, %v3318_v30 }
 0x1f0   :  { %4158 = vmatmul.mubr.bf16.vlgmr.msra.gmra.mxu0 %v3319_v31 }
 0x2b0   :  { %v3425_v33 = vpop.f32.mrf.mxu0 }
 0x2b1   :  { %v3426_v34 = vadd.f32 %v3727_v32, %v3425_v33 }
 0x2b2   :  { %v4159_v36 = vpop.f32.mrf.mxu0 }
 0x2b3   :  { %3432 = vst.msk [vmem:[%s5468_s5] sm:$0x3] %vm3431_vm1, %v3426_v34 }
 0x2b4   :  { %v3428_v37 = vpop.f32.mrf.mxu0 }
 0x2b6   :  { %v4160_v38 = vpop.f32.mrf.mxu0 }

</bundles_post_ra>
